<compile_context>
chip_gen: v7x
topology: tpu7x:2x2x1
jax: 0.10.0
libtpu: 0.0.40
codegen_flags: <defaults>
</compile_context>

<pallas_src>
import jax
import jax.numpy as jnp
from jax.experimental import pallas as pl
from jax.experimental.pallas import tpu as pltpu

LANE = 128          # lane width: pad last dims to multiples of this
SUBLANE = 16        # bf16 sublane packing: keep batch tiles a multiple of this


def _round_up(n: int, m: int) -> int:
    return ((n + m - 1) // m) * m


def _mlp_kernel(x_ref, w1_ref, b1_ref, w2_ref, b2_ref, w3_ref, b3_ref, o_ref):
    # fc1: bf16 MXU matmul, f32 accumulation; bias + ReLU in f32.
    h1 = jnp.dot(x_ref[...], w1_ref[...], preferred_element_type=jnp.float32)
    h1 = jnp.maximum(h1 + b1_ref[...], 0.0)
    # fc2
    h2 = jnp.dot(h1.astype(w2_ref.dtype), w2_ref[...],
                 preferred_element_type=jnp.float32)
    h2 = jnp.maximum(h2 + b2_ref[...], 0.0)
    # fc3 (logits; output columns are zero-padded to a lane multiple -> dense store)
    out = jnp.dot(h2.astype(w3_ref.dtype), w3_ref[...],
                  preferred_element_type=jnp.float32)
    o_ref[...] = (out + b3_ref[...]).astype(o_ref.dtype)


def init_params(key, input_size=2048, hidden_first=1000, hidden_second=500,
                num_classes=2):
    """f32 'master' params with nn.Linear-style uniform fan-in init.
    Weights stored as (in_features, out_features); biases as (1, out_features)."""
    ks = jax.random.split(key, 6)

    def lin(kw, kb, fan_in, fan_out):
        bound = 1.0 / jnp.sqrt(jnp.float32(fan_in))
        w = jax.random.uniform(kw, (fan_in, fan_out), jnp.float32, -bound, bound)
        b = jax.random.uniform(kb, (1, fan_out), jnp.float32, -bound, bound)
        return w, b

    w1, b1 = lin(ks[0], ks[1], input_size, hidden_first)
    w2, b2 = lin(ks[2], ks[3], hidden_first, hidden_second)
    w3, b3 = lin(ks[4], ks[5], hidden_second, num_classes)
    return (w1, b1, w2, b2, w3, b3)


def prepare_kernel_params(params):
    """Zero-pad every lane dimension to a multiple of 128 and cast weights to
    bf16 (biases stay f32). Zero padding preserves results exactly: padded
    input features multiply zero weight rows, ReLU(0)=0, and padded logit
    columns are sliced off by the wrapper."""
    w1, b1, w2, b2, w3, b3 = params

    def pad2(a, rows, cols):
        return jnp.pad(a, ((0, rows - a.shape[0]), (0, cols - a.shape[1])))

    in_p = _round_up(w1.shape[0], LANE)
    h1_p = _round_up(w1.shape[1], LANE)
    h2_p = _round_up(w2.shape[1], LANE)
    nc_p = _round_up(w3.shape[1], LANE)

    w1p = pad2(w1, in_p, h1_p).astype(jnp.bfloat16)
    b1p = pad2(b1, 1, h1_p)                       # f32
    w2p = pad2(w2, h1_p, h2_p).astype(jnp.bfloat16)
    b2p = pad2(b2, 1, h2_p)
    w3p = pad2(w3, h2_p, nc_p).astype(jnp.bfloat16)
    b3p = pad2(b3, 1, nc_p)
    return (w1p, b1p, w2p, b2p, w3p, b3p)


def domain_classifier_forward(x, kernel_params, num_classes=2, *, block_b=512):
    """x: (B, ...) -> flattened to (B, input_size) like torch's .view.
    kernel_params: output of prepare_kernel_params (padded, bf16 weights)."""
    w1, b1, w2, b2, w3, b3 = kernel_params
    B = x.shape[0]
    x2d = x.reshape(B, -1)

    in_f = x2d.shape[1]
    in_p = w1.shape[0]
    h1_p = w1.shape[1]
    h2_p = w2.shape[1]
    nc_p = w3.shape[1]
    assert in_p == _round_up(in_f, LANE), "flattened features must match input_size"

    # Keep activations 16-bit (halves HBM traffic; MXU accumulates in f32).
    x2d = x2d.astype(jnp.bfloat16)

    # Batch tile: small batches shrink the tile instead of padding to block_b.
    TB = min(block_b, _round_up(B, SUBLANE))
    Bp = _round_up(B, TB)
    pad_rows = Bp - B
    pad_cols = in_p - in_f
    if pad_rows or pad_cols:
        x2d = jnp.pad(x2d, ((0, pad_rows), (0, pad_cols)))

    def resident(shape):
        # Weights/biases: same block every grid step -> loaded once, stay in VMEM.
        return pl.BlockSpec(shape, lambda i: (0, 0))

    out_padded = pl.pallas_call(
        _mlp_kernel,
        out_shape=jax.ShapeDtypeStruct((Bp, nc_p), jnp.float32),
        grid=(Bp // TB,),
        in_specs=[
            pl.BlockSpec((TB, in_p), lambda i: (i, 0)),   # x: batch-tiled
            resident((in_p, h1_p)),
            resident((1, h1_p)),
            resident((h1_p, h2_p)),
            resident((1, h2_p)),
            resident((h2_p, nc_p)),
            resident((1, nc_p)),
        ],
        out_specs=pl.BlockSpec((TB, nc_p), lambda i: (i, 0)),
        compiler_params=pltpu.CompilerParams(
            dimension_semantics=("parallel",),
            vmem_limit_bytes=48 << 20,   # fits v7x's 64 MiB physical VMEM
        ),
    )(x2d, w1, b1, w2, b2, w3, b3)

    # Drop batch padding and padded logit columns.
    return out_padded[:B, :num_classes]


if __name__ == "__main__":
    key = jax.random.PRNGKey(0)
    k_x, k_p = jax.random.split(key)

    # Small example: batch=2, input flattens to 8*16*16 = 2048 features
    # (matches the module default input_size=2048).
    x = jax.random.normal(k_x, (2, 8, 16, 16), dtype=jnp.float32)
    params = init_params(k_p, input_size=2048, hidden_first=1000,
                         hidden_second=500, num_classes=2)
    kparams = prepare_kernel_params(params)

    out = domain_classifier_forward(x, kparams, num_classes=2)
    out = jax.block_until_ready(out)

    # Pure-JAX reference following the same bf16-weights / f32-accumulation path.
    w1, b1, w2, b2, w3, b3 = params
    x2d = x.reshape(x.shape[0], -1).astype(jnp.bfloat16)
    h1 = jnp.maximum(
        jnp.dot(x2d, w1.astype(jnp.bfloat16), preferred_element_type=jnp.float32) + b1, 0.0)
    h2 = jnp.maximum(
        jnp.dot(h1.astype(jnp.bfloat16), w2.astype(jnp.bfloat16),
                preferred_element_type=jnp.float32) + b2, 0.0)
    ref = jnp.dot(h2.astype(jnp.bfloat16), w3.astype(jnp.bfloat16),
                  preferred_element_type=jnp.float32) + b3

    assert out.shape == (2, 2), out.shape
    assert jnp.allclose(out, ref, atol=2e-2, rtol=2e-2), "mismatch vs reference"

    print("KERNEL_OK")
</pallas_src>

<mosaic_0001>
module attributes {stable_mosaic.version = 11 : i64} {
  func.func @_mlp_kernel(%arg0: i32, %arg1: memref<16x2048xbf16, #tpu.memory_space<vmem>>, %arg2: memref<2048x1024xbf16, #tpu.memory_space<vmem>>, %arg3: memref<1x1024xf32, #tpu.memory_space<vmem>>, %arg4: memref<1024x512xbf16, #tpu.memory_space<vmem>>, %arg5: memref<1x512xf32, #tpu.memory_space<vmem>>, %arg6: memref<512x128xbf16, #tpu.memory_space<vmem>>, %arg7: memref<1x128xf32, #tpu.memory_space<vmem>>, %arg8: memref<16x128xf32, #tpu.memory_space<vmem>>) attributes {dimension_semantics = [#tpu.dimension_semantics<parallel>], iteration_bounds = array<i64: 1>, scalar_prefetch = 0 : i64, scratch_operands = 0 : i64, tpu.core_type = #tpu.core_type<tc>, window_params = [{transform_indices = @transform_0, window_bounds = array<i64: 16, 2048>}, {pipeline_mode = #tpu.pipeline_mode<synchronous>, transform_indices = @transform_1, window_bounds = array<i64: 2048, 1024>}, {pipeline_mode = #tpu.pipeline_mode<synchronous>, transform_indices = @transform_2, window_bounds = array<i64: 1, 1024>}, {pipeline_mode = #tpu.pipeline_mode<synchronous>, transform_indices = @transform_3, window_bounds = array<i64: 1024, 512>}, {pipeline_mode = #tpu.pipeline_mode<synchronous>, transform_indices = @transform_4, window_bounds = array<i64: 1, 512>}, {pipeline_mode = #tpu.pipeline_mode<synchronous>, transform_indices = @transform_5, window_bounds = array<i64: 512, 128>}, {pipeline_mode = #tpu.pipeline_mode<synchronous>, transform_indices = @transform_6, window_bounds = array<i64: 1, 128>}, {transform_indices = @transform_7, window_bounds = array<i64: 16, 128>}]} {
    %c0 = arith.constant 0 : index
    %c0_0 = arith.constant 0 : index
    %0 = vector.load %arg1[%c0, %c0_0] : memref<16x2048xbf16, #tpu.memory_space<vmem>>, vector<16x2048xbf16>
    %c0_1 = arith.constant 0 : index
    %c0_2 = arith.constant 0 : index
    %1 = vector.load %arg2[%c0_1, %c0_2] : memref<2048x1024xbf16, #tpu.memory_space<vmem>>, vector<2048x1024xbf16>
    %cst = arith.constant dense<0.000000e+00> : vector<16x1024xf32>
    %2 = tpu.matmul %0, %1, %cst {dimension_numbers = #tpu.dot_dimension_numbers<[1], [0], [0], [1], [0, 0, 1, 1], [], []>} : vector<16x2048xbf16>, vector<2048x1024xbf16>, vector<16x1024xf32> -> vector<16x1024xf32>
    %c0_3 = arith.constant 0 : index
    %c0_4 = arith.constant 0 : index
    %3 = vector.load %arg3[%c0_3, %c0_4] : memref<1x1024xf32, #tpu.memory_space<vmem>>, vector<1x1024xf32>
    %4 = vector.broadcast %3 : vector<1x1024xf32> to vector<16x1024xf32>
    %5 = arith.addf %2, %4 : vector<16x1024xf32>
    %cst_5 = arith.constant 0.000000e+00 : f32
    %6 = vector.broadcast %cst_5 : f32 to vector<16x1024xf32>
    %7 = arith.maximumf %5, %6 : vector<16x1024xf32>
    %8 = arith.truncf %7 : vector<16x1024xf32> to vector<16x1024xbf16>
    %c0_6 = arith.constant 0 : index
    %c0_7 = arith.constant 0 : index
    %9 = vector.load %arg4[%c0_6, %c0_7] : memref<1024x512xbf16, #tpu.memory_space<vmem>>, vector<1024x512xbf16>
    %cst_8 = arith.constant dense<0.000000e+00> : vector<16x512xf32>
    %10 = tpu.matmul %8, %9, %cst_8 {dimension_numbers = #tpu.dot_dimension_numbers<[1], [0], [0], [1], [0, 0, 1, 1], [], []>} : vector<16x1024xbf16>, vector<1024x512xbf16>, vector<16x512xf32> -> vector<16x512xf32>
    %c0_9 = arith.constant 0 : index
    %c0_10 = arith.constant 0 : index
    %11 = vector.load %arg5[%c0_9, %c0_10] : memref<1x512xf32, #tpu.memory_space<vmem>>, vector<1x512xf32>
    %12 = vector.broadcast %11 : vector<1x512xf32> to vector<16x512xf32>
    %13 = arith.addf %10, %12 : vector<16x512xf32>
    %cst_11 = arith.constant 0.000000e+00 : f32
    %14 = vector.broadcast %cst_11 : f32 to vector<16x512xf32>
    %15 = arith.maximumf %13, %14 : vector<16x512xf32>
    %16 = arith.truncf %15 : vector<16x512xf32> to vector<16x512xbf16>
    %c0_12 = arith.constant 0 : index
    %c0_13 = arith.constant 0 : index
    %17 = vector.load %arg6[%c0_12, %c0_13] : memref<512x128xbf16, #tpu.memory_space<vmem>>, vector<512x128xbf16>
    %cst_14 = arith.constant dense<0.000000e+00> : vector<16x128xf32>
    %18 = tpu.matmul %16, %17, %cst_14 {dimension_numbers = #tpu.dot_dimension_numbers<[1], [0], [0], [1], [0, 0, 1, 1], [], []>} : vector<16x512xbf16>, vector<512x128xbf16>, vector<16x128xf32> -> vector<16x128xf32>
    %c0_15 = arith.constant 0 : index
    %c0_16 = arith.constant 0 : index
    %19 = vector.load %arg7[%c0_15, %c0_16] : memref<1x128xf32, #tpu.memory_space<vmem>>, vector<1x128xf32>
    %20 = vector.broadcast %19 : vector<1x128xf32> to vector<16x128xf32>
    %21 = arith.addf %18, %20 : vector<16x128xf32>
    %c0_17 = arith.constant 0 : index
    %c0_18 = arith.constant 0 : index
    %22 = vector.load %arg8[%c0_17, %c0_18] : memref<16x128xf32, #tpu.memory_space<vmem>>, vector<16x128xf32>
    tpu.vector_store %arg8[%c0_17, %c0_18], %21 {strides = array<i32>} : memref<16x128xf32, #tpu.memory_space<vmem>>, vector<16x128xf32>,
    return
  }
  func.func @transform_0(%arg0: i32) -> (i32, i32) {
    %c0_i32 = arith.constant 0 : i32
    %c0_i32_0 = arith.constant 0 : i32
    return %arg0, %c0_i32 : i32, i32
  }
  func.func @transform_1(%arg0: i32) -> (i32, i32) {
    %c0_i32 = arith.constant 0 : i32
    %c0_i32_0 = arith.constant 0 : i32
    %c0_i32_1 = arith.constant 0 : i32
    return %c0_i32, %c0_i32_0 : i32, i32
  }
  func.func @transform_2(%arg0: i32) -> (i32, i32) {
    %c0_i32 = arith.constant 0 : i32
    %c0_i32_0 = arith.constant 0 : i32
    %c0_i32_1 = arith.constant 0 : i32
    return %c0_i32, %c0_i32_0 : i32, i32
  }
  func.func @transform_3(%arg0: i32) -> (i32, i32) {
    %c0_i32 = arith.constant 0 : i32
    %c0_i32_0 = arith.constant 0 : i32
    %c0_i32_1 = arith.constant 0 : i32
    return %c0_i32, %c0_i32_0 : i32, i32
  }
  func.func @transform_4(%arg0: i32) -> (i32, i32) {
    %c0_i32 = arith.constant 0 : i32
    %c0_i32_0 = arith.constant 0 : i32
    %c0_i32_1 = arith.constant 0 : i32
    return %c0_i32, %c0_i32_0 : i32, i32
  }
  func.func @transform_5(%arg0: i32) -> (i32, i32) {
    %c0_i32 = arith.constant 0 : i32
    %c0_i32_0 = arith.constant 0 : i32
    %c0_i32_1 = arith.constant 0 : i32
    return %c0_i32, %c0_i32_0 : i32, i32
  }
  func.func @transform_6(%arg0: i32) -> (i32, i32) {
    %c0_i32 = arith.constant 0 : i32
    %c0_i32_0 = arith.constant 0 : i32
    %c0_i32_1 = arith.constant 0 : i32
    return %c0_i32, %c0_i32_0 : i32, i32
  }
  func.func @transform_7(%arg0: i32) -> (i32, i32) {
    %c0_i32 = arith.constant 0 : i32
    %c0_i32_0 = arith.constant 0 : i32
    return %arg0, %c0_i32 : i32, i32
  }
}

</mosaic_0001>

<bundles_post_ra>
// kernel: tpu_custom_call.1
= control target key start
LH: loop header
LB: loop body
LE: loop exit
PB: predicated region body
PF: predicated region fallthrough
CT: control target
= control target key end

     0   :  { %12 = vsyncpa [#allocation3], 0  ;;  %s12592_s0 = inlined_call_operand.hbm [shape: bf16[16,2048], index: 0, kind: input, shape index: {}]   ;;  %s12593_s1 = inlined_call_operand.hbm [shape: bf16[2048,1024], index: 1, kind: input, shape index: {}]   ;;  %s12594_s2 = inlined_call_operand.hbm [shape: f32[1,1024], index: 2, kind: input, shape index: {}]   ;;  %s12595_s3 = inlined_call_operand.hbm [shape: bf16[1024,512], index: 3, kind: input, shape index: {}]   ;;  %s12596_s4 = inlined_call_operand.hbm [shape: f32[1,512], index: 4, kind: input, shape index: {}]   ;;  %s12597_s5 = inlined_call_operand.hbm [shape: bf16[512,128], index: 5, kind: input, shape index: {}]   ;;  %s12598_s6 = inlined_call_operand.hbm [shape: f32[1,128], index: 6, kind: input, shape index: {}]   ;;  %s12599_s7 = inlined_call_operand.hbm [shape: f32[16,128], index: 7, kind: output, shape index: {}]  }
   0x1   :  { %13 = vsyncpa [#allocation6], 0 }
   0x2   :  { %14 = vsyncpa [#allocation9], 0 }
   0x3   :  { %15 = vsyncpa [#allocation12], 0 }
   0x4   :  { %16 = vsyncpa [#allocation4], 0  ;;  %s12233_s24 = smov [#allocation5]   ;;  %s12047_s28 = scalar_lea.hbm %s12593_s1, 131072 }
   0x5   :  { %s34_s25 = sshll.u32 %s12233_s24, 4  ;;  %p12048_p0 = scmp.ne.s32.totalorder %s12593_s1, %s12047_s28  ;;  %s35_s25 = int_to_ptr.vmem [resolvable:$true] %s34_s25 }
   0x6   :  { %p12051_p1 = scmp.lt.u32.totalorder %s12047_s28, %s12593_s1 }
   0x8   :  { %p12053_p2 = pnand %p12051_p1, %p12048_p0 }
   0xa   :  { %12056 = shalt.err (!%p12053_p2)
}
   0xb   :  { %s12057_s10 = scalar_lea.vmem %s35_s25, 131072  ;;  %p12062_p4 = scmp.lt.s32.totalorder %s35_s25, %s35_s25 }
   0xc   :  { %p12058_p3 = scmp.ne.s32.totalorder %s35_s25, %s12057_s10  ;;  %p12063_p5 = scmp.lt.s32.totalorder %s12057_s10, %s12057_s10 }
   0xe   :  { %p12064_p6 = por %p12063_p5, %p12062_p4 }
  0x10   :  { %p12065_p7 = pnand %p12064_p6, %p12058_p3 }
  0x12   :  { %12068 = shalt.err (!%p12065_p7)
}
  0x13   :  { %s12234_s11 = smov 512   ;;  %s12235_s12 = smov 32  }
  0x14   :  { %40 = dma.hbm_to_vmem [thread:$0]  %s12593_s1, 131072, %s35_s25, [#allocation6], %s12234_s11, %s12234_s11, %s12235_s12  }
  0x15   :  { %s12236_s15 = smov [#allocation8]   ;;  %s12069_s19 = scalar_lea.hbm %s12595_s3, 32768 }
  0x16   :  { %s56_s16 = sshll.u32 %s12236_s15, 4  ;;  %p12070_p8 = scmp.ne.s32.totalorder %s12595_s3, %s12069_s19  ;;  %s57_s16 = int_to_ptr.vmem [resolvable:$true] %s56_s16 }
  0x17   :  { %p12073_p9 = scmp.lt.u32.totalorder %s12069_s19, %s12595_s3 }
  0x19   :  { %p12075_p10 = pnand %p12073_p9, %p12070_p8 }
  0x1b   :  { %12078 = shalt.err (!%p12075_p10)
}
  0x1c   :  { %s12079_s24 = scalar_lea.vmem %s57_s16, 32768  ;;  %p12084_p12 = scmp.lt.s32.totalorder %s57_s16, %s57_s16 }
  0x1d   :  { %p12080_p11 = scmp.ne.s32.totalorder %s57_s16, %s12079_s24  ;;  %p12085_p13 = scmp.lt.s32.totalorder %s12079_s24, %s12079_s24 }
  0x1f   :  { %p12086_p0 = por %p12085_p13, %p12084_p12 }
  0x21   :  { %p12087_p1 = pnand %p12086_p0, %p12080_p11 }
  0x23   :  { %12090 = shalt.err (!%p12087_p1)
}
  0x24   :  { %s12237_s1 = smov 256   ;;  %s12238_s25 = smov 16  }
  0x25   :  { %62 = dma.hbm_to_vmem [thread:$0]  %s12595_s3, 32768, %s57_s16, [#allocation9], %s12237_s1, %s12237_s1, %s12238_s25  }
  0x26   :  { %s12239_s28 = smov [#allocation11]   ;;  %s12091_s9 = scalar_lea.hbm %s12597_s5, 4096 }
  0x27   :  { %s78_s29 = sshll.u32 %s12239_s28, 4  ;;  %p12092_p2 = scmp.ne.s32.totalorder %s12597_s5, %s12091_s9  ;;  %s79_s29 = int_to_ptr.vmem [resolvable:$true] %s78_s29 }
  0x28   :  { %p12095_p3 = scmp.lt.u32.totalorder %s12091_s9, %s12597_s5 }
  0x2a   :  { %p12097_p4 = pnand %p12095_p3, %p12092_p2 }
  0x2c   :  { %12100 = shalt.err (!%p12097_p4)
}
  0x2d   :  { %s12101_s14 = scalar_lea.vmem %s79_s29, 4096  ;;  %p12106_p6 = scmp.lt.s32.totalorder %s79_s29, %s79_s29 }
  0x2e   :  { %p12102_p5 = scmp.ne.s32.totalorder %s79_s29, %s12101_s14  ;;  %p12107_p7 = scmp.lt.s32.totalorder %s12101_s14, %s12101_s14 }
  0x30   :  { %p12108_p8 = por %p12107_p7, %p12106_p6 }
  0x32   :  { %p12109_p9 = pnand %p12108_p8, %p12102_p5 }
  0x34   :  { %12112 = shalt.err (!%p12109_p9)
}
  0x35   :  { %s12240_s3 = smov 64   ;;  %s12241_s15 = smov 4  }
  0x36   :  { %84 = dma.hbm_to_vmem [thread:$0]  %s12597_s5, 4096, %s79_s29, [#allocation12], %s12240_s3, %s12240_s3, %s12241_s15  }
  0x37   :  { %s12242_s18 = smov [#allocation2]   ;;  %s12113_s22 = scalar_lea.hbm %s12592_s0, 2048 }
  0x38   :  { %s22_s19 = sshll.u32 %s12242_s18, 4  ;;  %p12114_p10 = scmp.ne.s32.totalorder %s12592_s0, %s12113_s22  ;;  %s23_s19 = int_to_ptr.vmem [resolvable:$true] %s22_s19 }
  0x39   :  { %p12117_p11 = scmp.lt.u32.totalorder %s12113_s22, %s12592_s0 }
  0x3b   :  { %p12119_p12 = pnand %p12117_p11, %p12114_p10 }
  0x3d   :  { %12122 = shalt.err (!%p12119_p12)
}
  0x3e   :  { %s12123_s26 = scalar_lea.vmem %s23_s19, 2048  ;;  %p12128_p0 = scmp.lt.s32.totalorder %s23_s19, %s23_s19 }
  0x3f   :  { %p12124_p13 = scmp.ne.s32.totalorder %s23_s19, %s12123_s26  ;;  %p12129_p1 = scmp.lt.s32.totalorder %s12123_s26, %s12123_s26 }
  0x41   :  { %p12130_p2 = por %p12129_p1, %p12128_p0 }
  0x43   :  { %p12131_p3 = pnand %p12130_p2, %p12124_p13 }
  0x45   :  { %12134 = shalt.err (!%p12131_p3)
}
  0x46   :  { %s12243_s5 = smov 1024   ;;  %s12244_s29 = smov [#allocation7]  }
  0x47   :  { %28 = dma.hbm_to_vmem [thread:$0]  %s12592_s0, 2048, %s23_s19, [#allocation3], %s12243_s5, %s12243_s5, %s12240_s3  }
  0x48   :  { %s47_s30 = sshll.u32 %s12244_s29, 4  ;;  %s12245_s8 = smov [#allocation10]   ;;  %s48_s30 = int_to_ptr.vmem [resolvable:$true] %s47_s30 }
  0x49   :  { %s69_s9 = sshll.u32 %s12245_s8, 4  ;;  %s12135_s12 = scalar_lea.hbm %s12594_s2, 128  ;;  %s70_s9 = int_to_ptr.vmem [resolvable:$true] %s69_s9 }
  0x4a   :  { %p12136_p4 = scmp.ne.s32.totalorder %s12594_s2, %s12135_s12  ;;  %p12139_p5 = scmp.lt.u32.totalorder %s12135_s12, %s12594_s2 }
  0x4c   :  { %p12141_p6 = pnand %p12139_p5, %p12136_p4 }
  0x4e   :  { %12144 = shalt.err (!%p12141_p6)
}
  0x4f   :  { %s12145_s0 = scalar_lea.vmem %s48_s30, 128  ;;  %p12150_p8 = scmp.lt.s32.totalorder %s48_s30, %s48_s30 }
  0x50   :  { %p12146_p7 = scmp.ne.s32.totalorder %s48_s30, %s12145_s0  ;;  %p12151_p9 = scmp.lt.s32.totalorder %s12145_s0, %s12145_s0 }
  0x52   :  { %p12152_p10 = por %p12151_p9, %p12150_p8 }
  0x54   :  { %p12153_p11 = pnand %p12152_p10, %p12146_p7 }
  0x56   :  { %12156 = shalt.err (!%p12153_p11)
}
  0x57   :  { %50 = dma.hbm_to_vmem [thread:$0]  %s12594_s2, 128, %s48_s30, [#allocation6]  }
  0x58   :  { %s12157_s20 = scalar_lea.hbm %s12596_s4, 64 }
  0x59   :  { %p12158_p12 = scmp.ne.s32.totalorder %s12596_s4, %s12157_s20  ;;  %p12161_p13 = scmp.lt.u32.totalorder %s12157_s20, %s12596_s4 }
  0x5b   :  { %p12163_p0 = pnand %p12161_p13, %p12158_p12 }
  0x5d   :  { %12166 = shalt.err (!%p12163_p0)
}
  0x5e   :  { %s12167_s1 = scalar_lea.vmem %s70_s9, 64  ;;  %p12172_p2 = scmp.lt.s32.totalorder %s70_s9, %s70_s9 }
  0x5f   :  { %p12168_p1 = scmp.ne.s32.totalorder %s70_s9, %s12167_s1  ;;  %p12173_p3 = scmp.lt.s32.totalorder %s12167_s1, %s12167_s1 }
  0x61   :  { %p12174_p4 = por %p12173_p3, %p12172_p2 }
  0x63   :  { %p12175_p5 = pnand %p12174_p4, %p12168_p1 }
  0x65   :  { %12178 = shalt.err (!%p12175_p5)
}
  0x66   :  { %72 = dma.hbm_to_vmem [thread:$0]  %s12596_s4, 64, %s70_s9, [#allocation9]  }
  0x67   :  { %s12246_s26 = smov [#allocation13]   ;;  %s12179_s29 = scalar_lea.hbm %s12598_s6, 16 }
  0x68   :  { %s91_s5 = sshll.u32 %s12246_s26, 4  ;;  %p12180_p6 = scmp.ne.s32.totalorder %s12598_s6, %s12179_s29  ;;  %s92_s5 = int_to_ptr.vmem [resolvable:$true] %s91_s5 }
  0x69   :  { %p12183_p7 = scmp.lt.u32.totalorder %s12179_s29, %s12598_s6 }
  0x6b   :  { %p12185_p8 = pnand %p12183_p7, %p12180_p6 }
  0x6d   :  { %12188 = shalt.err (!%p12185_p8)
}
  0x6e   :  { %s12189_s12 = scalar_lea.vmem %s92_s5, 16  ;;  %s12193_s4 = scalar_lea.vmem %s92_s5, 32 }
  0x6f   :  { %p12190_p9 = scmp.ne.s32.totalorder %s92_s5, %s12189_s12  ;;  %p12194_p10 = scmp.lt.s32.totalorder %s92_s5, %s92_s5 }
  0x70   :  { %p12195_p11 = scmp.lt.s32.totalorder %s12193_s4, %s12189_s12 }
  0x72   :  { %p12196_p12 = por %p12195_p11, %p12194_p10 }
  0x74   :  { %p12197_p13 = pnand %p12196_p12, %p12190_p9 }
  0x76   :  { %12200 = shalt.err (!%p12197_p13)
}
  0x77   :  { %94 = dma.hbm_to_vmem [thread:$0]  %s12598_s6, 16, %s92_s5, [#allocation12]  }
  0x78   :  { %12223 = dma.done.wait [#allocation3], 2048  }
  0x79   :  { %12224 = vsyncadd [#allocation3], 4294965248 }
  0x7a   :  { %12225 = dma.done.wait [#allocation6], 131200  }
  0x7b   :  { %12226 = vsyncadd [#allocation6], 4294836096 }
  0x7c   :  { %12227 = dma.done.wait [#allocation9], 32832  }
  0x7d   :  { %12228 = vsyncadd [#allocation9], 4294934464 }
  0x7e   :  { %12229 = dma.done.wait [#allocation12], 4112  }
  0x7f   :  { %12230 = vsyncadd [#allocation12], 4294963184  ;;  %v133_v0 = vld [vmem:[#allocation5] sm:$0xff]  ;;  %v134_v2 = vld [vmem:[#allocation5 + $0x8] sm:$0xff]  ;;  %s12247_s6 = smov [#allocation14]  }
  0x80   :  { %v137_v1 = vld [vmem:[#allocation5 + $0x20] sm:$0xff]  ;;  %v138_v4 = vld [vmem:[#allocation5 + $0x28] sm:$0xff]  ;;  %s10065_s14 = sshll.u32 %s12247_s6, 4  ;;  %s10066_s14 = int_to_ptr.vmem [resolvable:$true] %s10065_s14 }
  0x81   :  { %v10097_v3 = vcombine.high %v133_v0, %v137_v1  ;;  %v10096_v5 = vcombine.low %v133_v0, %v137_v1  ;;  %v141_v6 = vld [vmem:[#allocation5 + $0x40] sm:$0xff]  ;;  %v10099_v8 = vcombine.high %v134_v2, %v138_v4  ;;  %v10098_v9 = vcombine.low %v134_v2, %v138_v4  ;;  %v142_v11 = vld [vmem:[#allocation5 + $0x48] sm:$0xff]  ;;  %s12201_s15 = scalar_lea.vmem %s10066_s14, 256  ;;  %p12206_p1 = scmp.lt.s32.totalorder %s10066_s14, %s10066_s14 }
  0x82   :  { %v145_v7 = vld [vmem:[#allocation5 + $0x60] sm:$0xff]  ;;  %v146_v12 = vld [vmem:[#allocation5 + $0x68] sm:$0xff]  ;;  %p12202_p0 = scmp.ne.s32.totalorder %s10066_s14, %s12201_s15  ;;  %p12207_p2 = scmp.lt.s32.totalorder %s12201_s15, %s12201_s15 }
  0x83   :  { %v10105_v10 = vcombine.high %v141_v6, %v145_v7  ;;  %v149_v13 = vld [vmem:[#allocation5 + $0x80] sm:$0xff]  ;;  %6399 = vmatprep.subr.bf16.mxu0 %v10097_v3  ;;  %v10107_v14 = vcombine.high %v142_v11, %v146_v12  ;;  %v150_v16 = vld [vmem:[#allocation5 + $0x88] sm:$0xff]  ;;  %6743 = vmatprep.subr.bf16.mxu1 %v10099_v8  ;;  %v10104_v18 = vcombine.low %v141_v6, %v145_v7 }
  0x84   :  { %v153_v15 = vld [vmem:[#allocation5 + $0xa0] sm:$0xff]  ;;  %v154_v17 = vld [vmem:[#allocation5 + $0xa8] sm:$0xff]  ;;  %6400 = vmatpush1.bf16.msra.mxu0 %v10096_v5  ;;  %6744 = vmatpush1.bf16.msra.mxu1 %v10098_v9  ;;  %v10106_v19 = vcombine.low %v142_v11, %v146_v12  ;;  %p12208_p3 = por %p12207_p2, %p12206_p1 }
  0x85   :  { %6401 = vmatprep.subr.bf16.mxu0 %v10105_v10  ;;  %v10113_v20 = vcombine.high %v149_v13, %v153_v15  ;;  %6745 = vmatprep.subr.bf16.mxu1 %v10107_v14  ;;  %v10115_v21 = vcombine.high %v150_v16, %v154_v17  ;;  %v157_v22 = vld [vmem:[#allocation5 + $0xc0] sm:$0xff]  ;;  %v158_v24 = vld [vmem:[#allocation5 + $0xc8] sm:$0xff]  ;;  %v10112_v26 = vcombine.low %v149_v13, %v153_v15 }
  0x86   :  { %v161_v23 = vld [vmem:[#allocation5 + $0xe0] sm:$0xff]  ;;  %v162_v25 = vld [vmem:[#allocation5 + $0xe8] sm:$0xff]  ;;  %v10114_v27 = vcombine.low %v150_v16, %v154_v17  ;;  %p12209_p4 = pnand %p12208_p3, %p12202_p0 }
  0x87   :  { %v10121_v28 = vcombine.high %v157_v22, %v161_v23  ;;  %v10123_v29 = vcombine.high %v158_v24, %v162_v25  ;;  %v165_v30 = vld [vmem:[#allocation5 + $0x100] sm:$0xff]  ;;  %v166_v32 = vld [vmem:[#allocation5 + $0x108] sm:$0xff]  ;;  %v10120_v34 = vcombine.low %v157_v22, %v161_v23  ;;  %v10122_v35 = vcombine.low %v158_v24, %v162_v25 }
  0x88   :  { %6402 = vmatpush1.bf16.msra.mxu0 %v10104_v18  ;;  %6746 = vmatpush1.bf16.msra.mxu1 %v10106_v19  ;;  %v169_v31 = vld [vmem:[#allocation5 + $0x120] sm:$0xff]  ;;  %v170_v33 = vld [vmem:[#allocation5 + $0x128] sm:$0xff] }
  0x89   :  { %6403 = vmatprep.subr.bf16.mxu0 %v10113_v20  ;;  %6747 = vmatprep.subr.bf16.mxu1 %v10115_v21  ;;  %v10129_v36 = vcombine.high %v165_v30, %v169_v31  ;;  %v10131_v37 = vcombine.high %v166_v32, %v170_v33  ;;  %v173_v38 = vld [vmem:[#allocation5 + $0x140] sm:$0xff]  ;;  %v174_v40 = vld [vmem:[#allocation5 + $0x148] sm:$0xff]  ;;  %v10128_v42 = vcombine.low %v165_v30, %v169_v31 }
  0x8a   :  { %v177_v39 = vld [vmem:[#allocation5 + $0x160] sm:$0xff]  ;;  %v178_v41 = vld [vmem:[#allocation5 + $0x168] sm:$0xff]  ;;  %v10130_v43 = vcombine.low %v166_v32, %v170_v33 }
  0x8b   :  { %v10137_v44 = vcombine.high %v173_v38, %v177_v39  ;;  %v10139_v45 = vcombine.high %v174_v40, %v178_v41  ;;  %v181_v46 = vld [vmem:[#allocation5 + $0x180] sm:$0xff]  ;;  %v182_v48 = vld [vmem:[#allocation5 + $0x188] sm:$0xff]  ;;  %v10136_v50 = vcombine.low %v173_v38, %v177_v39  ;;  %v10138_v51 = vcombine.low %v174_v40, %v178_v41 }
  0x8c   :  { %6404 = vmatpush1.bf16.msra.mxu0 %v10112_v26  ;;  %6748 = vmatpush1.bf16.msra.mxu1 %v10114_v27  ;;  %v185_v47 = vld [vmem:[#allocation5 + $0x1a0] sm:$0xff]  ;;  %v186_v49 = vld [vmem:[#allocation5 + $0x1a8] sm:$0xff] }
  0x8d   :  { %6405 = vmatprep.subr.bf16.mxu0 %v10121_v28  ;;  %6749 = vmatprep.subr.bf16.mxu1 %v10123_v29  ;;  %v10145_v52 = vcombine.high %v181_v46, %v185_v47  ;;  %v12374_v53 = vld [vmem:[#allocation2] sm:$0xff]  ;;  %v10147_v55 = vcombine.high %v182_v48, %v186_v49  ;;  %v190_v59 = vld [vmem:[#allocation5 + $0x1c8] sm:$0xff]  ;;  %v10144_v61 = vcombine.low %v181_v46, %v185_v47 }
  0x8e   :  { %v12376_v54 = vld [vmem:[#allocation2 + $0x40] sm:$0xff]  ;;  %v194_v60 = vld [vmem:[#allocation5 + $0x1e8] sm:$0xff]  ;;  %v10146_v62 = vcombine.low %v182_v48, %v186_v49 }
  0x8f   :  { %v189_v56 = vld [vmem:[#allocation5 + $0x1c0] sm:$0xff]  ;;  %v12380_v58 = vcombine.high %v12374_v53, %v12376_v54  ;;  %v10155_v0 = vcombine.high %v190_v59, %v194_v60  ;;  %v198_v3 = vld [vmem:[#allocation5 + $0x208] sm:$0xff]  ;;  %v10154_v6 = vcombine.low %v190_v59, %v194_v60 }
  0x90   :  { %6406 = vmatpush1.bf16.msra.mxu0 %v10120_v34  ;;  %6750 = vmatpush1.bf16.msra.mxu1 %v10122_v35  ;;  %v193_v57 = vld [vmem:[#allocation5 + $0x1e0] sm:$0xff]  ;;  %v202_v4 = vld [vmem:[#allocation5 + $0x228] sm:$0xff] }
  0x91   :  { %6407 = vmatprep.subr.bf16.mxu0 %v10129_v36  ;;  %6751 = vmatprep.subr.bf16.mxu1 %v10131_v37  ;;  %v10153_v63 = vcombine.high %v189_v56, %v193_v57  ;;  %v197_v1 = vld [vmem:[#allocation5 + $0x200] sm:$0xff]  ;;  %v10152_v5 = vcombine.low %v189_v56, %v193_v57  ;;  %v10163_v8 = vcombine.high %v198_v3, %v202_v4  ;;  %v206_v11 = vld [vmem:[#allocation5 + $0x248] sm:$0xff] }
  0x92   :  { %6431 = vmatprep.mubr.bf16.mxu0 %v12380_v58  ;;  %v201_v2 = vld [vmem:[#allocation5 + $0x220] sm:$0xff]  ;;  %6775 = vmatprep.mubr.bf16.mxu1 %v12380_v58  ;;  %v210_v12 = vld [vmem:[#allocation5 + $0x268] sm:$0xff]  ;;  %v10162_v14 = vcombine.low %v198_v3, %v202_v4 }
  0x93   :  { %v10161_v7 = vcombine.high %v197_v1, %v201_v2  ;;  %v205_v9 = vld [vmem:[#allocation5 + $0x240] sm:$0xff]  ;;  %v10160_v13 = vcombine.low %v197_v1, %v201_v2  ;;  %v10171_v16 = vcombine.high %v206_v11, %v210_v12  ;;  %v214_v19 = vld [vmem:[#allocation5 + $0x288] sm:$0xff]  ;;  %v10170_v22 = vcombine.low %v206_v11, %v210_v12 }
  0x94   :  { %6408 = vmatpush1.bf16.msra.mxu0 %v10128_v42  ;;  %6752 = vmatpush1.bf16.msra.mxu1 %v10130_v43  ;;  %v209_v10 = vld [vmem:[#allocation5 + $0x260] sm:$0xff]  ;;  %v218_v20 = vld [vmem:[#allocation5 + $0x2a8] sm:$0xff] }
  0x95   :  { %6409 = vmatprep.subr.bf16.mxu0 %v10137_v44  ;;  %6753 = vmatprep.subr.bf16.mxu1 %v10139_v45  ;;  %v10169_v15 = vcombine.high %v205_v9, %v209_v10  ;;  %v213_v17 = vld [vmem:[#allocation5 + $0x280] sm:$0xff]  ;;  %v10168_v21 = vcombine.low %v205_v9, %v209_v10  ;;  %v10179_v24 = vcombine.high %v214_v19, %v218_v20  ;;  %v222_v27 = vld [vmem:[#allocation5 + $0x2c8] sm:$0xff] }
  0x96   :  { %v217_v18 = vld [vmem:[#allocation5 + $0x2a0] sm:$0xff]  ;;  %v226_v28 = vld [vmem:[#allocation5 + $0x2e8] sm:$0xff]  ;;  %v10178_v30 = vcombine.low %v214_v19, %v218_v20 }
  0x97   :  { %v10177_v23 = vcombine.high %v213_v17, %v217_v18  ;;  %v221_v25 = vld [vmem:[#allocation5 + $0x2c0] sm:$0xff]  ;;  %v10176_v29 = vcombine.low %v213_v17, %v217_v18  ;;  %v10187_v32 = vcombine.high %v222_v27, %v226_v28  ;;  %v230_v35 = vld [vmem:[#allocation5 + $0x308] sm:$0xff]  ;;  %v10186_v38 = vcombine.low %v222_v27, %v226_v28 }
  0x98   :  { %6410 = vmatpush1.bf16.msra.mxu0 %v10136_v50  ;;  %6754 = vmatpush1.bf16.msra.mxu1 %v10138_v51  ;;  %v225_v26 = vld [vmem:[#allocation5 + $0x2e0] sm:$0xff]  ;;  %v234_v36 = vld [vmem:[#allocation5 + $0x328] sm:$0xff] }
  0x99   :  { %6411 = vmatprep.subr.bf16.mxu0 %v10145_v52  ;;  %6755 = vmatprep.subr.bf16.mxu1 %v10147_v55  ;;  %v10185_v31 = vcombine.high %v221_v25, %v225_v26  ;;  %v229_v33 = vld [vmem:[#allocation5 + $0x300] sm:$0xff]  ;;  %v10184_v37 = vcombine.low %v221_v25, %v225_v26  ;;  %v10195_v40 = vcombine.high %v230_v35, %v234_v36  ;;  %v238_v43 = vld [vmem:[#allocation5 + $0x348] sm:$0xff] }
  0x9a   :  { %v233_v34 = vld [vmem:[#allocation5 + $0x320] sm:$0xff]  ;;  %v242_v44 = vld [vmem:[#allocation5 + $0x368] sm:$0xff]  ;;  %v10194_v46 = vcombine.low %v230_v35, %v234_v36 }
  0x9b   :  { %v10193_v39 = vcombine.high %v229_v33, %v233_v34  ;;  %v237_v41 = vld [vmem:[#allocation5 + $0x340] sm:$0xff]  ;;  %v10192_v45 = vcombine.low %v229_v33, %v233_v34  ;;  %v10203_v48 = vcombine.high %v238_v43, %v242_v44  ;;  %v246_v51 = vld [vmem:[#allocation5 + $0x388] sm:$0xff]  ;;  %v10202_v56 = vcombine.low %v238_v43, %v242_v44 }
  0x9c   :  { %6412 = vmatpush1.bf16.msra.mxu0 %v10144_v61  ;;  %6756 = vmatpush1.bf16.msra.mxu1 %v10146_v62  ;;  %v241_v42 = vld [vmem:[#allocation5 + $0x360] sm:$0xff]  ;;  %v250_v52 = vld [vmem:[#allocation5 + $0x3a8] sm:$0xff] }
  0x9d   :  { %6413 = vmatprep.subr.bf16.mxu0 %v10153_v63  ;;  %6757 = vmatprep.subr.bf16.mxu1 %v10155_v0  ;;  %v10201_v47 = vcombine.high %v237_v41, %v241_v42  ;;  %v245_v49 = vld [vmem:[#allocation5 + $0x380] sm:$0xff]  ;;  %v10200_v55 = vcombine.low %v237_v41, %v241_v42  ;;  %v10211_v59 = vcombine.high %v246_v51, %v250_v52  ;;  %v254_v62 = vld [vmem:[#allocation5 + $0x3c8] sm:$0xff] }
  0x9e   :  { %v249_v50 = vld [vmem:[#allocation5 + $0x3a0] sm:$0xff]  ;;  %v258_v63 = vld [vmem:[#allocation5 + $0x3e8] sm:$0xff]  ;;  %v10210_v1 = vcombine.low %v246_v51, %v250_v52 }
  0x9f   :  { %v10209_v57 = vcombine.high %v245_v49, %v249_v50  ;;  %v253_v60 = vld [vmem:[#allocation5 + $0x3c0] sm:$0xff]  ;;  %v10208_v0 = vcombine.low %v245_v49, %v249_v50  ;;  %v10219_v3 = vcombine.high %v254_v62, %v258_v63  ;;  %v10218_v9 = vcombine.low %v254_v62, %v258_v63  ;;  %v12388_v17 = vld [vmem:[#allocation2 + $0x8] sm:$0xff] }
  0xa0   :  { %6414 = vmatpush1.bf16.msra.mxu0 %v10152_v5  ;;  %6758 = vmatpush1.bf16.msra.mxu1 %v10154_v6  ;;  %v257_v61 = vld [vmem:[#allocation5 + $0x3e0] sm:$0xff]  ;;  %v262_v6 = vld [vmem:[#allocation5 + $0x408] sm:$0xff] }
  0xa1   :  { %6415 = vmatprep.subr.bf16.mxu0 %v10161_v7  ;;  %6759 = vmatprep.subr.bf16.mxu1 %v10163_v8  ;;  %v10217_v2 = vcombine.high %v253_v60, %v257_v61  ;;  %v261_v4 = vld [vmem:[#allocation5 + $0x400] sm:$0xff]  ;;  %v266_v7 = vld [vmem:[#allocation5 + $0x428] sm:$0xff]  ;;  %v10216_v8 = vcombine.low %v253_v60, %v257_v61 }
  0xa2   :  { %v265_v5 = vld [vmem:[#allocation5 + $0x420] sm:$0xff]  ;;  %v10227_v11 = vcombine.high %v262_v6, %v266_v7  ;;  %v12390_v18 = vld [vmem:[#allocation2 + $0x48] sm:$0xff]  ;;  %v10226_v20 = vcombine.low %v262_v6, %v266_v7 }
  0xa3   :  { %v10225_v10 = vcombine.high %v261_v4, %v265_v5  ;;  %v269_v12 = vld [vmem:[#allocation5 + $0x440] sm:$0xff]  ;;  %v10224_v19 = vcombine.low %v261_v4, %v265_v5  ;;  %v278_v25 = vld [vmem:[#allocation5 + $0x488] sm:$0xff] }
  0xa4   :  { %6416 = vmatpush1.bf16.msra.mxu0 %v10160_v13  ;;  %6760 = vmatpush1.bf16.msra.mxu1 %v10162_v14  ;;  %v273_v13 = vld [vmem:[#allocation5 + $0x460] sm:$0xff]  ;;  %v270_v14 = vld [vmem:[#allocation5 + $0x448] sm:$0xff] }
  0xa5   :  { %6417 = vmatprep.subr.bf16.mxu0 %v10169_v15  ;;  %6761 = vmatprep.subr.bf16.mxu1 %v10171_v16  ;;  %v12386_v15 = vcombine.low %v12374_v53, %v12376_v54  ;;  %v274_v16 = vld [vmem:[#allocation5 + $0x468] sm:$0xff]  ;;  %v12394_v53 = vcombine.high %v12388_v17, %v12390_v18  ;;  %v10232_v26 = vcombine.low %v269_v12, %v273_v13 }
  0xa6   :  { %v282_v54 = vld [vmem:[#allocation5 + $0x4a8] sm:$0xff]  ;;  %v10234_v27 = vcombine.low %v270_v14, %v274_v16 }
  0xa7   :  { %v290_v33 = vld [vmem:[#allocation5 + $0x4e8] sm:$0xff]  ;;  %v10242_v35 = vcombine.low %v278_v25, %v282_v54 }
  0xa8   :  { %6418 = vmatpush1.bf16.msra.mxu0 %v10168_v21  ;;  %6762 = vmatpush1.bf16.msra.mxu1 %v10170_v22  ;;  %v10233_v21 = vcombine.high %v269_v12, %v273_v13  ;;  %v10235_v22 = vcombine.high %v270_v14, %v274_v16  ;;  %v298_v41 = vld [vmem:[#allocation5 + $0x528] sm:$0xff] }
  0xa9   :  { %6419 = vmatprep.subr.bf16.mxu0 %v10177_v23  ;;  %6763 = vmatprep.subr.bf16.mxu1 %v10179_v24  ;;  %v277_v23 = vld [vmem:[#allocation5 + $0x480] sm:$0xff]  ;;  %v306_v49 = vld [vmem:[#allocation5 + $0x568] sm:$0xff] }
  0xaa   :  { %v281_v24 = vld [vmem:[#allocation5 + $0x4a0] sm:$0xff]  ;;  %v314_v60 = vld [vmem:[#allocation5 + $0x5a8] sm:$0xff] }
  0xab   :  { %v10241_v28 = vcombine.high %v277_v23, %v281_v24  ;;  %v10240_v34 = vcombine.low %v277_v23, %v281_v24  ;;  %v322_v4 = vld [vmem:[#allocation5 + $0x5e8] sm:$0xff] }
  0xac   :  { %6420 = vmatpush1.bf16.msra.mxu0 %v10176_v29  ;;  %6764 = vmatpush1.bf16.msra.mxu1 %v10178_v30  ;;  %v285_v29 = vld [vmem:[#allocation5 + $0x4c0] sm:$0xff]  ;;  %v330_v12 = vld [vmem:[#allocation5 + $0x628] sm:$0xff] }
  0xad   :  { %6421 = vmatprep.subr.bf16.mxu0 %v10185_v31  ;;  %6765 = vmatprep.subr.bf16.mxu1 %v10187_v32  ;;  %v289_v30 = vld [vmem:[#allocation5 + $0x4e0] sm:$0xff]  ;;  %v286_v31 = vld [vmem:[#allocation5 + $0x4c8] sm:$0xff]  ;;  %v10243_v32 = vcombine.high %v278_v25, %v282_v54 }
  0xae   :  { %v10249_v36 = vcombine.high %v285_v29, %v289_v30  ;;  %v10248_v42 = vcombine.low %v285_v29, %v289_v30  ;;  %v10250_v43 = vcombine.low %v286_v31, %v290_v33  ;;  %v338_v23 = vld [vmem:[#allocation5 + $0x668] sm:$0xff] }
  0xaf   :  { %v346_v30 = vld [vmem:[#allocation5 + $0x6a8] sm:$0xff] }
  0xb0   :  { %6422 = vmatpush1.bf16.msra.mxu0 %v10184_v37  ;;  %6766 = vmatpush1.bf16.msra.mxu1 %v10186_v38  ;;  %v293_v37 = vld [vmem:[#allocation5 + $0x500] sm:$0xff] }
  0xb1   :  { %6423 = vmatprep.subr.bf16.mxu0 %v10193_v39  ;;  %6767 = vmatprep.subr.bf16.mxu1 %v10195_v40  ;;  %v297_v38 = vld [vmem:[#allocation5 + $0x520] sm:$0xff]  ;;  %v294_v39 = vld [vmem:[#allocation5 + $0x508] sm:$0xff]  ;;  %v10251_v40 = vcombine.high %v286_v31, %v290_v33 }
  0xb2   :  { %v10257_v44 = vcombine.high %v293_v37, %v297_v38  ;;  %v10256_v50 = vcombine.low %v293_v37, %v297_v38  ;;  %v10258_v51 = vcombine.low %v294_v39, %v298_v41  ;;  %v354_v38 = vld [vmem:[#allocation5 + $0x6e8] sm:$0xff] }
  0xb4   :  { %6424 = vmatpush1.bf16.msra.mxu0 %v10192_v45  ;;  %6768 = vmatpush1.bf16.msra.mxu1 %v10194_v46  ;;  %v301_v45 = vld [vmem:[#allocation5 + $0x540] sm:$0xff] }
  0xb5   :  { %6425 = vmatprep.subr.bf16.mxu0 %v10201_v47  ;;  %6769 = vmatprep.subr.bf16.mxu1 %v10203_v48  ;;  %v305_v46 = vld [vmem:[#allocation5 + $0x560] sm:$0xff]  ;;  %v302_v47 = vld [vmem:[#allocation5 + $0x548] sm:$0xff]  ;;  %v10259_v48 = vcombine.high %v294_v39, %v298_v41 }
  0xb6   :  { %v10265_v52 = vcombine.high %v301_v45, %v305_v46  ;;  %v10264_v61 = vcombine.low %v301_v45, %v305_v46  ;;  %v10266_v62 = vcombine.low %v302_v47, %v306_v49  ;;  %v362_v46 = vld [vmem:[#allocation5 + $0x728] sm:$0xff] }
  0xb8   :  { %6426 = vmatpush1.bf16.msra.mxu0 %v10200_v55  ;;  %6770 = vmatpush1.bf16.msra.mxu1 %v10202_v56  ;;  %v309_v55 = vld [vmem:[#allocation5 + $0x580] sm:$0xff] }
  0xb9   :  { %6427 = vmatprep.subr.bf16.mxu0 %v10209_v57  ;;  %6771 = vmatprep.subr.bf16.mxu1 %v10211_v59  ;;  %v313_v56 = vld [vmem:[#allocation5 + $0x5a0] sm:$0xff]  ;;  %v310_v57 = vld [vmem:[#allocation5 + $0x588] sm:$0xff]  ;;  %v10267_v59 = vcombine.high %v302_v47, %v306_v49 }
  0xba   :  { %v10273_v63 = vcombine.high %v309_v55, %v313_v56  ;;  %v10272_v5 = vcombine.low %v309_v55, %v313_v56  ;;  %v10274_v6 = vcombine.low %v310_v57, %v314_v60  ;;  %v370_v56 = vld [vmem:[#allocation5 + $0x768] sm:$0xff] }
  0xbc   :  { %6428 = vmatpush1.bf16.msra.mxu0 %v10208_v0  ;;  %6772 = vmatpush1.bf16.msra.mxu1 %v10210_v1  ;;  %v317_v0 = vld [vmem:[#allocation5 + $0x5c0] sm:$0xff] }
  0xbd   :  { %6429 = vmatprep.subr.bf16.mxu0 %v10217_v2  ;;  %6773 = vmatprep.subr.bf16.mxu1 %v10219_v3  ;;  %v321_v1 = vld [vmem:[#allocation5 + $0x5e0] sm:$0xff]  ;;  %v318_v2 = vld [vmem:[#allocation5 + $0x5c8] sm:$0xff]  ;;  %v10275_v3 = vcombine.high %v310_v57, %v314_v60 }
  0xbe   :  { %v10281_v7 = vcombine.high %v317_v0, %v321_v1  ;;  %v10280_v13 = vcombine.low %v317_v0, %v321_v1  ;;  %v10282_v14 = vcombine.low %v318_v2, %v322_v4  ;;  %v378_v1 = vld [vmem:[#allocation5 + $0x7a8] sm:$0xff] }
  0xc0   :  { %6430 = vmatpush1.bf16.msra.mxu0 %v10216_v8  ;;  %6774 = vmatpush1.bf16.msra.mxu1 %v10218_v9  ;;  %v325_v8 = vld [vmem:[#allocation5 + $0x600] sm:$0xff] }
  0xc1   :  { %6442 = vmatprep.subr.bf16.mxu0 %v10225_v10  ;;  %6786 = vmatprep.subr.bf16.mxu1 %v10227_v11  ;;  %v329_v9 = vld [vmem:[#allocation5 + $0x620] sm:$0xff]  ;;  %v326_v10 = vld [vmem:[#allocation5 + $0x608] sm:$0xff]  ;;  %v10283_v11 = vcombine.high %v318_v2, %v322_v4 }
  0xc2   :  { %v10289_v16 = vcombine.high %v325_v8, %v329_v9  ;;  %v10288_v24 = vcombine.low %v325_v8, %v329_v9  ;;  %v10290_v25 = vcombine.low %v326_v10, %v330_v12  ;;  %v386_v9 = vld [vmem:[#allocation5 + $0x7e8] sm:$0xff] }
  0xc3   :  { %6432 = vmatmul.mubr.bf16.vlgmr.msra.gmra.mrb[0].mxu0 %v12386_v15  ;;  %6776 = vmatmul.mubr.bf16.vlgmr.msra.gmra.mrb[0].mxu1 %v12386_v15 }
  0xc4   :  { %6443 = vmatpush1.bf16.msra.mxu0 %v10224_v19  ;;  %6787 = vmatpush1.bf16.msra.mxu1 %v10226_v20  ;;  %v333_v19 = vld [vmem:[#allocation5 + $0x640] sm:$0xff] }
  0xc5   :  { %6444 = vmatprep.subr.bf16.mxu0 %v10233_v21  ;;  %6788 = vmatprep.subr.bf16.mxu1 %v10235_v22  ;;  %v337_v20 = vld [vmem:[#allocation5 + $0x660] sm:$0xff]  ;;  %v334_v21 = vld [vmem:[#allocation5 + $0x648] sm:$0xff]  ;;  %v10291_v22 = vcombine.high %v326_v10, %v330_v12 }
  0xc6   :  { %6474 = vmatprep.mubr.bf16.mxu0 %v12394_v53  ;;  %6818 = vmatprep.mubr.bf16.mxu1 %v12394_v53  ;;  %v10297_v54 = vcombine.high %v333_v19, %v337_v20  ;;  %v10299_v29 = vcombine.high %v334_v21, %v338_v23  ;;  %v10296_v31 = vcombine.low %v333_v19, %v337_v20  ;;  %v394_v20 = vld [vmem:[#allocation5 + $0x828] sm:$0xff] }
  0xc8   :  { %6445 = vmatpush1.bf16.msra.mxu0 %v10232_v26  ;;  %6789 = vmatpush1.bf16.msra.mxu1 %v10234_v27  ;;  %v341_v26 = vld [vmem:[#allocation5 + $0x680] sm:$0xff] }
  0xc9   :  { %6446 = vmatprep.subr.bf16.mxu0 %v10241_v28  ;;  %6790 = vmatprep.subr.bf16.mxu1 %v10243_v32  ;;  %v345_v27 = vld [vmem:[#allocation5 + $0x6a0] sm:$0xff]  ;;  %v342_v28 = vld [vmem:[#allocation5 + $0x688] sm:$0xff]  ;;  %v10298_v32 = vcombine.low %v334_v21, %v338_v23 }
  0xca   :  { %v10305_v33 = vcombine.high %v341_v26, %v345_v27  ;;  %v10307_v37 = vcombine.high %v342_v28, %v346_v30  ;;  %v10304_v39 = vcombine.low %v341_v26, %v345_v27  ;;  %v401_v23 = vld [vmem:[#allocation5 + $0x860] sm:$0xff]  ;;  %v402_v26 = vld [vmem:[#allocation5 + $0x868] sm:$0xff]  ;;  %v12400_v27 = vld [vmem:[#allocation2 + $0x10] sm:$0xff] }
  0xcc   :  { %6447 = vmatpush1.bf16.msra.mxu0 %v10240_v34  ;;  %6791 = vmatpush1.bf16.msra.mxu1 %v10242_v35  ;;  %v349_v34 = vld [vmem:[#allocation5 + $0x6c0] sm:$0xff] }
  0xcd   :  { %6448 = vmatprep.subr.bf16.mxu0 %v10249_v36  ;;  %6792 = vmatprep.subr.bf16.mxu1 %v10251_v40  ;;  %v353_v35 = vld [vmem:[#allocation5 + $0x6e0] sm:$0xff]  ;;  %v350_v36 = vld [vmem:[#allocation5 + $0x6c8] sm:$0xff]  ;;  %v10306_v40 = vcombine.low %v342_v28, %v346_v30  ;;  %v12406_v30 = vcombine.low %v12388_v17, %v12390_v18 }
  0xce   :  { %v10313_v41 = vcombine.high %v349_v34, %v353_v35  ;;  %v10315_v45 = vcombine.high %v350_v36, %v354_v38  ;;  %v10312_v47 = vcombine.low %v349_v34, %v353_v35  ;;  %v405_v34 = vld [vmem:[#allocation5 + $0x880] sm:$0xff] }
  0xd0   :  { %6449 = vmatpush1.bf16.msra.mxu0 %v10248_v42  ;;  %6793 = vmatpush1.bf16.msra.mxu1 %v10250_v43  ;;  %v357_v42 = vld [vmem:[#allocation5 + $0x700] sm:$0xff] }
  0xd1   :  { %6450 = vmatprep.subr.bf16.mxu0 %v10257_v44  ;;  %6794 = vmatprep.subr.bf16.mxu1 %v10259_v48  ;;  %v361_v43 = vld [vmem:[#allocation5 + $0x720] sm:$0xff]  ;;  %v358_v44 = vld [vmem:[#allocation5 + $0x708] sm:$0xff]  ;;  %v10314_v48 = vcombine.low %v350_v36, %v354_v38 }
  0xd2   :  { %v10321_v49 = vcombine.high %v357_v42, %v361_v43  ;;  %v10323_v55 = vcombine.high %v358_v44, %v362_v46  ;;  %v10320_v57 = vcombine.low %v357_v42, %v361_v43  ;;  %v409_v36 = vld [vmem:[#allocation5 + $0x8a0] sm:$0xff]  ;;  %v410_v38 = vld [vmem:[#allocation5 + $0x8a8] sm:$0xff] }
  0xd3   :  { %v417_v42 = vld [vmem:[#allocation5 + $0x8e0] sm:$0xff]  ;;  %v414_v43 = vld [vmem:[#allocation5 + $0x8c8] sm:$0xff] }
  0xd4   :  { %6451 = vmatpush1.bf16.msra.mxu0 %v10256_v50  ;;  %6795 = vmatpush1.bf16.msra.mxu1 %v10258_v51  ;;  %v365_v50 = vld [vmem:[#allocation5 + $0x740] sm:$0xff] }
  0xd5   :  { %6452 = vmatprep.subr.bf16.mxu0 %v10265_v52  ;;  %6796 = vmatprep.subr.bf16.mxu1 %v10267_v59  ;;  %v369_v51 = vld [vmem:[#allocation5 + $0x760] sm:$0xff]  ;;  %v366_v52 = vld [vmem:[#allocation5 + $0x748] sm:$0xff]  ;;  %v10322_v59 = vcombine.low %v358_v44, %v362_v46  ;;  %v10368_v46 = vcombine.low %v405_v34, %v409_v36 }
  0xd6   :  { %v10329_v60 = vcombine.high %v365_v50, %v369_v51  ;;  %v10331_v0 = vcombine.high %v366_v52, %v370_v56  ;;  %v10328_v2 = vcombine.low %v365_v50, %v369_v51  ;;  %v425_v50 = vld [vmem:[#allocation5 + $0x920] sm:$0xff]  ;;  %v422_v51 = vld [vmem:[#allocation5 + $0x908] sm:$0xff] }
  0xd8   :  { %6453 = vmatpush1.bf16.msra.mxu0 %v10264_v61  ;;  %6797 = vmatpush1.bf16.msra.mxu1 %v10266_v62  ;;  %v373_v61 = vld [vmem:[#allocation5 + $0x780] sm:$0xff] }
  0xd9   :  { %6454 = vmatprep.subr.bf16.mxu0 %v10273_v63  ;;  %6798 = vmatprep.subr.bf16.mxu1 %v10275_v3  ;;  %v377_v62 = vld [vmem:[#allocation5 + $0x7a0] sm:$0xff]  ;;  %v374_v63 = vld [vmem:[#allocation5 + $0x788] sm:$0xff]  ;;  %v10330_v3 = vcombine.low %v366_v52, %v370_v56 }
  0xda   :  { %v10337_v4 = vcombine.high %v373_v61, %v377_v62  ;;  %v10339_v8 = vcombine.high %v374_v63, %v378_v1  ;;  %v10336_v10 = vcombine.low %v373_v61, %v377_v62  ;;  %v433_v61 = vld [vmem:[#allocation5 + $0x960] sm:$0xff]  ;;  %v430_v62 = vld [vmem:[#allocation5 + $0x948] sm:$0xff] }
  0xdc   :  { %6455 = vmatpush1.bf16.msra.mxu0 %v10272_v5  ;;  %6799 = vmatpush1.bf16.msra.mxu1 %v10274_v6  ;;  %v381_v5 = vld [vmem:[#allocation5 + $0x7c0] sm:$0xff] }
  0xdd   :  { %6456 = vmatprep.subr.bf16.mxu0 %v10281_v7  ;;  %6800 = vmatprep.subr.bf16.mxu1 %v10283_v11  ;;  %v385_v6 = vld [vmem:[#allocation5 + $0x7e0] sm:$0xff]  ;;  %v382_v7 = vld [vmem:[#allocation5 + $0x7c8] sm:$0xff]  ;;  %v10338_v11 = vcombine.low %v374_v63, %v378_v1 }
  0xde   :  { %v10345_v12 = vcombine.high %v381_v5, %v385_v6  ;;  %v10347_v19 = vcombine.high %v382_v7, %v386_v9  ;;  %v10344_v21 = vcombine.low %v381_v5, %v385_v6  ;;  %v441_v5 = vld [vmem:[#allocation5 + $0x9a0] sm:$0xff]  ;;  %v438_v6 = vld [vmem:[#allocation5 + $0x988] sm:$0xff] }
  0xe0   :  { %6457 = vmatpush1.bf16.msra.mxu0 %v10280_v13  ;;  %6801 = vmatpush1.bf16.msra.mxu1 %v10282_v14  ;;  %v389_v13 = vld [vmem:[#allocation5 + $0x800] sm:$0xff] }
  0xe1   :  { %6458 = vmatprep.subr.bf16.mxu0 %v10289_v16  ;;  %6802 = vmatprep.subr.bf16.mxu1 %v10291_v22  ;;  %v393_v14 = vld [vmem:[#allocation5 + $0x820] sm:$0xff]  ;;  %v390_v16 = vld [vmem:[#allocation5 + $0x808] sm:$0xff] }
  0xe2   :  { %v397_v22 = vld [vmem:[#allocation5 + $0x840] sm:$0xff]  ;;  %v10355_v28 = vcombine.high %v390_v16, %v394_v20 }
  0xe3   :  { %v10360_v17 = vcombine.low %v397_v22, %v401_v23 }
  0xe4   :  { %6459 = vmatpush1.bf16.msra.mxu0 %v10288_v24  ;;  %6803 = vmatpush1.bf16.msra.mxu1 %v10290_v25  ;;  %v10346_v24 = vcombine.low %v382_v7, %v386_v9  ;;  %v10353_v25 = vcombine.high %v389_v13, %v393_v14 }
  0xe5   :  { %6460 = vmatprep.subr.bf16.mxu0 %v10297_v54  ;;  %6804 = vmatprep.subr.bf16.mxu1 %v10299_v29  ;;  %v398_v54 = vld [vmem:[#allocation5 + $0x848] sm:$0xff]  ;;  %v12402_v29 = vld [vmem:[#allocation2 + $0x50] sm:$0xff] }
  0xe6   :  { %v10363_v35 = vcombine.high %v398_v54, %v402_v26  ;;  %v10362_v18 = vcombine.low %v398_v54, %v402_v26  ;;  %v458_v26 = vld [vmem:[#allocation5 + $0xa28] sm:$0xff] }
  0xe8   :  { %6461 = vmatpush1.bf16.msra.mxu0 %v10296_v31  ;;  %6805 = vmatpush1.bf16.msra.mxu1 %v10298_v32  ;;  %v10352_v31 = vcombine.low %v389_v13, %v393_v14  ;;  %v10354_v32 = vcombine.low %v390_v16, %v394_v20  ;;  %v449_v13 = vld [vmem:[#allocation5 + $0x9e0] sm:$0xff]  ;;  %v446_v14 = vld [vmem:[#allocation5 + $0x9c8] sm:$0xff] }
  0xe9   :  { %6462 = vmatprep.subr.bf16.mxu0 %v10305_v33  ;;  %6806 = vmatprep.subr.bf16.mxu1 %v10307_v37  ;;  %v10361_v33 = vcombine.high %v397_v22, %v401_v23  ;;  %v406_v37 = vld [vmem:[#allocation5 + $0x888] sm:$0xff]  ;;  %v453_v23 = vld [vmem:[#allocation5 + $0xa00] sm:$0xff] }
  0xea   :  { %v10371_v44 = vcombine.high %v406_v37, %v410_v38 }
  0xec   :  { %6463 = vmatpush1.bf16.msra.mxu0 %v10304_v39  ;;  %6807 = vmatpush1.bf16.msra.mxu1 %v10306_v40  ;;  %v12410_v39 = vcombine.high %v12400_v27, %v12402_v29  ;;  %v10369_v40 = vcombine.high %v405_v34, %v409_v36  ;;  %v465_v34 = vld [vmem:[#allocation5 + $0xa60] sm:$0xff] }
  0xed   :  { %6464 = vmatprep.subr.bf16.mxu0 %v10313_v41  ;;  %6808 = vmatprep.subr.bf16.mxu1 %v10315_v45  ;;  %v413_v41 = vld [vmem:[#allocation5 + $0x8c0] sm:$0xff]  ;;  %v418_v45 = vld [vmem:[#allocation5 + $0x8e8] sm:$0xff] }
  0xee   :  { %v10379_v52 = vcombine.high %v414_v43, %v418_v45  ;;  %v10376_v56 = vcombine.low %v413_v41, %v417_v42 }
  0xf0   :  { %6465 = vmatpush1.bf16.msra.mxu0 %v10312_v47  ;;  %6809 = vmatpush1.bf16.msra.mxu1 %v10314_v48  ;;  %v10370_v47 = vcombine.low %v406_v37, %v410_v38  ;;  %v10377_v48 = vcombine.high %v413_v41, %v417_v42  ;;  %v466_v37 = vld [vmem:[#allocation5 + $0xa68] sm:$0xff]  ;;  %v473_v41 = vld [vmem:[#allocation5 + $0xaa0] sm:$0xff] }
  0xf1   :  { %6466 = vmatprep.subr.bf16.mxu0 %v10321_v49  ;;  %6810 = vmatprep.subr.bf16.mxu1 %v10323_v55  ;;  %v421_v49 = vld [vmem:[#allocation5 + $0x900] sm:$0xff]  ;;  %v426_v55 = vld [vmem:[#allocation5 + $0x928] sm:$0xff] }
  0xf2   :  { %v10387_v63 = vcombine.high %v422_v51, %v426_v55  ;;  %v10384_v1 = vcombine.low %v421_v49, %v425_v50  ;;  %v470_v42 = vld [vmem:[#allocation5 + $0xa88] sm:$0xff] }
  0xf4   :  { %6467 = vmatpush1.bf16.msra.mxu0 %v10320_v57  ;;  %6811 = vmatpush1.bf16.msra.mxu1 %v10322_v59  ;;  %v10378_v57 = vcombine.low %v414_v43, %v418_v45  ;;  %v10385_v59 = vcombine.high %v421_v49, %v425_v50  ;;  %v481_v49 = vld [vmem:[#allocation5 + $0xae0] sm:$0xff]  ;;  %v478_v50 = vld [vmem:[#allocation5 + $0xac8] sm:$0xff] }
  0xf5   :  { %6468 = vmatprep.subr.bf16.mxu0 %v10329_v60  ;;  %6812 = vmatprep.subr.bf16.mxu1 %v10331_v0  ;;  %v429_v60 = vld [vmem:[#allocation5 + $0x940] sm:$0xff]  ;;  %v434_v0 = vld [vmem:[#allocation5 + $0x968] sm:$0xff] }
  0xf6   :  { %v10395_v7 = vcombine.high %v430_v62, %v434_v0  ;;  %v10392_v9 = vcombine.low %v429_v60, %v433_v61 }
  0xf8   :  { %6469 = vmatpush1.bf16.msra.mxu0 %v10328_v2  ;;  %6813 = vmatpush1.bf16.msra.mxu1 %v10330_v3  ;;  %v10386_v2 = vcombine.low %v422_v51, %v426_v55  ;;  %v10393_v3 = vcombine.high %v429_v60, %v433_v61  ;;  %v489_v60 = vld [vmem:[#allocation5 + $0xb20] sm:$0xff]  ;;  %v486_v61 = vld [vmem:[#allocation5 + $0xb08] sm:$0xff] }
  0xf9   :  { %6470 = vmatprep.subr.bf16.mxu0 %v10337_v4  ;;  %6814 = vmatprep.subr.bf16.mxu1 %v10339_v8  ;;  %v437_v4 = vld [vmem:[#allocation5 + $0x980] sm:$0xff]  ;;  %v442_v8 = vld [vmem:[#allocation5 + $0x9a8] sm:$0xff] }
  0xfa   :  { %v10403_v16 = vcombine.high %v438_v6, %v442_v8  ;;  %v10400_v20 = vcombine.low %v437_v4, %v441_v5 }
  0xfc   :  { %6471 = vmatpush1.bf16.msra.mxu0 %v10336_v10  ;;  %6815 = vmatpush1.bf16.msra.mxu1 %v10338_v11  ;;  %v10394_v10 = vcombine.low %v430_v62, %v434_v0  ;;  %v10401_v11 = vcombine.high %v437_v4, %v441_v5  ;;  %v497_v4 = vld [vmem:[#allocation5 + $0xb60] sm:$0xff]  ;;  %v494_v5 = vld [vmem:[#allocation5 + $0xb48] sm:$0xff] }
  0xfd   :  { %6472 = vmatprep.subr.bf16.mxu0 %v10345_v12  ;;  %6816 = vmatprep.subr.bf16.mxu1 %v10347_v19  ;;  %v445_v12 = vld [vmem:[#allocation5 + $0x9c0] sm:$0xff]  ;;  %v450_v19 = vld [vmem:[#allocation5 + $0x9e8] sm:$0xff] }
  0xfe   :  { %v10409_v22 = vcombine.high %v445_v12, %v449_v13  ;;  %v10411_v54 = vcombine.high %v446_v14, %v450_v19 }
 0x100   :  { %6473 = vmatpush1.bf16.msra.mxu0 %v10344_v21  ;;  %6817 = vmatpush1.bf16.msra.mxu1 %v10346_v24  ;;  %v10402_v21 = vcombine.low %v438_v6, %v442_v8  ;;  %v457_v24 = vld [vmem:[#allocation5 + $0xa20] sm:$0xff] }
 0x101   :  { %6485 = vmatprep.subr.bf16.mxu0 %v10353_v25  ;;  %6829 = vmatprep.subr.bf16.mxu1 %v10355_v28  ;;  %v454_v25 = vld [vmem:[#allocation5 + $0xa08] sm:$0xff]  ;;  %v10408_v28 = vcombine.low %v445_v12, %v449_v13  ;;  %v10416_v38 = vcombine.low %v453_v23, %v457_v24  ;;  %v505_v12 = vld [vmem:[#allocation5 + $0xba0] sm:$0xff] }
 0x102   :  { %v10419_v36 = vcombine.high %v454_v25, %v458_v26  ;;  %v502_v13 = vld [vmem:[#allocation5 + $0xb88] sm:$0xff] }
 0x103   :  { %6475 = vmatmul.mubr.bf16.vlgmr.msra.gmra.mrb[0].mxu0 %v12406_v30  ;;  %6819 = vmatmul.mubr.bf16.vlgmr.msra.gmra.mrb[0].mxu1 %v12406_v30 }
 0x104   :  { %6486 = vmatpush1.bf16.msra.mxu0 %v10352_v31  ;;  %6830 = vmatpush1.bf16.msra.mxu1 %v10354_v32  ;;  %v10410_v31 = vcombine.low %v446_v14, %v450_v19  ;;  %v10417_v32 = vcombine.high %v453_v23, %v457_v24  ;;  %v513_v23 = vld [vmem:[#allocation5 + $0xbe0] sm:$0xff]  ;;  %v510_v24 = vld [vmem:[#allocation5 + $0xbc8] sm:$0xff] }
 0x105   :  { %6487 = vmatprep.subr.bf16.mxu0 %v10361_v33  ;;  %6831 = vmatprep.subr.bf16.mxu1 %v10363_v35  ;;  %v461_v33 = vld [vmem:[#allocation5 + $0xa40] sm:$0xff]  ;;  %v462_v35 = vld [vmem:[#allocation5 + $0xa48] sm:$0xff] }
 0x106   :  { %6517 = vmatprep.mubr.bf16.mxu0 %v12410_v39  ;;  %6861 = vmatprep.mubr.bf16.mxu1 %v12410_v39  ;;  %v10427_v43 = vcombine.high %v462_v35, %v466_v37  ;;  %v10424_v45 = vcombine.low %v461_v33, %v465_v34 }
 0x108   :  { %6488 = vmatpush1.bf16.msra.mxu0 %v10360_v17  ;;  %6832 = vmatpush1.bf16.msra.mxu1 %v10362_v18  ;;  %v10418_v17 = vcombine.low %v454_v25, %v458_v26  ;;  %v10425_v18 = vcombine.high %v461_v33, %v465_v34  ;;  %v521_v33 = vld [vmem:[#allocation5 + $0xc20] sm:$0xff]  ;;  %v518_v34 = vld [vmem:[#allocation5 + $0xc08] sm:$0xff] }
 0x109   :  { %6489 = vmatprep.subr.bf16.mxu0 %v10369_v40  ;;  %6833 = vmatprep.subr.bf16.mxu1 %v10371_v44  ;;  %v469_v40 = vld [vmem:[#allocation5 + $0xa80] sm:$0xff]  ;;  %v474_v44 = vld [vmem:[#allocation5 + $0xaa8] sm:$0xff] }
 0x10a   :  { %v10435_v51 = vcombine.high %v470_v42, %v474_v44  ;;  %v10432_v55 = vcombine.low %v469_v40, %v473_v41 }
 0x10c   :  { %6490 = vmatpush1.bf16.msra.mxu0 %v10368_v46  ;;  %6834 = vmatpush1.bf16.msra.mxu1 %v10370_v47  ;;  %v10426_v46 = vcombine.low %v462_v35, %v466_v37  ;;  %v10433_v47 = vcombine.high %v469_v40, %v473_v41  ;;  %v526_v41 = vld [vmem:[#allocation5 + $0xc48] sm:$0xff] }
 0x10d   :  { %6491 = vmatprep.subr.bf16.mxu0 %v10377_v48  ;;  %6835 = vmatprep.subr.bf16.mxu1 %v10379_v52  ;;  %v477_v48 = vld [vmem:[#allocation5 + $0xac0] sm:$0xff]  ;;  %v482_v52 = vld [vmem:[#allocation5 + $0xae8] sm:$0xff] }
 0x10e   :  { %v10443_v62 = vcombine.high %v478_v50, %v482_v52  ;;  %v10440_v0 = vcombine.low %v477_v48, %v481_v49 }
 0x110   :  { %6492 = vmatpush1.bf16.msra.mxu0 %v10376_v56  ;;  %6836 = vmatpush1.bf16.msra.mxu1 %v10378_v57  ;;  %v10434_v56 = vcombine.low %v470_v42, %v474_v44  ;;  %v10441_v57 = vcombine.high %v477_v48, %v481_v49  ;;  %v530_v42 = vld [vmem:[#allocation5 + $0xc68] sm:$0xff] }
 0x111   :  { %6493 = vmatprep.subr.bf16.mxu0 %v10385_v59  ;;  %6837 = vmatprep.subr.bf16.mxu1 %v10387_v63  ;;  %v485_v59 = vld [vmem:[#allocation5 + $0xb00] sm:$0xff]  ;;  %v490_v63 = vld [vmem:[#allocation5 + $0xb28] sm:$0xff] }
 0x112   :  { %v10451_v6 = vcombine.high %v486_v61, %v490_v63  ;;  %v10448_v8 = vcombine.low %v485_v59, %v489_v60 }
 0x114   :  { %6494 = vmatpush1.bf16.msra.mxu0 %v10384_v1  ;;  %6838 = vmatpush1.bf16.msra.mxu1 %v10386_v2  ;;  %v10442_v1 = vcombine.low %v478_v50, %v482_v52  ;;  %v10449_v2 = vcombine.high %v485_v59, %v489_v60  ;;  %v533_v50 = vld [vmem:[#allocation5 + $0xc80] sm:$0xff] }
 0x115   :  { %6495 = vmatprep.subr.bf16.mxu0 %v10393_v3  ;;  %6839 = vmatprep.subr.bf16.mxu1 %v10395_v7  ;;  %v493_v3 = vld [vmem:[#allocation5 + $0xb40] sm:$0xff]  ;;  %v498_v7 = vld [vmem:[#allocation5 + $0xb68] sm:$0xff] }
 0x116   :  { %v10459_v14 = vcombine.high %v494_v5, %v498_v7  ;;  %v10456_v19 = vcombine.low %v493_v3, %v497_v4  ;;  %v537_v52 = vld [vmem:[#allocation5 + $0xca0] sm:$0xff] }
 0x117   :  { %v10497_v59 = vcombine.high %v533_v50, %v537_v52  ;;  %v541_v60 = vld [vmem:[#allocation5 + $0xcc0] sm:$0xff] }
 0x118   :  { %6496 = vmatpush1.bf16.msra.mxu0 %v10392_v9  ;;  %6840 = vmatpush1.bf16.msra.mxu1 %v10394_v10  ;;  %v10450_v9 = vcombine.low %v486_v61, %v490_v63  ;;  %v10457_v10 = vcombine.high %v493_v3, %v497_v4  ;;  %v545_v61 = vld [vmem:[#allocation5 + $0xce0] sm:$0xff] }
 0x119   :  { %6497 = vmatprep.subr.bf16.mxu0 %v10401_v11  ;;  %6841 = vmatprep.subr.bf16.mxu1 %v10403_v16  ;;  %v501_v11 = vld [vmem:[#allocation5 + $0xb80] sm:$0xff]  ;;  %v506_v16 = vld [vmem:[#allocation5 + $0xba8] sm:$0xff]  ;;  %v10505_v3 = vcombine.high %v541_v60, %v545_v61 }
 0x11a   :  { %v10467_v25 = vcombine.high %v502_v13, %v506_v16  ;;  %v10464_v26 = vcombine.low %v501_v11, %v505_v12  ;;  %v549_v4 = vld [vmem:[#allocation5 + $0xd00] sm:$0xff] }
 0x11c   :  { %6498 = vmatpush1.bf16.msra.mxu0 %v10400_v20  ;;  %6842 = vmatpush1.bf16.msra.mxu1 %v10402_v21  ;;  %v10458_v20 = vcombine.low %v494_v5, %v498_v7  ;;  %v10465_v21 = vcombine.high %v501_v11, %v505_v12  ;;  %v553_v5 = vld [vmem:[#allocation5 + $0xd20] sm:$0xff] }
 0x11d   :  { %6499 = vmatprep.subr.bf16.mxu0 %v10409_v22  ;;  %6843 = vmatprep.subr.bf16.mxu1 %v10411_v54  ;;  %v509_v22 = vld [vmem:[#allocation5 + $0xbc0] sm:$0xff]  ;;  %v514_v54 = vld [vmem:[#allocation5 + $0xbe8] sm:$0xff]  ;;  %v10513_v11 = vcombine.high %v549_v4, %v553_v5 }
 0x11e   :  { %v10475_v35 = vcombine.high %v510_v24, %v514_v54  ;;  %v10472_v37 = vcombine.low %v509_v22, %v513_v23  ;;  %v557_v12 = vld [vmem:[#allocation5 + $0xd40] sm:$0xff] }
 0x120   :  { %6500 = vmatpush1.bf16.msra.mxu0 %v10408_v28  ;;  %6844 = vmatpush1.bf16.msra.mxu1 %v10410_v31  ;;  %v10466_v28 = vcombine.low %v502_v13, %v506_v16  ;;  %v10473_v31 = vcombine.high %v509_v22, %v513_v23  ;;  %v561_v13 = vld [vmem:[#allocation5 + $0xd60] sm:$0xff] }
 0x121   :  { %6501 = vmatprep.subr.bf16.mxu0 %v10417_v32  ;;  %6845 = vmatprep.subr.bf16.mxu1 %v10419_v36  ;;  %v517_v32 = vld [vmem:[#allocation5 + $0xc00] sm:$0xff]  ;;  %v522_v36 = vld [vmem:[#allocation5 + $0xc28] sm:$0xff]  ;;  %v10521_v22 = vcombine.high %v557_v12, %v561_v13 }
 0x122   :  { %v10481_v40 = vcombine.high %v517_v32, %v521_v33  ;;  %v10483_v44 = vcombine.high %v518_v34, %v522_v36  ;;  %v10482_v48 = vcombine.low %v518_v34, %v522_v36  ;;  %v565_v23 = vld [vmem:[#allocation5 + $0xd80] sm:$0xff] }
 0x123   :  { %v577_v34 = vld [vmem:[#allocation5 + $0xde0] sm:$0xff] }
 0x124   :  { %6502 = vmatpush1.bf16.msra.mxu0 %v10416_v38  ;;  %6846 = vmatpush1.bf16.msra.mxu1 %v10418_v17  ;;  %v525_v38 = vld [vmem:[#allocation5 + $0xc40] sm:$0xff] }
 0x125   :  { %6503 = vmatprep.subr.bf16.mxu0 %v10425_v18  ;;  %6847 = vmatprep.subr.bf16.mxu1 %v10427_v43  ;;  %v529_v17 = vld [vmem:[#allocation5 + $0xc60] sm:$0xff]  ;;  %v10474_v18 = vcombine.low %v510_v24, %v514_v54  ;;  %v12416_v43 = vld [vmem:[#allocation2 + $0x18] sm:$0xff] }
 0x126   :  { %v10489_v49 = vcombine.high %v525_v38, %v529_v17  ;;  %v569_v24 = vld [vmem:[#allocation5 + $0xda0] sm:$0xff] }
 0x128   :  { %6504 = vmatpush1.bf16.msra.mxu0 %v10424_v45  ;;  %6848 = vmatpush1.bf16.msra.mxu1 %v10426_v46  ;;  %v12418_v45 = vld [vmem:[#allocation2 + $0x58] sm:$0xff]  ;;  %v12422_v46 = vcombine.low %v12400_v27, %v12402_v29  ;;  %v10488_v27 = vcombine.low %v525_v38, %v529_v17  ;;  %v10490_v29 = vcombine.low %v526_v41, %v530_v42 }
 0x129   :  { %6505 = vmatprep.subr.bf16.mxu0 %v10433_v47  ;;  %6849 = vmatprep.subr.bf16.mxu1 %v10435_v51  ;;  %v10480_v47 = vcombine.low %v517_v32, %v521_v33  ;;  %v10491_v51 = vcombine.high %v526_v41, %v530_v42  ;;  %v10529_v32 = vcombine.high %v565_v23, %v569_v24  ;;  %v573_v33 = vld [vmem:[#allocation5 + $0xdc0] sm:$0xff]  ;;  %v582_v42 = vld [vmem:[#allocation5 + $0xe08] sm:$0xff] }
 0x12a   :  { %v10528_v38 = vcombine.low %v565_v23, %v569_v24  ;;  %v585_v41 = vld [vmem:[#allocation5 + $0xe20] sm:$0xff] }
 0x12c   :  { %6506 = vmatpush1.bf16.msra.mxu0 %v10432_v55  ;;  %6850 = vmatpush1.bf16.msra.mxu1 %v10434_v56  ;;  %v534_v55 = vld [vmem:[#allocation5 + $0xc88] sm:$0xff] }
 0x12d   :  { %6507 = vmatprep.subr.bf16.mxu0 %v10441_v57  ;;  %6851 = vmatprep.subr.bf16.mxu1 %v10443_v62  ;;  %v538_v56 = vld [vmem:[#allocation5 + $0xca8] sm:$0xff]  ;;  %v12426_v57 = vcombine.high %v12416_v43, %v12418_v45 }
 0x12e   :  { %v542_v62 = vld [vmem:[#allocation5 + $0xcc8] sm:$0xff]  ;;  %v10499_v63 = vcombine.high %v534_v55, %v538_v56 }
 0x130   :  { %6508 = vmatpush1.bf16.msra.mxu0 %v10440_v0  ;;  %6852 = vmatpush1.bf16.msra.mxu1 %v10442_v1  ;;  %v546_v0 = vld [vmem:[#allocation5 + $0xce8] sm:$0xff]  ;;  %v10496_v1 = vcombine.low %v533_v50, %v537_v52  ;;  %v593_v52 = vld [vmem:[#allocation5 + $0xe60] sm:$0xff] }
 0x131   :  { %6509 = vmatprep.subr.bf16.mxu0 %v10449_v2  ;;  %6853 = vmatprep.subr.bf16.mxu1 %v10451_v6  ;;  %v10498_v2 = vcombine.low %v534_v55, %v538_v56  ;;  %v550_v6 = vld [vmem:[#allocation5 + $0xd08] sm:$0xff]  ;;  %v10507_v7 = vcombine.high %v542_v62, %v546_v0 }
 0x132   :  { %v590_v55 = vld [vmem:[#allocation5 + $0xe48] sm:$0xff] }
 0x134   :  { %6510 = vmatpush1.bf16.msra.mxu0 %v10448_v8  ;;  %6854 = vmatpush1.bf16.msra.mxu1 %v10450_v9  ;;  %v554_v8 = vld [vmem:[#allocation5 + $0xd28] sm:$0xff]  ;;  %v10504_v9 = vcombine.low %v541_v60, %v545_v61  ;;  %v597_v61 = vld [vmem:[#allocation5 + $0xe80] sm:$0xff] }
 0x135   :  { %6511 = vmatprep.subr.bf16.mxu0 %v10457_v10  ;;  %6855 = vmatprep.subr.bf16.mxu1 %v10459_v14  ;;  %v10506_v10 = vcombine.low %v542_v62, %v546_v0  ;;  %v558_v14 = vld [vmem:[#allocation5 + $0xd48] sm:$0xff]  ;;  %v10515_v16 = vcombine.high %v550_v6, %v554_v8  ;;  %v601_v62 = vld [vmem:[#allocation5 + $0xea0] sm:$0xff] }
 0x138   :  { %6512 = vmatpush1.bf16.msra.mxu0 %v10456_v19  ;;  %6856 = vmatpush1.bf16.msra.mxu1 %v10458_v20  ;;  %v562_v19 = vld [vmem:[#allocation5 + $0xd68] sm:$0xff]  ;;  %v10512_v20 = vcombine.low %v549_v4, %v553_v5  ;;  %v10561_v4 = vcombine.high %v597_v61, %v601_v62 }
 0x139   :  { %6513 = vmatprep.subr.bf16.mxu0 %v10465_v21  ;;  %6857 = vmatprep.subr.bf16.mxu1 %v10467_v25  ;;  %v10514_v21 = vcombine.low %v550_v6, %v554_v8  ;;  %v566_v25 = vld [vmem:[#allocation5 + $0xd88] sm:$0xff]  ;;  %v10523_v54 = vcombine.high %v558_v14, %v562_v19  ;;  %v605_v6 = vld [vmem:[#allocation5 + $0xec0] sm:$0xff] }
 0x13a   :  { %v606_v8 = vld [vmem:[#allocation5 + $0xec8] sm:$0xff] }
 0x13c   :  { %6514 = vmatpush1.bf16.msra.mxu0 %v10464_v26  ;;  %6858 = vmatpush1.bf16.msra.mxu1 %v10466_v28  ;;  %v570_v26 = vld [vmem:[#allocation5 + $0xda8] sm:$0xff]  ;;  %v10520_v28 = vcombine.low %v557_v12, %v561_v13 }
 0x13d   :  { %6515 = vmatprep.subr.bf16.mxu0 %v10473_v31  ;;  %6859 = vmatprep.subr.bf16.mxu1 %v10475_v35  ;;  %v10522_v31 = vcombine.low %v558_v14, %v562_v19  ;;  %v574_v35 = vld [vmem:[#allocation5 + $0xdc8] sm:$0xff]  ;;  %v10531_v36 = vcombine.high %v566_v25, %v570_v26  ;;  %v10530_v17 = vcombine.low %v566_v25, %v570_v26  ;;  %v613_v14 = vld [vmem:[#allocation5 + $0xf00] sm:$0xff] }
 0x13e   :  { %v614_v19 = vld [vmem:[#allocation5 + $0xf08] sm:$0xff]  ;;  %v621_v25 = vld [vmem:[#allocation5 + $0xf40] sm:$0xff] }
 0x13f   :  { %v622_v26 = vld [vmem:[#allocation5 + $0xf48] sm:$0xff] }
 0x140   :  { %6516 = vmatpush1.bf16.msra.mxu0 %v10472_v37  ;;  %6860 = vmatpush1.bf16.msra.mxu1 %v10474_v18  ;;  %v578_v37 = vld [vmem:[#allocation5 + $0xde8] sm:$0xff]  ;;  %v10537_v18 = vcombine.high %v573_v33, %v577_v34 }
 0x141   :  { %6528 = vmatprep.subr.bf16.mxu0 %v10481_v40  ;;  %6872 = vmatprep.subr.bf16.mxu1 %v10483_v44  ;;  %v581_v40 = vld [vmem:[#allocation5 + $0xe00] sm:$0xff]  ;;  %v10539_v44 = vcombine.high %v574_v35, %v578_v37 }
 0x142   :  { %v10545_v50 = vcombine.high %v581_v40, %v585_v41 }
 0x143   :  { %6518 = vmatmul.mubr.bf16.vlgmr.msra.gmra.mrb[0].mxu0 %v12422_v46  ;;  %6862 = vmatmul.mubr.bf16.vlgmr.msra.gmra.mrb[0].mxu1 %v12422_v46 }
 0x144   :  { %6529 = vmatpush1.bf16.msra.mxu0 %v10480_v47  ;;  %6873 = vmatpush1.bf16.msra.mxu1 %v10482_v48  ;;  %v586_v47 = vld [vmem:[#allocation5 + $0xe28] sm:$0xff]  ;;  %v10536_v48 = vcombine.low %v573_v33, %v577_v34 }
 0x145   :  { %6530 = vmatprep.subr.bf16.mxu0 %v10489_v49  ;;  %6874 = vmatprep.subr.bf16.mxu1 %v10491_v51  ;;  %v10538_v49 = vcombine.low %v574_v35, %v578_v37  ;;  %v589_v51 = vld [vmem:[#allocation5 + $0xe40] sm:$0xff]  ;;  %v10547_v56 = vcombine.high %v582_v42, %v586_v47  ;;  %v630_v37 = vld [vmem:[#allocation5 + $0xf88] sm:$0xff] }
 0x146   :  { %6560 = vmatprep.mubr.bf16.mxu0 %v12426_v57  ;;  %6904 = vmatprep.mubr.bf16.mxu1 %v12426_v57  ;;  %v10553_v60 = vcombine.high %v589_v51, %v593_v52  ;;  %v629_v35 = vld [vmem:[#allocation5 + $0xf80] sm:$0xff] }
 0x148   :  { %6531 = vmatpush1.bf16.msra.mxu0 %v10488_v27  ;;  %6875 = vmatpush1.bf16.msra.mxu1 %v10490_v29  ;;  %v594_v27 = vld [vmem:[#allocation5 + $0xe68] sm:$0xff]  ;;  %v10544_v29 = vcombine.low %v581_v40, %v585_v41 }
 0x149   :  { %6532 = vmatprep.subr.bf16.mxu0 %v10497_v59  ;;  %6876 = vmatprep.subr.bf16.mxu1 %v10499_v63  ;;  %v10546_v59 = vcombine.low %v582_v42, %v586_v47  ;;  %v598_v63 = vld [vmem:[#allocation5 + $0xe88] sm:$0xff]  ;;  %v10555_v0 = vcombine.high %v590_v55, %v594_v27  ;;  %v637_v42 = vld [vmem:[#allocation5 + $0xfc0] sm:$0xff] }
 0x14a   :  { %v638_v47 = vld [vmem:[#allocation5 + $0xfc8] sm:$0xff] }
 0x14c   :  { %6533 = vmatpush1.bf16.msra.mxu0 %v10496_v1  ;;  %6877 = vmatpush1.bf16.msra.mxu1 %v10498_v2  ;;  %v602_v1 = vld [vmem:[#allocation5 + $0xea8] sm:$0xff]  ;;  %v10552_v2 = vcombine.low %v589_v51, %v593_v52 }
 0x14d   :  { %6534 = vmatprep.subr.bf16.mxu0 %v10505_v3  ;;  %6878 = vmatprep.subr.bf16.mxu1 %v10507_v7  ;;  %v10554_v3 = vcombine.low %v590_v55, %v594_v27  ;;  %v10563_v5 = vcombine.high %v598_v63, %v602_v1  ;;  %v609_v7 = vld [vmem:[#allocation5 + $0xee0] sm:$0xff]  ;;  %v646_v27 = vld [vmem:[#allocation5 + $0x1008] sm:$0xff] }
 0x14e   :  { %v10569_v12 = vcombine.high %v605_v6, %v609_v7  ;;  %v645_v55 = vld [vmem:[#allocation5 + $0x1000] sm:$0xff] }
 0x150   :  { %6535 = vmatpush1.bf16.msra.mxu0 %v10504_v9  ;;  %6879 = vmatpush1.bf16.msra.mxu1 %v10506_v10  ;;  %v610_v9 = vld [vmem:[#allocation5 + $0xee8] sm:$0xff]  ;;  %v10560_v10 = vcombine.low %v597_v61, %v601_v62 }
 0x151   :  { %6536 = vmatprep.subr.bf16.mxu0 %v10513_v11  ;;  %6880 = vmatprep.subr.bf16.mxu1 %v10515_v16  ;;  %v10562_v11 = vcombine.low %v598_v63, %v602_v1  ;;  %v10571_v13 = vcombine.high %v606_v8, %v610_v9  ;;  %v617_v16 = vld [vmem:[#allocation5 + $0xf20] sm:$0xff]  ;;  %v654_v1 = vld [vmem:[#allocation5 + $0x1048] sm:$0xff] }
 0x152   :  { %v10577_v23 = vcombine.high %v613_v14, %v617_v16  ;;  %v653_v63 = vld [vmem:[#allocation5 + $0x1040] sm:$0xff] }
 0x154   :  { %6537 = vmatpush1.bf16.msra.mxu0 %v10512_v20  ;;  %6881 = vmatpush1.bf16.msra.mxu1 %v10514_v21  ;;  %v618_v20 = vld [vmem:[#allocation5 + $0xf28] sm:$0xff]  ;;  %v10568_v21 = vcombine.low %v605_v6, %v609_v7 }
 0x155   :  { %6538 = vmatprep.subr.bf16.mxu0 %v10521_v22  ;;  %6882 = vmatprep.subr.bf16.mxu1 %v10523_v54  ;;  %v10570_v22 = vcombine.low %v606_v8, %v610_v9  ;;  %v10579_v24 = vcombine.high %v614_v19, %v618_v20  ;;  %v625_v54 = vld [vmem:[#allocation5 + $0xf60] sm:$0xff] }
 0x156   :  { %v10585_v33 = vcombine.high %v621_v25, %v625_v54 }
 0x158   :  { %6539 = vmatpush1.bf16.msra.mxu0 %v10520_v28  ;;  %6883 = vmatpush1.bf16.msra.mxu1 %v10522_v31  ;;  %v626_v28 = vld [vmem:[#allocation5 + $0xf68] sm:$0xff]  ;;  %v10576_v31 = vcombine.low %v613_v14, %v617_v16 }
 0x159   :  { %6540 = vmatprep.subr.bf16.mxu0 %v10529_v32  ;;  %6884 = vmatprep.subr.bf16.mxu1 %v10531_v36  ;;  %v10578_v32 = vcombine.low %v614_v19, %v618_v20  ;;  %v10587_v34 = vcombine.high %v622_v26, %v626_v28  ;;  %v633_v36 = vld [vmem:[#allocation5 + $0xfa0] sm:$0xff] }
 0x15a   :  { %v10593_v40 = vcombine.high %v629_v35, %v633_v36  ;;  %v669_v20 = vld [vmem:[#allocation5 + $0x10c0] sm:$0xff] }
 0x15c   :  { %6541 = vmatpush1.bf16.msra.mxu0 %v10528_v38  ;;  %6885 = vmatpush1.bf16.msra.mxu1 %v10530_v17  ;;  %v634_v38 = vld [vmem:[#allocation5 + $0xfa8] sm:$0xff]  ;;  %v10584_v17 = vcombine.low %v621_v25, %v625_v54 }
 0x15d   :  { %6542 = vmatprep.subr.bf16.mxu0 %v10537_v18  ;;  %6886 = vmatprep.subr.bf16.mxu1 %v10539_v44  ;;  %v10586_v18 = vcombine.low %v622_v26, %v626_v28  ;;  %v10595_v41 = vcombine.high %v630_v37, %v634_v38  ;;  %v641_v44 = vld [vmem:[#allocation5 + $0xfe0] sm:$0xff] }
 0x15e   :  { %v10601_v51 = vcombine.high %v637_v42, %v641_v44  ;;  %v677_v28 = vld [vmem:[#allocation5 + $0x1100] sm:$0xff] }
 0x160   :  { %6543 = vmatpush1.bf16.msra.mxu0 %v10536_v48  ;;  %6887 = vmatpush1.bf16.msra.mxu1 %v10538_v49  ;;  %v642_v48 = vld [vmem:[#allocation5 + $0xfe8] sm:$0xff]  ;;  %v10592_v49 = vcombine.low %v629_v35, %v633_v36 }
 0x161   :  { %6544 = vmatprep.subr.bf16.mxu0 %v10545_v50  ;;  %6888 = vmatprep.subr.bf16.mxu1 %v10547_v56  ;;  %v10594_v50 = vcombine.low %v630_v37, %v634_v38  ;;  %v10603_v52 = vcombine.high %v638_v47, %v642_v48  ;;  %v649_v56 = vld [vmem:[#allocation5 + $0x1020] sm:$0xff] }
 0x162   :  { %v10609_v61 = vcombine.high %v645_v55, %v649_v56  ;;  %v10608_v6 = vcombine.low %v645_v55, %v649_v56  ;;  %v685_v38 = vld [vmem:[#allocation5 + $0x1140] sm:$0xff] }
 0x164   :  { %6545 = vmatpush1.bf16.msra.mxu0 %v10544_v29  ;;  %6889 = vmatpush1.bf16.msra.mxu1 %v10546_v59  ;;  %v650_v29 = vld [vmem:[#allocation5 + $0x1028] sm:$0xff]  ;;  %v10600_v59 = vcombine.low %v637_v42, %v641_v44 }
 0x165   :  { %6546 = vmatprep.subr.bf16.mxu0 %v10553_v60  ;;  %6890 = vmatprep.subr.bf16.mxu1 %v10555_v0  ;;  %v10602_v60 = vcombine.low %v638_v47, %v642_v48  ;;  %v10611_v62 = vcombine.high %v646_v27, %v650_v29  ;;  %v657_v0 = vld [vmem:[#allocation5 + $0x1060] sm:$0xff]  ;;  %v10610_v7 = vcombine.low %v646_v27, %v650_v29 }
 0x166   :  { %v10617_v8 = vcombine.high %v653_v63, %v657_v0  ;;  %v693_v48 = vld [vmem:[#allocation5 + $0x1180] sm:$0xff] }
 0x167   :  { %v701_v29 = vld [vmem:[#allocation5 + $0x11c0] sm:$0xff] }
 0x168   :  { %6547 = vmatpush1.bf16.msra.mxu0 %v10552_v2  ;;  %6891 = vmatpush1.bf16.msra.mxu1 %v10554_v3  ;;  %v12434_v2 = vcombine.low %v12416_v43, %v12418_v45  ;;  %v658_v3 = vld [vmem:[#allocation5 + $0x1068] sm:$0xff] }
 0x169   :  { %6548 = vmatprep.subr.bf16.mxu0 %v10561_v4  ;;  %6892 = vmatprep.subr.bf16.mxu1 %v10563_v5  ;;  %v12436_v4 = vld [vmem:[#allocation2 + $0x20] sm:$0xff]  ;;  %v10619_v9 = vcombine.high %v654_v1, %v658_v3  ;;  %v662_v43 = vld [vmem:[#allocation5 + $0x1088] sm:$0xff]  ;;  %v10618_v14 = vcombine.low %v654_v1, %v658_v3 }
 0x16a   :  { %v12438_v5 = vld [vmem:[#allocation2 + $0x60] sm:$0xff]  ;;  %v666_v45 = vld [vmem:[#allocation5 + $0x10a8] sm:$0xff] }
 0x16b   :  { %v10627_v19 = vcombine.high %v662_v43, %v666_v45  ;;  %v10626_v25 = vcombine.low %v662_v43, %v666_v45  ;;  %v709_v3 = vld [vmem:[#allocation5 + $0x1200] sm:$0xff] }
 0x16c   :  { %6549 = vmatpush1.bf16.msra.mxu0 %v10560_v10  ;;  %6893 = vmatpush1.bf16.msra.mxu1 %v10562_v11  ;;  %v661_v10 = vld [vmem:[#allocation5 + $0x1080] sm:$0xff] }
 0x16d   :  { %6550 = vmatprep.subr.bf16.mxu0 %v10569_v12  ;;  %6894 = vmatprep.subr.bf16.mxu1 %v10571_v13  ;;  %v665_v11 = vld [vmem:[#allocation5 + $0x10a0] sm:$0xff]  ;;  %v12442_v12 = vcombine.high %v12436_v4, %v12438_v5  ;;  %v10616_v13 = vcombine.low %v653_v63, %v657_v0 }
 0x16e   :  { %v10625_v16 = vcombine.high %v661_v10, %v665_v11  ;;  %v717_v45 = vld [vmem:[#allocation5 + $0x1240] sm:$0xff] }
 0x170   :  { %6551 = vmatpush1.bf16.msra.mxu0 %v10568_v21  ;;  %6895 = vmatpush1.bf16.msra.mxu1 %v10570_v22  ;;  %v673_v21 = vld [vmem:[#allocation5 + $0x10e0] sm:$0xff]  ;;  %v670_v22 = vld [vmem:[#allocation5 + $0x10c8] sm:$0xff] }
 0x171   :  { %6552 = vmatprep.subr.bf16.mxu0 %v10577_v23  ;;  %6896 = vmatprep.subr.bf16.mxu1 %v10579_v24  ;;  %v674_v23 = vld [vmem:[#allocation5 + $0x10e8] sm:$0xff]  ;;  %v10624_v24 = vcombine.low %v661_v10, %v665_v11  ;;  %v10633_v54 = vcombine.high %v669_v20, %v673_v21 }
 0x172   :  { %v10635_v26 = vcombine.high %v670_v22, %v674_v23  ;;  %v10634_v35 = vcombine.low %v670_v22, %v674_v23  ;;  %v725_v23 = vld [vmem:[#allocation5 + $0x1280] sm:$0xff] }
 0x174   :  { %6553 = vmatpush1.bf16.msra.mxu0 %v10576_v31  ;;  %6897 = vmatpush1.bf16.msra.mxu1 %v10578_v32  ;;  %v681_v31 = vld [vmem:[#allocation5 + $0x1120] sm:$0xff]  ;;  %v678_v32 = vld [vmem:[#allocation5 + $0x1108] sm:$0xff] }
 0x175   :  { %6554 = vmatprep.subr.bf16.mxu0 %v10585_v33  ;;  %6898 = vmatprep.subr.bf16.mxu1 %v10587_v34  ;;  %v682_v33 = vld [vmem:[#allocation5 + $0x1128] sm:$0xff]  ;;  %v10632_v34 = vcombine.low %v669_v20, %v673_v21  ;;  %v10641_v36 = vcombine.high %v677_v28, %v681_v31 }
 0x176   :  { %v10643_v37 = vcombine.high %v678_v32, %v682_v33  ;;  %v10642_v42 = vcombine.low %v678_v32, %v682_v33  ;;  %v733_v33 = vld [vmem:[#allocation5 + $0x12c0] sm:$0xff] }
 0x178   :  { %6555 = vmatpush1.bf16.msra.mxu0 %v10584_v17  ;;  %6899 = vmatpush1.bf16.msra.mxu1 %v10586_v18  ;;  %v689_v17 = vld [vmem:[#allocation5 + $0x1160] sm:$0xff]  ;;  %v686_v18 = vld [vmem:[#allocation5 + $0x1148] sm:$0xff] }
 0x179   :  { %6556 = vmatprep.subr.bf16.mxu0 %v10593_v40  ;;  %6900 = vmatprep.subr.bf16.mxu1 %v10595_v41  ;;  %v690_v40 = vld [vmem:[#allocation5 + $0x1168] sm:$0xff]  ;;  %v10640_v41 = vcombine.low %v677_v28, %v681_v31  ;;  %v10649_v44 = vcombine.high %v685_v38, %v689_v17 }
 0x17a   :  { %v10651_v47 = vcombine.high %v686_v18, %v690_v40  ;;  %v10650_v55 = vcombine.low %v686_v18, %v690_v40  ;;  %v741_v40 = vld [vmem:[#allocation5 + $0x1300] sm:$0xff] }
 0x17c   :  { %6557 = vmatpush1.bf16.msra.mxu0 %v10592_v49  ;;  %6901 = vmatpush1.bf16.msra.mxu1 %v10594_v50  ;;  %v697_v49 = vld [vmem:[#allocation5 + $0x11a0] sm:$0xff]  ;;  %v694_v50 = vld [vmem:[#allocation5 + $0x1188] sm:$0xff] }
 0x17d   :  { %6558 = vmatprep.subr.bf16.mxu0 %v10601_v51  ;;  %6902 = vmatprep.subr.bf16.mxu1 %v10603_v52  ;;  %v698_v51 = vld [vmem:[#allocation5 + $0x11a8] sm:$0xff]  ;;  %v10648_v52 = vcombine.low %v685_v38, %v689_v17  ;;  %v10657_v56 = vcombine.high %v693_v48, %v697_v49 }
 0x17e   :  { %v10659_v27 = vcombine.high %v694_v50, %v698_v51  ;;  %v10658_v63 = vcombine.low %v694_v50, %v698_v51  ;;  %v749_v51 = vld [vmem:[#allocation5 + $0x1340] sm:$0xff] }
 0x180   :  { %6559 = vmatpush1.bf16.msra.mxu0 %v10600_v59  ;;  %6903 = vmatpush1.bf16.msra.mxu1 %v10602_v60  ;;  %v705_v59 = vld [vmem:[#allocation5 + $0x11e0] sm:$0xff]  ;;  %v702_v60 = vld [vmem:[#allocation5 + $0x11c8] sm:$0xff] }
 0x181   :  { %6571 = vmatprep.subr.bf16.mxu0 %v10609_v61  ;;  %6915 = vmatprep.subr.bf16.mxu1 %v10611_v62  ;;  %v706_v61 = vld [vmem:[#allocation5 + $0x11e8] sm:$0xff]  ;;  %v10656_v62 = vcombine.low %v693_v48, %v697_v49  ;;  %v10665_v0 = vcombine.high %v701_v29, %v705_v59 }
 0x182   :  { %v10667_v1 = vcombine.high %v702_v60, %v706_v61  ;;  %v10666_v10 = vcombine.low %v702_v60, %v706_v61  ;;  %v757_v61 = vld [vmem:[#allocation5 + $0x1380] sm:$0xff] }
 0x183   :  { %6561 = vmatmul.mubr.bf16.vlgmr.msra.gmra.mrb[0].mxu0 %v12434_v2  ;;  %6905 = vmatmul.mubr.bf16.vlgmr.msra.gmra.mrb[0].mxu1 %v12434_v2 }
 0x184   :  { %6572 = vmatpush1.bf16.msra.mxu0 %v10608_v6  ;;  %6916 = vmatpush1.bf16.msra.mxu1 %v10610_v7  ;;  %v713_v6 = vld [vmem:[#allocation5 + $0x1220] sm:$0xff]  ;;  %v710_v7 = vld [vmem:[#allocation5 + $0x1208] sm:$0xff] }
 0x185   :  { %6573 = vmatprep.subr.bf16.mxu0 %v10617_v8  ;;  %6917 = vmatprep.subr.bf16.mxu1 %v10619_v9  ;;  %v714_v8 = vld [vmem:[#allocation5 + $0x1228] sm:$0xff]  ;;  %v10664_v9 = vcombine.low %v701_v29, %v705_v59  ;;  %v10673_v11 = vcombine.high %v709_v3, %v713_v6 }
 0x186   :  { %6603 = vmatprep.mubr.bf16.mxu0 %v12442_v12  ;;  %6947 = vmatprep.mubr.bf16.mxu1 %v12442_v12  ;;  %v10675_v43 = vcombine.high %v710_v7, %v714_v8  ;;  %v10674_v20 = vcombine.low %v710_v7, %v714_v8  ;;  %v765_v8 = vld [vmem:[#allocation5 + $0x13c0] sm:$0xff] }
 0x188   :  { %6574 = vmatpush1.bf16.msra.mxu0 %v10616_v13  ;;  %6918 = vmatpush1.bf16.msra.mxu1 %v10618_v14  ;;  %v721_v13 = vld [vmem:[#allocation5 + $0x1260] sm:$0xff]  ;;  %v718_v14 = vld [vmem:[#allocation5 + $0x1248] sm:$0xff] }
 0x189   :  { %6575 = vmatprep.subr.bf16.mxu0 %v10625_v16  ;;  %6919 = vmatprep.subr.bf16.mxu1 %v10627_v19  ;;  %v722_v16 = vld [vmem:[#allocation5 + $0x1268] sm:$0xff]  ;;  %v10672_v19 = vcombine.low %v709_v3, %v713_v6  ;;  %v10681_v21 = vcombine.high %v717_v45, %v721_v13 }
 0x18a   :  { %v10683_v22 = vcombine.high %v718_v14, %v722_v16  ;;  %v10682_v28 = vcombine.low %v718_v14, %v722_v16  ;;  %v773_v16 = vld [vmem:[#allocation5 + $0x1400] sm:$0xff] }
 0x18c   :  { %6576 = vmatpush1.bf16.msra.mxu0 %v10624_v24  ;;  %6920 = vmatpush1.bf16.msra.mxu1 %v10626_v25  ;;  %v729_v24 = vld [vmem:[#allocation5 + $0x12a0] sm:$0xff]  ;;  %v726_v25 = vld [vmem:[#allocation5 + $0x1288] sm:$0xff] }
 0x18d   :  { %6577 = vmatprep.subr.bf16.mxu0 %v10633_v54  ;;  %6921 = vmatprep.subr.bf16.mxu1 %v10635_v26  ;;  %v730_v54 = vld [vmem:[#allocation5 + $0x12a8] sm:$0xff]  ;;  %v10680_v26 = vcombine.low %v717_v45, %v721_v13  ;;  %v10689_v31 = vcombine.high %v725_v23, %v729_v24 }
 0x18e   :  { %v10691_v32 = vcombine.high %v726_v25, %v730_v54  ;;  %v10690_v38 = vcombine.low %v726_v25, %v730_v54  ;;  %v781_v54 = vld [vmem:[#allocation5 + $0x1440] sm:$0xff] }
 0x190   :  { %6578 = vmatpush1.bf16.msra.mxu0 %v10632_v34  ;;  %6922 = vmatpush1.bf16.msra.mxu1 %v10634_v35  ;;  %v737_v34 = vld [vmem:[#allocation5 + $0x12e0] sm:$0xff]  ;;  %v734_v35 = vld [vmem:[#allocation5 + $0x12c8] sm:$0xff] }
 0x191   :  { %6579 = vmatprep.subr.bf16.mxu0 %v10641_v36  ;;  %6923 = vmatprep.subr.bf16.mxu1 %v10643_v37  ;;  %v738_v36 = vld [vmem:[#allocation5 + $0x12e8] sm:$0xff]  ;;  %v10688_v37 = vcombine.low %v725_v23, %v729_v24  ;;  %v10697_v17 = vcombine.high %v733_v33, %v737_v34 }
 0x192   :  { %v10699_v18 = vcombine.high %v734_v35, %v738_v36  ;;  %v10698_v48 = vcombine.low %v734_v35, %v738_v36 }
 0x194   :  { %6580 = vmatpush1.bf16.msra.mxu0 %v10640_v41  ;;  %6924 = vmatpush1.bf16.msra.mxu1 %v10642_v42  ;;  %v745_v41 = vld [vmem:[#allocation5 + $0x1320] sm:$0xff]  ;;  %v742_v42 = vld [vmem:[#allocation5 + $0x1308] sm:$0xff] }
 0x195   :  { %6581 = vmatprep.subr.bf16.mxu0 %v10649_v44  ;;  %6925 = vmatprep.subr.bf16.mxu1 %v10651_v47  ;;  %v746_v44 = vld [vmem:[#allocation5 + $0x1328] sm:$0xff]  ;;  %v10696_v47 = vcombine.low %v733_v33, %v737_v34  ;;  %v10705_v49 = vcombine.high %v741_v40, %v745_v41 }
 0x196   :  { %v10707_v50 = vcombine.high %v742_v42, %v746_v44  ;;  %v10706_v29 = vcombine.low %v742_v42, %v746_v44  ;;  %v12452_v33 = vld [vmem:[#allocation2 + $0x28] sm:$0xff] }
 0x197   :  { %v12454_v34 = vld [vmem:[#allocation2 + $0x68] sm:$0xff] }
 0x198   :  { %6582 = vmatpush1.bf16.msra.mxu0 %v10648_v52  ;;  %6926 = vmatpush1.bf16.msra.mxu1 %v10650_v55  ;;  %v753_v52 = vld [vmem:[#allocation5 + $0x1360] sm:$0xff]  ;;  %v750_v55 = vld [vmem:[#allocation5 + $0x1348] sm:$0xff] }
 0x199   :  { %6583 = vmatprep.subr.bf16.mxu0 %v10657_v56  ;;  %6927 = vmatprep.subr.bf16.mxu1 %v10659_v27  ;;  %v754_v56 = vld [vmem:[#allocation5 + $0x1368] sm:$0xff]  ;;  %v10704_v27 = vcombine.low %v741_v40, %v745_v41  ;;  %v10713_v59 = vcombine.high %v749_v51, %v753_v52  ;;  %v12458_v40 = vcombine.high %v12452_v33, %v12454_v34 }
 0x19a   :  { %v10715_v60 = vcombine.high %v750_v55, %v754_v56  ;;  %v10714_v3 = vcombine.low %v750_v55, %v754_v56 }
 0x19c   :  { %6584 = vmatpush1.bf16.msra.mxu0 %v10656_v62  ;;  %6928 = vmatpush1.bf16.msra.mxu1 %v10658_v63  ;;  %v761_v62 = vld [vmem:[#allocation5 + $0x13a0] sm:$0xff]  ;;  %v758_v63 = vld [vmem:[#allocation5 + $0x1388] sm:$0xff] }
 0x19d   :  { %6585 = vmatprep.subr.bf16.mxu0 %v10665_v0  ;;  %6929 = vmatprep.subr.bf16.mxu1 %v10667_v1  ;;  %v762_v0 = vld [vmem:[#allocation5 + $0x13a8] sm:$0xff]  ;;  %v10712_v1 = vcombine.low %v749_v51, %v753_v52  ;;  %v10721_v6 = vcombine.high %v757_v61, %v761_v62 }
 0x19e   :  { %v10723_v7 = vcombine.high %v758_v63, %v762_v0  ;;  %v10722_v45 = vcombine.low %v758_v63, %v762_v0  ;;  %v802_v51 = vld [vmem:[#allocation5 + $0x14e8] sm:$0xff] }
 0x1a0   :  { %6586 = vmatpush1.bf16.msra.mxu0 %v10664_v9  ;;  %6930 = vmatpush1.bf16.msra.mxu1 %v10666_v10  ;;  %v769_v9 = vld [vmem:[#allocation5 + $0x13e0] sm:$0xff]  ;;  %v766_v10 = vld [vmem:[#allocation5 + $0x13c8] sm:$0xff] }
 0x1a1   :  { %6587 = vmatprep.subr.bf16.mxu0 %v10673_v11  ;;  %6931 = vmatprep.subr.bf16.mxu1 %v10675_v43  ;;  %v770_v11 = vld [vmem:[#allocation5 + $0x13e8] sm:$0xff]  ;;  %v10720_v43 = vcombine.low %v757_v61, %v761_v62  ;;  %v10729_v13 = vcombine.high %v765_v8, %v769_v9 }
 0x1a2   :  { %v10731_v14 = vcombine.high %v766_v10, %v770_v11  ;;  %v10730_v23 = vcombine.low %v766_v10, %v770_v11  ;;  %v810_v61 = vld [vmem:[#allocation5 + $0x1528] sm:$0xff] }
 0x1a4   :  { %6588 = vmatpush1.bf16.msra.mxu0 %v10672_v19  ;;  %6932 = vmatpush1.bf16.msra.mxu1 %v10674_v20  ;;  %v777_v19 = vld [vmem:[#allocation5 + $0x1420] sm:$0xff]  ;;  %v774_v20 = vld [vmem:[#allocation5 + $0x1408] sm:$0xff] }
 0x1a5   :  { %6589 = vmatprep.subr.bf16.mxu0 %v10681_v21  ;;  %6933 = vmatprep.subr.bf16.mxu1 %v10683_v22  ;;  %v778_v21 = vld [vmem:[#allocation5 + $0x1428] sm:$0xff]  ;;  %v10728_v22 = vcombine.low %v765_v8, %v769_v9  ;;  %v10737_v24 = vcombine.high %v773_v16, %v777_v19  ;;  %v10736_v35 = vcombine.low %v773_v16, %v777_v19 }
 0x1a6   :  { %v10739_v25 = vcombine.high %v774_v20, %v778_v21  ;;  %v10738_v36 = vcombine.low %v774_v20, %v778_v21  ;;  %v818_v8 = vld [vmem:[#allocation5 + $0x1568] sm:$0xff] }
 0x1a7   :  { %v826_v16 = vld [vmem:[#allocation5 + $0x15a8] sm:$0xff] }
 0x1a8   :  { %6590 = vmatpush1.bf16.msra.mxu0 %v10680_v26  ;;  %6934 = vmatpush1.bf16.msra.mxu1 %v10682_v28  ;;  %v785_v26 = vld [vmem:[#allocation5 + $0x1460] sm:$0xff]  ;;  %v782_v28 = vld [vmem:[#allocation5 + $0x1448] sm:$0xff] }
 0x1a9   :  { %6591 = vmatprep.subr.bf16.mxu0 %v10689_v31  ;;  %6935 = vmatprep.subr.bf16.mxu1 %v10691_v32  ;;  %v12450_v31 = vcombine.low %v12436_v4, %v12438_v5  ;;  %v786_v32 = vld [vmem:[#allocation5 + $0x1468] sm:$0xff]  ;;  %v10744_v41 = vcombine.low %v781_v54, %v785_v26 }
 0x1aa   :  { %v790_v4 = vld [vmem:[#allocation5 + $0x1488] sm:$0xff]  ;;  %v10746_v42 = vcombine.low %v782_v28, %v786_v32 }
 0x1ab   :  { %v794_v5 = vld [vmem:[#allocation5 + $0x14a8] sm:$0xff] }
 0x1ac   :  { %6592 = vmatpush1.bf16.msra.mxu0 %v10688_v37  ;;  %6936 = vmatpush1.bf16.msra.mxu1 %v10690_v38  ;;  %v10745_v37 = vcombine.high %v781_v54, %v785_v26  ;;  %v10747_v38 = vcombine.high %v782_v28, %v786_v32  ;;  %v10754_v55 = vcombine.low %v790_v4, %v794_v5  ;;  %v834_v54 = vld [vmem:[#allocation5 + $0x15e8] sm:$0xff] }
 0x1ad   :  { %6593 = vmatprep.subr.bf16.mxu0 %v10697_v17  ;;  %6937 = vmatprep.subr.bf16.mxu1 %v10699_v18  ;;  %v789_v17 = vld [vmem:[#allocation5 + $0x1480] sm:$0xff] }
 0x1ae   :  { %v793_v18 = vld [vmem:[#allocation5 + $0x14a0] sm:$0xff] }
 0x1af   :  { %v10753_v44 = vcombine.high %v789_v17, %v793_v18  ;;  %v10752_v52 = vcombine.low %v789_v17, %v793_v18  ;;  %v842_v17 = vld [vmem:[#allocation5 + $0x1628] sm:$0xff] }
 0x1b0   :  { %6594 = vmatpush1.bf16.msra.mxu0 %v10696_v47  ;;  %6938 = vmatpush1.bf16.msra.mxu1 %v10698_v48  ;;  %v10755_v47 = vcombine.high %v790_v4, %v794_v5  ;;  %v797_v48 = vld [vmem:[#allocation5 + $0x14c0] sm:$0xff] }
 0x1b1   :  { %6595 = vmatprep.subr.bf16.mxu0 %v10705_v49  ;;  %6939 = vmatprep.subr.bf16.mxu1 %v10707_v50  ;;  %v801_v49 = vld [vmem:[#allocation5 + $0x14e0] sm:$0xff]  ;;  %v798_v50 = vld [vmem:[#allocation5 + $0x14c8] sm:$0xff] }
 0x1b2   :  { %v10761_v56 = vcombine.high %v797_v48, %v801_v49  ;;  %v10760_v62 = vcombine.low %v797_v48, %v801_v49  ;;  %v10762_v63 = vcombine.low %v798_v50, %v802_v51  ;;  %v850_v48 = vld [vmem:[#allocation5 + $0x1668] sm:$0xff] }
 0x1b4   :  { %6596 = vmatpush1.bf16.msra.mxu0 %v10704_v27  ;;  %6940 = vmatpush1.bf16.msra.mxu1 %v10706_v29  ;;  %v10763_v27 = vcombine.high %v798_v50, %v802_v51  ;;  %v805_v29 = vld [vmem:[#allocation5 + $0x1500] sm:$0xff] }
 0x1b5   :  { %6597 = vmatprep.subr.bf16.mxu0 %v10713_v59  ;;  %6941 = vmatprep.subr.bf16.mxu1 %v10715_v60  ;;  %v809_v59 = vld [vmem:[#allocation5 + $0x1520] sm:$0xff]  ;;  %v806_v60 = vld [vmem:[#allocation5 + $0x1508] sm:$0xff] }
 0x1b6   :  { %v10769_v0 = vcombine.high %v805_v29, %v809_v59  ;;  %v10768_v9 = vcombine.low %v805_v29, %v809_v59  ;;  %v10770_v10 = vcombine.low %v806_v60, %v810_v61  ;;  %v858_v29 = vld [vmem:[#allocation5 + $0x16a8] sm:$0xff] }
 0x1b8   :  { %6598 = vmatpush1.bf16.msra.mxu0 %v10712_v1  ;;  %6942 = vmatpush1.bf16.msra.mxu1 %v10714_v3  ;;  %v10771_v1 = vcombine.high %v806_v60, %v810_v61  ;;  %v813_v3 = vld [vmem:[#allocation5 + $0x1540] sm:$0xff] }
 0x1b9   :  { %6599 = vmatprep.subr.bf16.mxu0 %v10721_v6  ;;  %6943 = vmatprep.subr.bf16.mxu1 %v10723_v7  ;;  %v817_v6 = vld [vmem:[#allocation5 + $0x1560] sm:$0xff]  ;;  %v814_v7 = vld [vmem:[#allocation5 + $0x1548] sm:$0xff] }
 0x1ba   :  { %v10777_v11 = vcombine.high %v813_v3, %v817_v6  ;;  %v10776_v19 = vcombine.low %v813_v3, %v817_v6  ;;  %v10778_v20 = vcombine.low %v814_v7, %v818_v8  ;;  %v866_v3 = vld [vmem:[#allocation5 + $0x16e8] sm:$0xff] }
 0x1bc   :  { %6600 = vmatpush1.bf16.msra.mxu0 %v10720_v43  ;;  %6944 = vmatpush1.bf16.msra.mxu1 %v10722_v45  ;;  %v10779_v43 = vcombine.high %v814_v7, %v818_v8  ;;  %v821_v45 = vld [vmem:[#allocation5 + $0x1580] sm:$0xff] }
 0x1bd   :  { %6601 = vmatprep.subr.bf16.mxu0 %v10729_v13  ;;  %6945 = vmatprep.subr.bf16.mxu1 %v10731_v14  ;;  %v825_v13 = vld [vmem:[#allocation5 + $0x15a0] sm:$0xff]  ;;  %v822_v14 = vld [vmem:[#allocation5 + $0x1588] sm:$0xff] }
 0x1be   :  { %v10785_v21 = vcombine.high %v821_v45, %v825_v13  ;;  %v10784_v26 = vcombine.low %v821_v45, %v825_v13  ;;  %v10786_v28 = vcombine.low %v822_v14, %v826_v16  ;;  %v874_v45 = vld [vmem:[#allocation5 + $0x1728] sm:$0xff] }
 0x1c0   :  { %6602 = vmatpush1.bf16.msra.mxu0 %v10728_v22  ;;  %6946 = vmatpush1.bf16.msra.mxu1 %v10730_v23  ;;  %v10787_v22 = vcombine.high %v822_v14, %v826_v16  ;;  %v829_v23 = vld [vmem:[#allocation5 + $0x15c0] sm:$0xff] }
 0x1c1   :  { %6614 = vmatprep.subr.bf16.mxu0 %v10737_v24  ;;  %6958 = vmatprep.subr.bf16.mxu1 %v10739_v25  ;;  %v833_v24 = vld [vmem:[#allocation5 + $0x15e0] sm:$0xff]  ;;  %v830_v25 = vld [vmem:[#allocation5 + $0x15c8] sm:$0xff] }
 0x1c2   :  { %v10793_v32 = vcombine.high %v829_v23, %v833_v24  ;;  %v10792_v18 = vcombine.low %v829_v23, %v833_v24  ;;  %v10794_v4 = vcombine.low %v830_v25, %v834_v54  ;;  %v882_v23 = vld [vmem:[#allocation5 + $0x1768] sm:$0xff] }
 0x1c3   :  { %6604 = vmatmul.mubr.bf16.vlgmr.msra.gmra.mrb[0].mxu0 %v12450_v31  ;;  %6948 = vmatmul.mubr.bf16.vlgmr.msra.gmra.mrb[0].mxu1 %v12450_v31 }
 0x1c4   :  { %6615 = vmatpush1.bf16.msra.mxu0 %v10736_v35  ;;  %6959 = vmatpush1.bf16.msra.mxu1 %v10738_v36  ;;  %v10795_v35 = vcombine.high %v830_v25, %v834_v54  ;;  %v837_v36 = vld [vmem:[#allocation5 + $0x1600] sm:$0xff] }
 0x1c5   :  { %6616 = vmatprep.subr.bf16.mxu0 %v10745_v37  ;;  %6960 = vmatprep.subr.bf16.mxu1 %v10747_v38  ;;  %v841_v37 = vld [vmem:[#allocation5 + $0x1620] sm:$0xff]  ;;  %v838_v38 = vld [vmem:[#allocation5 + $0x1608] sm:$0xff] }
 0x1c6   :  { %6646 = vmatprep.mubr.bf16.mxu0 %v12458_v40  ;;  %6990 = vmatprep.mubr.bf16.mxu1 %v12458_v40  ;;  %v10801_v5 = vcombine.high %v837_v36, %v841_v37  ;;  %v10800_v49 = vcombine.low %v837_v36, %v841_v37  ;;  %v10802_v50 = vcombine.low %v838_v38, %v842_v17  ;;  %v890_v36 = vld [vmem:[#allocation5 + $0x17a8] sm:$0xff] }
 0x1c8   :  { %6617 = vmatpush1.bf16.msra.mxu0 %v10744_v41  ;;  %6961 = vmatpush1.bf16.msra.mxu1 %v10746_v42  ;;  %v10803_v41 = vcombine.high %v838_v38, %v842_v17  ;;  %v845_v42 = vld [vmem:[#allocation5 + $0x1640] sm:$0xff] }
 0x1c9   :  { %6618 = vmatprep.subr.bf16.mxu0 %v10753_v44  ;;  %6962 = vmatprep.subr.bf16.mxu1 %v10755_v47  ;;  %v849_v44 = vld [vmem:[#allocation5 + $0x1660] sm:$0xff]  ;;  %v846_v47 = vld [vmem:[#allocation5 + $0x1648] sm:$0xff] }
 0x1ca   :  { %v10809_v51 = vcombine.high %v845_v42, %v849_v44  ;;  %v10808_v59 = vcombine.low %v845_v42, %v849_v44  ;;  %v10810_v60 = vcombine.low %v846_v47, %v850_v48  ;;  %v898_v42 = vld [vmem:[#allocation5 + $0x17e8] sm:$0xff] }
 0x1cc   :  { %6619 = vmatpush1.bf16.msra.mxu0 %v10752_v52  ;;  %6963 = vmatpush1.bf16.msra.mxu1 %v10754_v55  ;;  %v10811_v52 = vcombine.high %v846_v47, %v850_v48  ;;  %v853_v55 = vld [vmem:[#allocation5 + $0x1680] sm:$0xff] }
 0x1cd   :  { %6620 = vmatprep.subr.bf16.mxu0 %v10761_v56  ;;  %6964 = vmatprep.subr.bf16.mxu1 %v10763_v27  ;;  %v857_v56 = vld [vmem:[#allocation5 + $0x16a0] sm:$0xff]  ;;  %v854_v27 = vld [vmem:[#allocation5 + $0x1688] sm:$0xff] }
 0x1ce   :  { %v10817_v61 = vcombine.high %v853_v55, %v857_v56  ;;  %v10816_v6 = vcombine.low %v853_v55, %v857_v56  ;;  %v10818_v7 = vcombine.low %v854_v27, %v858_v29  ;;  %v906_v55 = vld [vmem:[#allocation5 + $0x1828] sm:$0xff] }
 0x1d0   :  { %6621 = vmatpush1.bf16.msra.mxu0 %v10760_v62  ;;  %6965 = vmatpush1.bf16.msra.mxu1 %v10762_v63  ;;  %v10819_v62 = vcombine.high %v854_v27, %v858_v29  ;;  %v861_v63 = vld [vmem:[#allocation5 + $0x16c0] sm:$0xff] }
 0x1d1   :  { %6622 = vmatprep.subr.bf16.mxu0 %v10769_v0  ;;  %6966 = vmatprep.subr.bf16.mxu1 %v10771_v1  ;;  %v865_v0 = vld [vmem:[#allocation5 + $0x16e0] sm:$0xff]  ;;  %v862_v1 = vld [vmem:[#allocation5 + $0x16c8] sm:$0xff] }
 0x1d2   :  { %v10825_v8 = vcombine.high %v861_v63, %v865_v0  ;;  %v10824_v13 = vcombine.low %v861_v63, %v865_v0  ;;  %v10826_v14 = vcombine.low %v862_v1, %v866_v3  ;;  %v12466_v63 = vcombine.low %v12452_v33, %v12454_v34  ;;  %v914_v0 = vld [vmem:[#allocation5 + $0x1868] sm:$0xff] }
 0x1d3   :  { %v918_v33 = vld [vmem:[#allocation5 + $0x1888] sm:$0xff] }
 0x1d4   :  { %6623 = vmatpush1.bf16.msra.mxu0 %v10768_v9  ;;  %6967 = vmatpush1.bf16.msra.mxu1 %v10770_v10  ;;  %v10827_v9 = vcombine.high %v862_v1, %v866_v3  ;;  %v869_v10 = vld [vmem:[#allocation5 + $0x1700] sm:$0xff]  ;;  %v12468_v1 = vld [vmem:[#allocation2 + $0x30] sm:$0xff]  ;;  %v922_v34 = vld [vmem:[#allocation5 + $0x18a8] sm:$0xff] }
 0x1d5   :  { %6624 = vmatprep.subr.bf16.mxu0 %v10777_v11  ;;  %6968 = vmatprep.subr.bf16.mxu1 %v10779_v43  ;;  %v873_v11 = vld [vmem:[#allocation5 + $0x1720] sm:$0xff]  ;;  %v870_v43 = vld [vmem:[#allocation5 + $0x1708] sm:$0xff]  ;;  %v12470_v3 = vld [vmem:[#allocation2 + $0x70] sm:$0xff] }
 0x1d6   :  { %v10833_v16 = vcombine.high %v869_v10, %v873_v11  ;;  %v10832_v24 = vcombine.low %v869_v10, %v873_v11  ;;  %v10834_v25 = vcombine.low %v870_v43, %v874_v45  ;;  %v917_v10 = vld [vmem:[#allocation5 + $0x1880] sm:$0xff] }
 0x1d7   :  { %v921_v11 = vld [vmem:[#allocation5 + $0x18a0] sm:$0xff] }
 0x1d8   :  { %6625 = vmatpush1.bf16.msra.mxu0 %v10776_v19  ;;  %6969 = vmatpush1.bf16.msra.mxu1 %v10778_v20  ;;  %v10835_v19 = vcombine.high %v870_v43, %v874_v45  ;;  %v877_v20 = vld [vmem:[#allocation5 + $0x1740] sm:$0xff]  ;;  %v12474_v43 = vcombine.high %v12468_v1, %v12470_v3 }
 0x1d9   :  { %6626 = vmatprep.subr.bf16.mxu0 %v10785_v21  ;;  %6970 = vmatprep.subr.bf16.mxu1 %v10787_v22  ;;  %v881_v21 = vld [vmem:[#allocation5 + $0x1760] sm:$0xff]  ;;  %v878_v22 = vld [vmem:[#allocation5 + $0x1748] sm:$0xff] }
 0x1da   :  { %v10841_v54 = vcombine.high %v877_v20, %v881_v21  ;;  %v10840_v37 = vcombine.low %v877_v20, %v881_v21  ;;  %v10842_v38 = vcombine.low %v878_v22, %v882_v23  ;;  %v929_v20 = vld [vmem:[#allocation5 + $0x18e0] sm:$0xff]  ;;  %v926_v21 = vld [vmem:[#allocation5 + $0x18c8] sm:$0xff] }
 0x1dc   :  { %6627 = vmatpush1.bf16.msra.mxu0 %v10784_v26  ;;  %6971 = vmatpush1.bf16.msra.mxu1 %v10786_v28  ;;  %v10843_v26 = vcombine.high %v878_v22, %v882_v23  ;;  %v885_v28 = vld [vmem:[#allocation5 + $0x1780] sm:$0xff]  ;;  %v930_v22 = vld [vmem:[#allocation5 + $0x18e8] sm:$0xff]  ;;  %v10880_v23 = vcombine.low %v917_v10, %v921_v11 }
 0x1dd   :  { %6628 = vmatprep.subr.bf16.mxu0 %v10793_v32  ;;  %6972 = vmatprep.subr.bf16.mxu1 %v10795_v35  ;;  %v889_v32 = vld [vmem:[#allocation5 + $0x17a0] sm:$0xff]  ;;  %v886_v35 = vld [vmem:[#allocation5 + $0x1788] sm:$0xff] }
 0x1de   :  { %v10849_v17 = vcombine.high %v885_v28, %v889_v32  ;;  %v10848_v44 = vcombine.low %v885_v28, %v889_v32  ;;  %v10850_v47 = vcombine.low %v886_v35, %v890_v36  ;;  %v937_v28 = vld [vmem:[#allocation5 + $0x1920] sm:$0xff]  ;;  %v934_v32 = vld [vmem:[#allocation5 + $0x1908] sm:$0xff] }
 0x1e0   :  { %6629 = vmatpush1.bf16.msra.mxu0 %v10792_v18  ;;  %6973 = vmatpush1.bf16.msra.mxu1 %v10794_v4  ;;  %v10851_v18 = vcombine.high %v886_v35, %v890_v36  ;;  %v893_v4 = vld [vmem:[#allocation5 + $0x17c0] sm:$0xff]  ;;  %v938_v35 = vld [vmem:[#allocation5 + $0x1928] sm:$0xff] }
 0x1e1   :  { %6630 = vmatprep.subr.bf16.mxu0 %v10801_v5  ;;  %6974 = vmatprep.subr.bf16.mxu1 %v10803_v41  ;;  %v897_v5 = vld [vmem:[#allocation5 + $0x17e0] sm:$0xff]  ;;  %v894_v41 = vld [vmem:[#allocation5 + $0x17c8] sm:$0xff] }
 0x1e2   :  { %v10857_v48 = vcombine.high %v893_v4, %v897_v5  ;;  %v10856_v56 = vcombine.low %v893_v4, %v897_v5  ;;  %v10858_v27 = vcombine.low %v894_v41, %v898_v42  ;;  %v945_v4 = vld [vmem:[#allocation5 + $0x1960] sm:$0xff]  ;;  %v942_v5 = vld [vmem:[#allocation5 + $0x1948] sm:$0xff] }
 0x1e4   :  { %6631 = vmatpush1.bf16.msra.mxu0 %v10800_v49  ;;  %6975 = vmatpush1.bf16.msra.mxu1 %v10802_v50  ;;  %v10859_v49 = vcombine.high %v894_v41, %v898_v42  ;;  %v901_v50 = vld [vmem:[#allocation5 + $0x1800] sm:$0xff]  ;;  %v946_v41 = vld [vmem:[#allocation5 + $0x1968] sm:$0xff] }
 0x1e5   :  { %6632 = vmatprep.subr.bf16.mxu0 %v10809_v51  ;;  %6976 = vmatprep.subr.bf16.mxu1 %v10811_v52  ;;  %v905_v51 = vld [vmem:[#allocation5 + $0x1820] sm:$0xff]  ;;  %v902_v52 = vld [vmem:[#allocation5 + $0x1808] sm:$0xff] }
 0x1e6   :  { %v10865_v29 = vcombine.high %v901_v50, %v905_v51 }
 0x1e8   :  { %6633 = vmatpush1.bf16.msra.mxu0 %v10808_v59  ;;  %6977 = vmatpush1.bf16.msra.mxu1 %v10810_v60  ;;  %v10867_v59 = vcombine.high %v902_v52, %v906_v55  ;;  %v909_v60 = vld [vmem:[#allocation5 + $0x1840] sm:$0xff] }
 0x1e9   :  { %6634 = vmatprep.subr.bf16.mxu0 %v10817_v61  ;;  %6978 = vmatprep.subr.bf16.mxu1 %v10819_v62  ;;  %v913_v61 = vld [vmem:[#allocation5 + $0x1860] sm:$0xff]  ;;  %v910_v62 = vld [vmem:[#allocation5 + $0x1848] sm:$0xff] }
 0x1ea   :  { %v10872_v45 = vcombine.low %v909_v60, %v913_v61 }
 0x1ec   :  { %6635 = vmatpush1.bf16.msra.mxu0 %v10816_v6  ;;  %6979 = vmatpush1.bf16.msra.mxu1 %v10818_v7  ;;  %v10864_v6 = vcombine.low %v901_v50, %v905_v51  ;;  %v10866_v7 = vcombine.low %v902_v52, %v906_v55  ;;  %v953_v50 = vld [vmem:[#allocation5 + $0x19a0] sm:$0xff]  ;;  %v950_v51 = vld [vmem:[#allocation5 + $0x1988] sm:$0xff] }
 0x1ed   :  { %6636 = vmatprep.subr.bf16.mxu0 %v10825_v8  ;;  %6980 = vmatprep.subr.bf16.mxu1 %v10827_v9  ;;  %v10873_v8 = vcombine.high %v909_v60, %v913_v61  ;;  %v10875_v9 = vcombine.high %v910_v62, %v914_v0  ;;  %v954_v52 = vld [vmem:[#allocation5 + $0x19a8] sm:$0xff]  ;;  %v961_v60 = vld [vmem:[#allocation5 + $0x19e0] sm:$0xff] }
 0x1ee   :  { %v958_v61 = vld [vmem:[#allocation5 + $0x19c8] sm:$0xff] }
 0x1f0   :  { %6637 = vmatpush1.bf16.msra.mxu0 %v10824_v13  ;;  %6981 = vmatpush1.bf16.msra.mxu1 %v10826_v14  ;;  %v10874_v13 = vcombine.low %v910_v62, %v914_v0  ;;  %v10881_v14 = vcombine.high %v917_v10, %v921_v11  ;;  %v962_v62 = vld [vmem:[#allocation5 + $0x19e8] sm:$0xff]  ;;  %v969_v10 = vld [vmem:[#allocation5 + $0x1a20] sm:$0xff] }
 0x1f1   :  { %6638 = vmatprep.subr.bf16.mxu0 %v10833_v16  ;;  %6982 = vmatprep.subr.bf16.mxu1 %v10835_v19  ;;  %v10883_v16 = vcombine.high %v918_v33, %v922_v34  ;;  %v925_v19 = vld [vmem:[#allocation5 + $0x18c0] sm:$0xff]  ;;  %v966_v11 = vld [vmem:[#allocation5 + $0x1a08] sm:$0xff] }
 0x1f2   :  { %v10888_v36 = vcombine.low %v925_v19, %v929_v20 }
 0x1f4   :  { %6639 = vmatpush1.bf16.msra.mxu0 %v10832_v24  ;;  %6983 = vmatpush1.bf16.msra.mxu1 %v10834_v25  ;;  %v10882_v24 = vcombine.low %v918_v33, %v922_v34  ;;  %v10889_v25 = vcombine.high %v925_v19, %v929_v20  ;;  %v970_v33 = vld [vmem:[#allocation5 + $0x1a28] sm:$0xff]  ;;  %v977_v19 = vld [vmem:[#allocation5 + $0x1a60] sm:$0xff] }
 0x1f5   :  { %6640 = vmatprep.subr.bf16.mxu0 %v10841_v54  ;;  %6984 = vmatprep.subr.bf16.mxu1 %v10843_v26  ;;  %v10891_v54 = vcombine.high %v926_v21, %v930_v22  ;;  %v933_v26 = vld [vmem:[#allocation5 + $0x1900] sm:$0xff]  ;;  %v974_v20 = vld [vmem:[#allocation5 + $0x1a48] sm:$0xff] }
 0x1f6   :  { %v10896_v42 = vcombine.low %v933_v26, %v937_v28 }
 0x1f8   :  { %6641 = vmatpush1.bf16.msra.mxu0 %v10840_v37  ;;  %6985 = vmatpush1.bf16.msra.mxu1 %v10842_v38  ;;  %v10890_v37 = vcombine.low %v926_v21, %v930_v22  ;;  %v10897_v38 = vcombine.high %v933_v26, %v937_v28  ;;  %v978_v21 = vld [vmem:[#allocation5 + $0x1a68] sm:$0xff]  ;;  %v985_v26 = vld [vmem:[#allocation5 + $0x1aa0] sm:$0xff] }
 0x1f9   :  { %6642 = vmatprep.subr.bf16.mxu0 %v10849_v17  ;;  %6986 = vmatprep.subr.bf16.mxu1 %v10851_v18  ;;  %v10899_v17 = vcombine.high %v934_v32, %v938_v35  ;;  %v941_v18 = vld [vmem:[#allocation5 + $0x1940] sm:$0xff]  ;;  %v982_v28 = vld [vmem:[#allocation5 + $0x1a88] sm:$0xff] }
 0x1fa   :  { %v10904_v55 = vcombine.low %v941_v18, %v945_v4 }
 0x1fc   :  { %6643 = vmatpush1.bf16.msra.mxu0 %v10848_v44  ;;  %6987 = vmatpush1.bf16.msra.mxu1 %v10850_v47  ;;  %v10898_v44 = vcombine.low %v934_v32, %v938_v35  ;;  %v10905_v47 = vcombine.high %v941_v18, %v945_v4  ;;  %v986_v32 = vld [vmem:[#allocation5 + $0x1aa8] sm:$0xff]  ;;  %v993_v18 = vld [vmem:[#allocation5 + $0x1ae0] sm:$0xff] }
 0x1fd   :  { %6644 = vmatprep.subr.bf16.mxu0 %v10857_v48  ;;  %6988 = vmatprep.subr.bf16.mxu1 %v10859_v49  ;;  %v10907_v48 = vcombine.high %v942_v5, %v946_v41  ;;  %v949_v49 = vld [vmem:[#allocation5 + $0x1980] sm:$0xff]  ;;  %v990_v4 = vld [vmem:[#allocation5 + $0x1ac8] sm:$0xff] }
 0x1fe   :  { %v10912_v0 = vcombine.low %v949_v49, %v953_v50 }
 0x200   :  { %6645 = vmatpush1.bf16.msra.mxu0 %v10856_v56  ;;  %6989 = vmatpush1.bf16.msra.mxu1 %v10858_v27  ;;  %v10906_v56 = vcombine.low %v942_v5, %v946_v41  ;;  %v10913_v27 = vcombine.high %v949_v49, %v953_v50  ;;  %v994_v5 = vld [vmem:[#allocation5 + $0x1ae8] sm:$0xff]  ;;  %v1001_v49 = vld [vmem:[#allocation5 + $0x1b20] sm:$0xff] }
 0x201   :  { %6657 = vmatprep.subr.bf16.mxu0 %v10865_v29  ;;  %7001 = vmatprep.subr.bf16.mxu1 %v10867_v59  ;;  %v10915_v29 = vcombine.high %v950_v51, %v954_v52  ;;  %v957_v59 = vld [vmem:[#allocation5 + $0x19c0] sm:$0xff]  ;;  %v998_v50 = vld [vmem:[#allocation5 + $0x1b08] sm:$0xff] }
 0x202   :  { %v10920_v34 = vcombine.low %v957_v59, %v961_v60 }
 0x203   :  { %6647 = vmatmul.mubr.bf16.vlgmr.msra.gmra.mrb[0].mxu0 %v12466_v63  ;;  %6991 = vmatmul.mubr.bf16.vlgmr.msra.gmra.mrb[0].mxu1 %v12466_v63 }
 0x204   :  { %6658 = vmatpush1.bf16.msra.mxu0 %v10864_v6  ;;  %7002 = vmatpush1.bf16.msra.mxu1 %v10866_v7  ;;  %v10914_v6 = vcombine.low %v950_v51, %v954_v52  ;;  %v10921_v7 = vcombine.high %v957_v59, %v961_v60  ;;  %v1002_v51 = vld [vmem:[#allocation5 + $0x1b28] sm:$0xff]  ;;  %v1009_v59 = vld [vmem:[#allocation5 + $0x1b60] sm:$0xff] }
 0x205   :  { %6659 = vmatprep.subr.bf16.mxu0 %v10873_v8  ;;  %7003 = vmatprep.subr.bf16.mxu1 %v10875_v9  ;;  %v10923_v8 = vcombine.high %v958_v61, %v962_v62  ;;  %v965_v9 = vld [vmem:[#allocation5 + $0x1a00] sm:$0xff]  ;;  %v1006_v60 = vld [vmem:[#allocation5 + $0x1b48] sm:$0xff] }
 0x206   :  { %6689 = vmatprep.mubr.bf16.mxu0 %v12474_v43  ;;  %7033 = vmatprep.mubr.bf16.mxu1 %v12474_v43  ;;  %v10928_v22 = vcombine.low %v965_v9, %v969_v10 }
 0x208   :  { %6660 = vmatpush1.bf16.msra.mxu0 %v10872_v45  ;;  %7004 = vmatpush1.bf16.msra.mxu1 %v10874_v13  ;;  %v10922_v45 = vcombine.low %v958_v61, %v962_v62  ;;  %v10929_v13 = vcombine.high %v965_v9, %v969_v10  ;;  %v1010_v61 = vld [vmem:[#allocation5 + $0x1b68] sm:$0xff]  ;;  %v1017_v9 = vld [vmem:[#allocation5 + $0x1ba0] sm:$0xff] }
 0x209   :  { %6661 = vmatprep.subr.bf16.mxu0 %v10881_v14  ;;  %7005 = vmatprep.subr.bf16.mxu1 %v10883_v16  ;;  %v10931_v14 = vcombine.high %v966_v11, %v970_v33  ;;  %v973_v16 = vld [vmem:[#allocation5 + $0x1a40] sm:$0xff]  ;;  %v1014_v10 = vld [vmem:[#allocation5 + $0x1b88] sm:$0xff] }
 0x20a   :  { %v10936_v35 = vcombine.low %v973_v16, %v977_v19 }
 0x20c   :  { %6662 = vmatpush1.bf16.msra.mxu0 %v10880_v23  ;;  %7006 = vmatpush1.bf16.msra.mxu1 %v10882_v24  ;;  %v10930_v23 = vcombine.low %v966_v11, %v970_v33  ;;  %v10937_v24 = vcombine.high %v973_v16, %v977_v19  ;;  %v1018_v11 = vld [vmem:[#allocation5 + $0x1ba8] sm:$0xff]  ;;  %v1025_v16 = vld [vmem:[#allocation5 + $0x1be0] sm:$0xff] }
 0x20d   :  { %6663 = vmatprep.subr.bf16.mxu0 %v10889_v25  ;;  %7007 = vmatprep.subr.bf16.mxu1 %v10891_v54  ;;  %v10939_v25 = vcombine.high %v974_v20, %v978_v21  ;;  %v981_v54 = vld [vmem:[#allocation5 + $0x1a80] sm:$0xff]  ;;  %v1022_v19 = vld [vmem:[#allocation5 + $0x1bc8] sm:$0xff] }
 0x20e   :  { %v10944_v41 = vcombine.low %v981_v54, %v985_v26 }
 0x210   :  { %6664 = vmatpush1.bf16.msra.mxu0 %v10888_v36  ;;  %7008 = vmatpush1.bf16.msra.mxu1 %v10890_v37  ;;  %v10938_v36 = vcombine.low %v974_v20, %v978_v21  ;;  %v10945_v37 = vcombine.high %v981_v54, %v985_v26  ;;  %v1026_v20 = vld [vmem:[#allocation5 + $0x1be8] sm:$0xff]  ;;  %v1033_v54 = vld [vmem:[#allocation5 + $0x1c20] sm:$0xff] }
 0x211   :  { %6665 = vmatprep.subr.bf16.mxu0 %v10897_v38  ;;  %7009 = vmatprep.subr.bf16.mxu1 %v10899_v17  ;;  %v10947_v38 = vcombine.high %v982_v28, %v986_v32  ;;  %v989_v17 = vld [vmem:[#allocation5 + $0x1ac0] sm:$0xff]  ;;  %v1030_v26 = vld [vmem:[#allocation5 + $0x1c08] sm:$0xff] }
 0x212   :  { %v10952_v52 = vcombine.low %v989_v17, %v993_v18 }
 0x214   :  { %6666 = vmatpush1.bf16.msra.mxu0 %v10896_v42  ;;  %7010 = vmatpush1.bf16.msra.mxu1 %v10898_v44  ;;  %v10946_v42 = vcombine.low %v982_v28, %v986_v32  ;;  %v10953_v44 = vcombine.high %v989_v17, %v993_v18  ;;  %v1034_v28 = vld [vmem:[#allocation5 + $0x1c28] sm:$0xff]  ;;  %v1041_v17 = vld [vmem:[#allocation5 + $0x1c60] sm:$0xff] }
 0x215   :  { %6667 = vmatprep.subr.bf16.mxu0 %v10905_v47  ;;  %7011 = vmatprep.subr.bf16.mxu1 %v10907_v48  ;;  %v10955_v47 = vcombine.high %v990_v4, %v994_v5  ;;  %v997_v48 = vld [vmem:[#allocation5 + $0x1b00] sm:$0xff]  ;;  %v1038_v18 = vld [vmem:[#allocation5 + $0x1c48] sm:$0xff] }
 0x216   :  { %v10960_v62 = vcombine.low %v997_v48, %v1001_v49 }
 0x218   :  { %6668 = vmatpush1.bf16.msra.mxu0 %v10904_v55  ;;  %7012 = vmatpush1.bf16.msra.mxu1 %v10906_v56  ;;  %v10954_v55 = vcombine.low %v990_v4, %v994_v5  ;;  %v10961_v56 = vcombine.high %v997_v48, %v1001_v49  ;;  %v12482_v4 = vcombine.low %v12468_v1, %v12470_v3  ;;  %v1042_v5 = vld [vmem:[#allocation5 + $0x1c68] sm:$0xff] }
 0x219   :  { %6669 = vmatprep.subr.bf16.mxu0 %v10913_v27  ;;  %7013 = vmatprep.subr.bf16.mxu1 %v10915_v29  ;;  %v10963_v27 = vcombine.high %v998_v50, %v1002_v51  ;;  %v1005_v29 = vld [vmem:[#allocation5 + $0x1b40] sm:$0xff]  ;;  %v11003_v49 = vcombine.high %v1038_v18, %v1042_v5  ;;  %v1046_v1 = vld [vmem:[#allocation5 + $0x1c88] sm:$0xff] }
 0x21a   :  { %v10968_v33 = vcombine.low %v1005_v29, %v1009_v59  ;;  %v1050_v3 = vld [vmem:[#allocation5 + $0x1ca8] sm:$0xff] }
 0x21c   :  { %6670 = vmatpush1.bf16.msra.mxu0 %v10912_v0  ;;  %7014 = vmatpush1.bf16.msra.mxu1 %v10914_v6  ;;  %v10962_v0 = vcombine.low %v998_v50, %v1002_v51  ;;  %v10969_v6 = vcombine.high %v1005_v29, %v1009_v59  ;;  %v1045_v50 = vld [vmem:[#allocation5 + $0x1c80] sm:$0xff]  ;;  %v11011_v29 = vcombine.high %v1046_v1, %v1050_v3 }
 0x21d   :  { %6671 = vmatprep.subr.bf16.mxu0 %v10921_v7  ;;  %7015 = vmatprep.subr.bf16.mxu1 %v10923_v8  ;;  %v10971_v7 = vcombine.high %v1006_v60, %v1010_v61  ;;  %v1013_v8 = vld [vmem:[#allocation5 + $0x1b80] sm:$0xff] }
 0x21e   :  { %v10976_v21 = vcombine.low %v1013_v8, %v1017_v9  ;;  %v1049_v51 = vld [vmem:[#allocation5 + $0x1ca0] sm:$0xff] }
 0x21f   :  { %v1053_v59 = vld [vmem:[#allocation5 + $0x1cc0] sm:$0xff] }
 0x220   :  { %6672 = vmatpush1.bf16.msra.mxu0 %v10920_v34  ;;  %7016 = vmatpush1.bf16.msra.mxu1 %v10922_v45  ;;  %v10970_v34 = vcombine.low %v1006_v60, %v1010_v61  ;;  %v10977_v45 = vcombine.high %v1013_v8, %v1017_v9  ;;  %v1057_v60 = vld [vmem:[#allocation5 + $0x1ce0] sm:$0xff]  ;;  %v1054_v61 = vld [vmem:[#allocation5 + $0x1cc8] sm:$0xff] }
 0x221   :  { %6673 = vmatprep.subr.bf16.mxu0 %v10929_v13  ;;  %7017 = vmatprep.subr.bf16.mxu1 %v10931_v14  ;;  %v10979_v13 = vcombine.high %v1014_v10, %v1018_v11  ;;  %v1021_v14 = vld [vmem:[#allocation5 + $0x1bc0] sm:$0xff] }
 0x222   :  { %v10984_v32 = vcombine.low %v1021_v14, %v1025_v16  ;;  %v1061_v9 = vld [vmem:[#allocation5 + $0x1d00] sm:$0xff] }
 0x224   :  { %6674 = vmatpush1.bf16.msra.mxu0 %v10928_v22  ;;  %7018 = vmatpush1.bf16.msra.mxu1 %v10930_v23  ;;  %v10978_v22 = vcombine.low %v1014_v10, %v1018_v11  ;;  %v10985_v23 = vcombine.high %v1021_v14, %v1025_v16  ;;  %v1065_v10 = vld [vmem:[#allocation5 + $0x1d20] sm:$0xff]  ;;  %v1062_v11 = vld [vmem:[#allocation5 + $0x1d08] sm:$0xff] }
 0x225   :  { %6675 = vmatprep.subr.bf16.mxu0 %v10937_v24  ;;  %7019 = vmatprep.subr.bf16.mxu1 %v10939_v25  ;;  %v10987_v24 = vcombine.high %v1022_v19, %v1026_v20  ;;  %v1029_v25 = vld [vmem:[#allocation5 + $0x1c00] sm:$0xff] }
 0x226   :  { %v1069_v16 = vld [vmem:[#allocation5 + $0x1d40] sm:$0xff] }
 0x228   :  { %6676 = vmatpush1.bf16.msra.mxu0 %v10936_v35  ;;  %7020 = vmatpush1.bf16.msra.mxu1 %v10938_v36  ;;  %v10986_v35 = vcombine.low %v1022_v19, %v1026_v20  ;;  %v10993_v36 = vcombine.high %v1029_v25, %v1033_v54  ;;  %v1073_v19 = vld [vmem:[#allocation5 + $0x1d60] sm:$0xff]  ;;  %v1070_v20 = vld [vmem:[#allocation5 + $0x1d48] sm:$0xff] }
 0x229   :  { %6677 = vmatprep.subr.bf16.mxu0 %v10945_v37  ;;  %7021 = vmatprep.subr.bf16.mxu1 %v10947_v38  ;;  %v10995_v37 = vcombine.high %v1030_v26, %v1034_v28  ;;  %v1037_v38 = vld [vmem:[#allocation5 + $0x1c40] sm:$0xff] }
 0x22a   :  { %v11001_v48 = vcombine.high %v1037_v38, %v1041_v17 }
 0x22c   :  { %6678 = vmatpush1.bf16.msra.mxu0 %v10944_v41  ;;  %7022 = vmatpush1.bf16.msra.mxu1 %v10946_v42  ;;  %v12484_v41 = vld [vmem:[#allocation2 + $0x38] sm:$0xff] }
 0x22d   :  { %6679 = vmatprep.subr.bf16.mxu0 %v10953_v44  ;;  %7023 = vmatprep.subr.bf16.mxu1 %v10955_v47  ;;  %v12486_v42 = vld [vmem:[#allocation2 + $0x78] sm:$0xff]  ;;  %v10992_v44 = vcombine.low %v1029_v25, %v1033_v54  ;;  %v10994_v47 = vcombine.low %v1030_v26, %v1034_v28  ;;  %v1077_v54 = vld [vmem:[#allocation5 + $0x1d80] sm:$0xff]  ;;  %v1078_v28 = vld [vmem:[#allocation5 + $0x1d88] sm:$0xff] }
 0x22e   :  { %v1081_v26 = vld [vmem:[#allocation5 + $0x1da0] sm:$0xff] }
 0x230   :  { %6680 = vmatpush1.bf16.msra.mxu0 %v10952_v52  ;;  %7024 = vmatpush1.bf16.msra.mxu1 %v10954_v55  ;;  %v12490_v52 = vcombine.high %v12484_v41, %v12486_v42  ;;  %v11000_v55 = vcombine.low %v1037_v38, %v1041_v17  ;;  %v1085_v17 = vld [vmem:[#allocation5 + $0x1dc0] sm:$0xff] }
 0x231   :  { %6681 = vmatprep.subr.bf16.mxu0 %v10961_v56  ;;  %7025 = vmatprep.subr.bf16.mxu1 %v10963_v27  ;;  %v11002_v56 = vcombine.low %v1038_v18, %v1042_v5  ;;  %v11009_v27 = vcombine.high %v1045_v50, %v1049_v51  ;;  %v1089_v18 = vld [vmem:[#allocation5 + $0x1de0] sm:$0xff]  ;;  %v1086_v5 = vld [vmem:[#allocation5 + $0x1dc8] sm:$0xff] }
 0x234   :  { %6682 = vmatpush1.bf16.msra.mxu0 %v10960_v62  ;;  %7026 = vmatpush1.bf16.msra.mxu1 %v10962_v0  ;;  %v1058_v62 = vld [vmem:[#allocation5 + $0x1ce8] sm:$0xff]  ;;  %v11008_v0 = vcombine.low %v1045_v50, %v1049_v51  ;;  %v1093_v51 = vld [vmem:[#allocation5 + $0x1e00] sm:$0xff] }
 0x235   :  { %6683 = vmatprep.subr.bf16.mxu0 %v10969_v6  ;;  %7027 = vmatprep.subr.bf16.mxu1 %v10971_v7  ;;  %v11010_v6 = vcombine.low %v1046_v1, %v1050_v3  ;;  %v11017_v7 = vcombine.high %v1053_v59, %v1057_v60  ;;  %v11019_v8 = vcombine.high %v1054_v61, %v1058_v62  ;;  %v1097_v1 = vld [vmem:[#allocation5 + $0x1e20] sm:$0xff]  ;;  %v1094_v3 = vld [vmem:[#allocation5 + $0x1e08] sm:$0xff] }
 0x238   :  { %6684 = vmatpush1.bf16.msra.mxu0 %v10968_v33  ;;  %7028 = vmatpush1.bf16.msra.mxu1 %v10970_v34  ;;  %v1066_v33 = vld [vmem:[#allocation5 + $0x1d28] sm:$0xff]  ;;  %v11016_v34 = vcombine.low %v1053_v59, %v1057_v60  ;;  %v1101_v60 = vld [vmem:[#allocation5 + $0x1e40] sm:$0xff] }
 0x239   :  { %6685 = vmatprep.subr.bf16.mxu0 %v10977_v45  ;;  %7029 = vmatprep.subr.bf16.mxu1 %v10979_v13  ;;  %v11018_v45 = vcombine.low %v1054_v61, %v1058_v62  ;;  %v11025_v13 = vcombine.high %v1061_v9, %v1065_v10  ;;  %v11027_v14 = vcombine.high %v1062_v11, %v1066_v33  ;;  %v1105_v61 = vld [vmem:[#allocation5 + $0x1e60] sm:$0xff]  ;;  %v1102_v62 = vld [vmem:[#allocation5 + $0x1e48] sm:$0xff] }
 0x23c   :  { %6686 = vmatpush1.bf16.msra.mxu0 %v10976_v21  ;;  %7030 = vmatpush1.bf16.msra.mxu1 %v10978_v22  ;;  %v1074_v21 = vld [vmem:[#allocation5 + $0x1d68] sm:$0xff]  ;;  %v11024_v22 = vcombine.low %v1061_v9, %v1065_v10  ;;  %v1109_v10 = vld [vmem:[#allocation5 + $0x1e80] sm:$0xff] }
 0x23d   :  { %6687 = vmatprep.subr.bf16.mxu0 %v10985_v23  ;;  %7031 = vmatprep.subr.bf16.mxu1 %v10987_v24  ;;  %v11026_v23 = vcombine.low %v1062_v11, %v1066_v33  ;;  %v11033_v24 = vcombine.high %v1069_v16, %v1073_v19  ;;  %v11035_v25 = vcombine.high %v1070_v20, %v1074_v21  ;;  %v1113_v11 = vld [vmem:[#allocation5 + $0x1ea0] sm:$0xff]  ;;  %v1110_v33 = vld [vmem:[#allocation5 + $0x1e88] sm:$0xff] }
 0x240   :  { %6688 = vmatpush1.bf16.msra.mxu0 %v10984_v32  ;;  %7032 = vmatpush1.bf16.msra.mxu1 %v10986_v35  ;;  %v1082_v32 = vld [vmem:[#allocation5 + $0x1da8] sm:$0xff]  ;;  %v11032_v35 = vcombine.low %v1069_v16, %v1073_v19  ;;  %v1117_v19 = vld [vmem:[#allocation5 + $0x1ec0] sm:$0xff] }
 0x241   :  { %6700 = vmatprep.subr.bf16.mxu0 %v10993_v36  ;;  %7044 = vmatprep.subr.bf16.mxu1 %v10995_v37  ;;  %v11034_v36 = vcombine.low %v1070_v20, %v1074_v21  ;;  %v11041_v37 = vcombine.high %v1077_v54, %v1081_v26  ;;  %v11043_v38 = vcombine.high %v1078_v28, %v1082_v32  ;;  %v1121_v20 = vld [vmem:[#allocation5 + $0x1ee0] sm:$0xff]  ;;  %v1118_v21 = vld [vmem:[#allocation5 + $0x1ec8] sm:$0xff] }
 0x243   :  { %6690 = vmatmul.mubr.bf16.vlgmr.msra.gmra.mrb[0].mxu0 %v12482_v4  ;;  %7034 = vmatmul.mubr.bf16.vlgmr.msra.gmra.mrb[0].mxu1 %v12482_v4 }
 0x244   :  { %6701 = vmatpush1.bf16.msra.mxu0 %v10992_v44  ;;  %7045 = vmatpush1.bf16.msra.mxu1 %v10994_v47  ;;  %v1090_v44 = vld [vmem:[#allocation5 + $0x1de8] sm:$0xff]  ;;  %v11040_v47 = vcombine.low %v1077_v54, %v1081_v26  ;;  %v1125_v26 = vld [vmem:[#allocation5 + $0x1f00] sm:$0xff] }
 0x245   :  { %6702 = vmatprep.subr.bf16.mxu0 %v11001_v48  ;;  %7046 = vmatprep.subr.bf16.mxu1 %v11003_v49  ;;  %v11042_v48 = vcombine.low %v1078_v28, %v1082_v32  ;;  %v11049_v49 = vcombine.high %v1085_v17, %v1089_v18  ;;  %v11051_v50 = vcombine.high %v1086_v5, %v1090_v44  ;;  %v1129_v28 = vld [vmem:[#allocation5 + $0x1f20] sm:$0xff]  ;;  %v1126_v32 = vld [vmem:[#allocation5 + $0x1f08] sm:$0xff] }
 0x246   :  { %6732 = vmatprep.mubr.bf16.mxu0 %v12490_v52  ;;  %7076 = vmatprep.mubr.bf16.mxu1 %v12490_v52 }
 0x248   :  { %6703 = vmatpush1.bf16.msra.mxu0 %v11000_v55  ;;  %7047 = vmatpush1.bf16.msra.mxu1 %v11002_v56  ;;  %v1098_v55 = vld [vmem:[#allocation5 + $0x1e28] sm:$0xff]  ;;  %v11048_v56 = vcombine.low %v1085_v17, %v1089_v18  ;;  %v1133_v18 = vld [vmem:[#allocation5 + $0x1f40] sm:$0xff] }
 0x249   :  { %6704 = vmatprep.subr.bf16.mxu0 %v11009_v27  ;;  %7048 = vmatprep.subr.bf16.mxu1 %v11011_v29  ;;  %v11050_v27 = vcombine.low %v1086_v5, %v1090_v44  ;;  %v11057_v29 = vcombine.high %v1093_v51, %v1097_v1  ;;  %v11059_v59 = vcombine.high %v1094_v3, %v1098_v55  ;;  %v1137_v5 = vld [vmem:[#allocation5 + $0x1f60] sm:$0xff]  ;;  %v1134_v44 = vld [vmem:[#allocation5 + $0x1f48] sm:$0xff] }
 0x24c   :  { %6705 = vmatpush1.bf16.msra.mxu0 %v11008_v0  ;;  %7049 = vmatpush1.bf16.msra.mxu1 %v11010_v6  ;;  %v1106_v0 = vld [vmem:[#allocation5 + $0x1e68] sm:$0xff]  ;;  %v11056_v6 = vcombine.low %v1093_v51, %v1097_v1  ;;  %v1141_v1 = vld [vmem:[#allocation5 + $0x1f80] sm:$0xff] }
 0x24d   :  { %6706 = vmatprep.subr.bf16.mxu0 %v11017_v7  ;;  %7050 = vmatprep.subr.bf16.mxu1 %v11019_v8  ;;  %v11058_v7 = vcombine.low %v1094_v3, %v1098_v55  ;;  %v11065_v8 = vcombine.high %v1101_v60, %v1105_v61  ;;  %v11067_v9 = vcombine.high %v1102_v62, %v1106_v0  ;;  %v1145_v3 = vld [vmem:[#allocation5 + $0x1fa0] sm:$0xff]  ;;  %v1142_v55 = vld [vmem:[#allocation5 + $0x1f88] sm:$0xff] }
 0x250   :  { %6707 = vmatpush1.bf16.msra.mxu0 %v11016_v34  ;;  %7051 = vmatpush1.bf16.msra.mxu1 %v11018_v45  ;;  %v1114_v34 = vld [vmem:[#allocation5 + $0x1ea8] sm:$0xff]  ;;  %v11064_v45 = vcombine.low %v1101_v60, %v1105_v61  ;;  %v1149_v61 = vld [vmem:[#allocation5 + $0x1fc0] sm:$0xff] }
 0x251   :  { %6708 = vmatprep.subr.bf16.mxu0 %v11025_v13  ;;  %7052 = vmatprep.subr.bf16.mxu1 %v11027_v14  ;;  %v11066_v13 = vcombine.low %v1102_v62, %v1106_v0  ;;  %v11073_v14 = vcombine.high %v1109_v10, %v1113_v11  ;;  %v11075_v16 = vcombine.high %v1110_v33, %v1114_v34  ;;  %v1153_v62 = vld [vmem:[#allocation5 + $0x1fe0] sm:$0xff]  ;;  %v1150_v0 = vld [vmem:[#allocation5 + $0x1fc8] sm:$0xff] }
 0x254   :  { %6709 = vmatpush1.bf16.msra.mxu0 %v11024_v22  ;;  %7053 = vmatpush1.bf16.msra.mxu1 %v11026_v23  ;;  %v1122_v22 = vld [vmem:[#allocation5 + $0x1ee8] sm:$0xff]  ;;  %v11072_v23 = vcombine.low %v1109_v10, %v1113_v11  ;;  %v135_v11 = vld [vmem:[#allocation5 + $0x10] sm:$0xff] }
 0x255   :  { %6710 = vmatprep.subr.bf16.mxu0 %v11033_v24  ;;  %7054 = vmatprep.subr.bf16.mxu1 %v11035_v25  ;;  %v11074_v24 = vcombine.low %v1110_v33, %v1114_v34  ;;  %v11081_v25 = vcombine.high %v1117_v19, %v1121_v20  ;;  %v11083_v54 = vcombine.high %v1118_v21, %v1122_v22  ;;  %v139_v33 = vld [vmem:[#allocation5 + $0x30] sm:$0xff]  ;;  %v136_v34 = vld [vmem:[#allocation5 + $0x18] sm:$0xff] }
 0x258   :  { %6711 = vmatpush1.bf16.msra.mxu0 %v11032_v35  ;;  %7055 = vmatpush1.bf16.msra.mxu1 %v11034_v36  ;;  %v1130_v35 = vld [vmem:[#allocation5 + $0x1f28] sm:$0xff]  ;;  %v11080_v36 = vcombine.low %v1117_v19, %v1121_v20  ;;  %v143_v20 = vld [vmem:[#allocation5 + $0x50] sm:$0xff] }
 0x259   :  { %6712 = vmatprep.subr.bf16.mxu0 %v11041_v37  ;;  %7056 = vmatprep.subr.bf16.mxu1 %v11043_v38  ;;  %v11082_v37 = vcombine.low %v1118_v21, %v1122_v22  ;;  %v11089_v38 = vcombine.high %v1125_v26, %v1129_v28  ;;  %v11091_v17 = vcombine.high %v1126_v32, %v1130_v35  ;;  %v147_v21 = vld [vmem:[#allocation5 + $0x70] sm:$0xff] }
 0x25a   :  { %v12498_v22 = vcombine.low %v12484_v41, %v12486_v42  ;;  %v10108_v41 = vcombine.low %v143_v20, %v147_v21 }
 0x25c   :  { %6713 = vmatpush1.bf16.msra.mxu0 %v11040_v47  ;;  %7057 = vmatpush1.bf16.msra.mxu1 %v11042_v48  ;;  %v1138_v47 = vld [vmem:[#allocation5 + $0x1f68] sm:$0xff]  ;;  %v11088_v48 = vcombine.low %v1125_v26, %v1129_v28  ;;  %v10109_v26 = vcombine.high %v143_v20, %v147_v21  ;;  %v195_v20 = vld [vmem:[#allocation5 + $0x1f0] sm:$0xff]  ;;  %v192_v21 = vld [vmem:[#allocation5 + $0x1d8] sm:$0xff] }
 0x25d   :  { %6714 = vmatprep.subr.bf16.mxu0 %v11049_v49  ;;  %7058 = vmatprep.subr.bf16.mxu1 %v11051_v50  ;;  %v11090_v49 = vcombine.low %v1126_v32, %v1130_v35  ;;  %v11097_v50 = vcombine.high %v1133_v18, %v1137_v5  ;;  %v11099_v51 = vcombine.high %v1134_v44, %v1138_v47  ;;  %v151_v32 = vld [vmem:[#allocation5 + $0x90] sm:$0xff] }
 0x25e   :  { %v155_v35 = vld [vmem:[#allocation5 + $0xb0] sm:$0xff] }
 0x260   :  { %6715 = vmatpush1.bf16.msra.mxu0 %v11048_v56  ;;  %7059 = vmatpush1.bf16.msra.mxu1 %v11050_v27  ;;  %v1146_v56 = vld [vmem:[#allocation5 + $0x1fa8] sm:$0xff]  ;;  %v11096_v27 = vcombine.low %v1133_v18, %v1137_v5  ;;  %v159_v18 = vld [vmem:[#allocation5 + $0xd0] sm:$0xff] }
 0x261   :  { %6716 = vmatprep.subr.bf16.mxu0 %v11057_v29  ;;  %7060 = vmatprep.subr.bf16.mxu1 %v11059_v59  ;;  %v11098_v29 = vcombine.low %v1134_v44, %v1138_v47  ;;  %v11105_v59 = vcombine.high %v1141_v1, %v1145_v3  ;;  %v11107_v60 = vcombine.high %v1142_v55, %v1146_v56  ;;  %v163_v5 = vld [vmem:[#allocation5 + $0xf0] sm:$0xff]  ;;  %v160_v44 = vld [vmem:[#allocation5 + $0xd8] sm:$0xff] }
 0x262   :  { %v164_v47 = vld [vmem:[#allocation5 + $0xf8] sm:$0xff] }
 0x264   :  { %6717 = vmatpush1.bf16.msra.mxu0 %v11056_v6  ;;  %7061 = vmatpush1.bf16.msra.mxu1 %v11058_v7  ;;  %v1154_v6 = vld [vmem:[#allocation5 + $0x1fe8] sm:$0xff]  ;;  %v11104_v7 = vcombine.low %v1141_v1, %v1145_v3  ;;  %v167_v1 = vld [vmem:[#allocation5 + $0x110] sm:$0xff] }
 0x265   :  { %6718 = vmatprep.subr.bf16.mxu0 %v11065_v8  ;;  %7062 = vmatprep.subr.bf16.mxu1 %v11067_v9  ;;  %v11106_v8 = vcombine.low %v1142_v55, %v1146_v56  ;;  %v11113_v9 = vcombine.high %v1149_v61, %v1153_v62  ;;  %v11115_v10 = vcombine.high %v1150_v0, %v1154_v6  ;;  %v171_v3 = vld [vmem:[#allocation5 + $0x130] sm:$0xff]  ;;  %v168_v55 = vld [vmem:[#allocation5 + $0x118] sm:$0xff] }
 0x266   :  { %v172_v56 = vld [vmem:[#allocation5 + $0x138] sm:$0xff] }
 0x268   :  { %6719 = vmatpush1.bf16.msra.mxu0 %v11064_v45  ;;  %7063 = vmatpush1.bf16.msra.mxu1 %v11066_v13  ;;  %v140_v45 = vld [vmem:[#allocation5 + $0x38] sm:$0xff]  ;;  %v11112_v13 = vcombine.low %v1149_v61, %v1153_v62  ;;  %v179_v61 = vld [vmem:[#allocation5 + $0x170] sm:$0xff] }
 0x269   :  { %6720 = vmatprep.subr.bf16.mxu0 %v11073_v14  ;;  %7064 = vmatprep.subr.bf16.mxu1 %v11075_v16  ;;  %v11114_v14 = vcombine.low %v1150_v0, %v1154_v6  ;;  %v10101_v16 = vcombine.high %v135_v11, %v139_v33  ;;  %v10103_v19 = vcombine.high %v136_v34, %v140_v45  ;;  %v176_v62 = vld [vmem:[#allocation5 + $0x158] sm:$0xff] }
 0x26a   :  { %v180_v0 = vld [vmem:[#allocation5 + $0x178] sm:$0xff]  ;;  %v10132_v6 = vcombine.low %v167_v1, %v171_v3 }
 0x26c   :  { %6721 = vmatpush1.bf16.msra.mxu0 %v11072_v23  ;;  %7065 = vmatpush1.bf16.msra.mxu1 %v11074_v24  ;;  %v144_v23 = vld [vmem:[#allocation5 + $0x58] sm:$0xff] }
 0x26d   :  { %6722 = vmatprep.subr.bf16.mxu0 %v11081_v25  ;;  %7066 = vmatprep.subr.bf16.mxu1 %v11083_v54  ;;  %v148_v24 = vld [vmem:[#allocation5 + $0x78] sm:$0xff]  ;;  %v10100_v25 = vcombine.low %v135_v11, %v139_v33  ;;  %v10102_v54 = vcombine.low %v136_v34, %v140_v45  ;;  %v187_v11 = vld [vmem:[#allocation5 + $0x1b0] sm:$0xff] }
 0x26e   :  { %v10111_v28 = vcombine.high %v144_v23, %v148_v24  ;;  %v10110_v42 = vcombine.low %v144_v23, %v148_v24  ;;  %v184_v33 = vld [vmem:[#allocation5 + $0x198] sm:$0xff] }
 0x26f   :  { %v188_v34 = vld [vmem:[#allocation5 + $0x1b8] sm:$0xff] }
 0x270   :  { %6723 = vmatpush1.bf16.msra.mxu0 %v11080_v36  ;;  %7067 = vmatpush1.bf16.msra.mxu1 %v11082_v37  ;;  %v152_v36 = vld [vmem:[#allocation5 + $0x98] sm:$0xff] }
 0x271   :  { %6724 = vmatprep.subr.bf16.mxu0 %v11089_v38  ;;  %7068 = vmatprep.subr.bf16.mxu1 %v11091_v17  ;;  %v156_v37 = vld [vmem:[#allocation5 + $0xb8] sm:$0xff]  ;;  %v10117_v38 = vcombine.high %v151_v32, %v155_v35 }
 0x272   :  { %v10119_v17 = vcombine.high %v152_v36, %v156_v37  ;;  %v196_v23 = vld [vmem:[#allocation5 + $0x1f8] sm:$0xff] }
 0x274   :  { %6725 = vmatpush1.bf16.msra.mxu0 %v11088_v48  ;;  %7069 = vmatpush1.bf16.msra.mxu1 %v11090_v49  ;;  %v10116_v48 = vcombine.low %v151_v32, %v155_v35  ;;  %v10118_v49 = vcombine.low %v152_v36, %v156_v37  ;;  %v203_v32 = vld [vmem:[#allocation5 + $0x230] sm:$0xff]  ;;  %v200_v35 = vld [vmem:[#allocation5 + $0x218] sm:$0xff] }
 0x275   :  { %6726 = vmatprep.subr.bf16.mxu0 %v11097_v50  ;;  %7070 = vmatprep.subr.bf16.mxu1 %v11099_v51  ;;  %v10125_v50 = vcombine.high %v159_v18, %v163_v5  ;;  %v10127_v51 = vcombine.high %v160_v44, %v164_v47  ;;  %v204_v36 = vld [vmem:[#allocation5 + $0x238] sm:$0xff] }
 0x278   :  { %6727 = vmatpush1.bf16.msra.mxu0 %v11096_v27  ;;  %7071 = vmatpush1.bf16.msra.mxu1 %v11098_v29  ;;  %v10124_v27 = vcombine.low %v159_v18, %v163_v5  ;;  %v10126_v29 = vcombine.low %v160_v44, %v164_v47  ;;  %v211_v18 = vld [vmem:[#allocation5 + $0x270] sm:$0xff]  ;;  %v208_v5 = vld [vmem:[#allocation5 + $0x258] sm:$0xff] }
 0x279   :  { %6728 = vmatprep.subr.bf16.mxu0 %v11105_v59  ;;  %7072 = vmatprep.subr.bf16.mxu1 %v11107_v60  ;;  %v10133_v59 = vcombine.high %v167_v1, %v171_v3  ;;  %v175_v60 = vld [vmem:[#allocation5 + $0x150] sm:$0xff]  ;;  %v212_v44 = vld [vmem:[#allocation5 + $0x278] sm:$0xff] }
 0x27a   :  { %v10140_v45 = vcombine.low %v175_v60, %v179_v61  ;;  %v219_v1 = vld [vmem:[#allocation5 + $0x2b0] sm:$0xff]  ;;  %v216_v3 = vld [vmem:[#allocation5 + $0x298] sm:$0xff] }
 0x27c   :  { %6729 = vmatpush1.bf16.msra.mxu0 %v11104_v7  ;;  %7073 = vmatpush1.bf16.msra.mxu1 %v11106_v8  ;;  %v10134_v7 = vcombine.low %v168_v55, %v172_v56  ;;  %v10141_v8 = vcombine.high %v175_v60, %v179_v61  ;;  %v227_v60 = vld [vmem:[#allocation5 + $0x2f0] sm:$0xff]  ;;  %v224_v61 = vld [vmem:[#allocation5 + $0x2d8] sm:$0xff] }
 0x27d   :  { %6730 = vmatprep.subr.bf16.mxu0 %v11113_v9  ;;  %7074 = vmatprep.subr.bf16.mxu1 %v11115_v10  ;;  %v10143_v9 = vcombine.high %v176_v62, %v180_v0  ;;  %v183_v10 = vld [vmem:[#allocation5 + $0x190] sm:$0xff] }
 0x27e   :  { %v10148_v24 = vcombine.low %v183_v10, %v187_v11 }
 0x280   :  { %6731 = vmatpush1.bf16.msra.mxu0 %v11112_v13  ;;  %7075 = vmatpush1.bf16.msra.mxu1 %v11114_v14  ;;  %v10142_v13 = vcombine.low %v176_v62, %v180_v0  ;;  %v10149_v14 = vcombine.high %v183_v10, %v187_v11  ;;  %v228_v62 = vld [vmem:[#allocation5 + $0x2f8] sm:$0xff]  ;;  %v235_v10 = vld [vmem:[#allocation5 + $0x330] sm:$0xff] }
 0x281   :  { %7087 = vmatprep.subr.bf16.mxu0 %v10101_v16  ;;  %7431 = vmatprep.subr.bf16.mxu1 %v10103_v19  ;;  %v10151_v16 = vcombine.high %v184_v33, %v188_v34  ;;  %v191_v19 = vld [vmem:[#allocation5 + $0x1d0] sm:$0xff]  ;;  %v232_v11 = vld [vmem:[#allocation5 + $0x318] sm:$0xff] }
 0x282   :  { %v10156_v37 = vcombine.low %v191_v19, %v195_v20 }
 0x283   :  { %6733 = vmatmul.mubr.bf16.vlgmr.msra.gmra.mrb[0].mxu0 %v12498_v22  ;;  %7077 = vmatmul.mubr.bf16.vlgmr.msra.gmra.mrb[0].mxu1 %v12498_v22 }
 0x284   :  { %7088 = vmatpush1.bf16.msra.mxu0 %v10100_v25  ;;  %7432 = vmatpush1.bf16.msra.mxu1 %v10102_v54  ;;  %v10150_v25 = vcombine.low %v184_v33, %v188_v34  ;;  %v10157_v54 = vcombine.high %v191_v19, %v195_v20  ;;  %v236_v33 = vld [vmem:[#allocation5 + $0x338] sm:$0xff]  ;;  %v243_v19 = vld [vmem:[#allocation5 + $0x370] sm:$0xff] }
 0x285   :  { %7089 = vmatprep.subr.bf16.mxu0 %v10109_v26  ;;  %7433 = vmatprep.subr.bf16.mxu1 %v10111_v28  ;;  %v10159_v26 = vcombine.high %v192_v21, %v196_v23  ;;  %v199_v28 = vld [vmem:[#allocation5 + $0x210] sm:$0xff]  ;;  %v240_v20 = vld [vmem:[#allocation5 + $0x358] sm:$0xff] }
 0x286   :  { %7119 = vmatprep.mubr.bf16.mxu0 %v12380_v58  ;;  %7463 = vmatprep.mubr.bf16.mxu1 %v12380_v58  ;;  %v10135_v58 = vcombine.high %v168_v55, %v172_v56  ;;  %v10164_v47 = vcombine.low %v199_v28, %v203_v32  ;;  %v220_v55 = vld [vmem:[#allocation5 + $0x2b8] sm:$0xff] }
 0x288   :  { %7090 = vmatpush1.bf16.msra.mxu0 %v10108_v41  ;;  %7434 = vmatpush1.bf16.msra.mxu1 %v10110_v42  ;;  %v10158_v41 = vcombine.low %v192_v21, %v196_v23  ;;  %v10165_v42 = vcombine.high %v199_v28, %v203_v32  ;;  %v244_v21 = vld [vmem:[#allocation5 + $0x378] sm:$0xff]  ;;  %v251_v28 = vld [vmem:[#allocation5 + $0x3b0] sm:$0xff] }
 0x289   :  { %7091 = vmatprep.subr.bf16.mxu0 %v10117_v38  ;;  %7435 = vmatprep.subr.bf16.mxu1 %v10119_v17  ;;  %v10167_v38 = vcombine.high %v200_v35, %v204_v36  ;;  %v207_v17 = vld [vmem:[#allocation5 + $0x250] sm:$0xff]  ;;  %v248_v32 = vld [vmem:[#allocation5 + $0x398] sm:$0xff] }
 0x28a   :  { %v10172_v56 = vcombine.low %v207_v17, %v211_v18 }
 0x28c   :  { %7092 = vmatpush1.bf16.msra.mxu0 %v10116_v48  ;;  %7436 = vmatpush1.bf16.msra.mxu1 %v10118_v49  ;;  %v10166_v48 = vcombine.low %v200_v35, %v204_v36  ;;  %v10173_v49 = vcombine.high %v207_v17, %v211_v18  ;;  %v252_v35 = vld [vmem:[#allocation5 + $0x3b8] sm:$0xff]  ;;  %v259_v17 = vld [vmem:[#allocation5 + $0x3f0] sm:$0xff] }
 0x28d   :  { %7093 = vmatprep.subr.bf16.mxu0 %v10125_v50  ;;  %7437 = vmatprep.subr.bf16.mxu1 %v10127_v51  ;;  %v10175_v50 = vcombine.high %v208_v5, %v212_v44  ;;  %v215_v51 = vld [vmem:[#allocation5 + $0x290] sm:$0xff]  ;;  %v256_v18 = vld [vmem:[#allocation5 + $0x3d8] sm:$0xff] }
 0x28e   :  { %v10180_v0 = vcombine.low %v215_v51, %v219_v1 }
 0x290   :  { %7094 = vmatpush1.bf16.msra.mxu0 %v10124_v27  ;;  %7438 = vmatpush1.bf16.msra.mxu1 %v10126_v29  ;;  %v10174_v27 = vcombine.low %v208_v5, %v212_v44  ;;  %v10181_v29 = vcombine.high %v215_v51, %v219_v1  ;;  %v260_v5 = vld [vmem:[#allocation5 + $0x3f8] sm:$0xff]  ;;  %v267_v51 = vld [vmem:[#allocation5 + $0x430] sm:$0xff] }
 0x291   :  { %7095 = vmatprep.subr.bf16.mxu0 %v10133_v59  ;;  %7439 = vmatprep.subr.bf16.mxu1 %v10135_v58  ;;  %v10183_v59 = vcombine.high %v216_v3, %v220_v55  ;;  %v223_v58 = vld [vmem:[#allocation5 + $0x2d0] sm:$0xff]  ;;  %v264_v1 = vld [vmem:[#allocation5 + $0x418] sm:$0xff] }
 0x292   :  { %v10188_v34 = vcombine.low %v223_v58, %v227_v60 }
 0x294   :  { %7096 = vmatpush1.bf16.msra.mxu0 %v10132_v6  ;;  %7440 = vmatpush1.bf16.msra.mxu1 %v10134_v7  ;;  %v10182_v6 = vcombine.low %v216_v3, %v220_v55  ;;  %v10189_v7 = vcombine.high %v223_v58, %v227_v60  ;;  %v268_v3 = vld [vmem:[#allocation5 + $0x438] sm:$0xff]  ;;  %v275_v58 = vld [vmem:[#allocation5 + $0x470] sm:$0xff] }
 0x295   :  { %7097 = vmatprep.subr.bf16.mxu0 %v10141_v8  ;;  %7441 = vmatprep.subr.bf16.mxu1 %v10143_v9  ;;  %v10191_v8 = vcombine.high %v224_v61, %v228_v62  ;;  %v231_v9 = vld [vmem:[#allocation5 + $0x310] sm:$0xff]  ;;  %v272_v60 = vld [vmem:[#allocation5 + $0x458] sm:$0xff] }
 0x296   :  { %v10196_v23 = vcombine.low %v231_v9, %v235_v10 }
 0x298   :  { %7098 = vmatpush1.bf16.msra.mxu0 %v10140_v45  ;;  %7442 = vmatpush1.bf16.msra.mxu1 %v10142_v13  ;;  %v10190_v45 = vcombine.low %v224_v61, %v228_v62  ;;  %v10197_v13 = vcombine.high %v231_v9, %v235_v10  ;;  %v276_v61 = vld [vmem:[#allocation5 + $0x478] sm:$0xff]  ;;  %v283_v9 = vld [vmem:[#allocation5 + $0x4b0] sm:$0xff] }
 0x299   :  { %7099 = vmatprep.subr.bf16.mxu0 %v10149_v14  ;;  %7443 = vmatprep.subr.bf16.mxu1 %v10151_v16  ;;  %v10199_v14 = vcombine.high %v232_v11, %v236_v33  ;;  %v239_v16 = vld [vmem:[#allocation5 + $0x350] sm:$0xff]  ;;  %v280_v10 = vld [vmem:[#allocation5 + $0x498] sm:$0xff] }
 0x29a   :  { %v10204_v36 = vcombine.low %v239_v16, %v243_v19 }
 0x29c   :  { %7100 = vmatpush1.bf16.msra.mxu0 %v10148_v24  ;;  %7444 = vmatpush1.bf16.msra.mxu1 %v10150_v25  ;;  %v10198_v24 = vcombine.low %v232_v11, %v236_v33  ;;  %v10205_v25 = vcombine.high %v239_v16, %v243_v19  ;;  %v284_v11 = vld [vmem:[#allocation5 + $0x4b8] sm:$0xff]  ;;  %v291_v16 = vld [vmem:[#allocation5 + $0x4f0] sm:$0xff] }
 0x29d   :  { %7101 = vmatprep.subr.bf16.mxu0 %v10157_v54  ;;  %7445 = vmatprep.subr.bf16.mxu1 %v10159_v26  ;;  %v10207_v54 = vcombine.high %v240_v20, %v244_v21  ;;  %v247_v26 = vld [vmem:[#allocation5 + $0x390] sm:$0xff]  ;;  %v288_v19 = vld [vmem:[#allocation5 + $0x4d8] sm:$0xff] }
 0x29e   :  { %v10212_v44 = vcombine.low %v247_v26, %v251_v28 }
 0x2a0   :  { %7102 = vmatpush1.bf16.msra.mxu0 %v10156_v37  ;;  %7446 = vmatpush1.bf16.msra.mxu1 %v10158_v41  ;;  %v10206_v37 = vcombine.low %v240_v20, %v244_v21  ;;  %v10213_v41 = vcombine.high %v247_v26, %v251_v28  ;;  %v292_v20 = vld [vmem:[#allocation5 + $0x4f8] sm:$0xff] }
 0x2a1   :  { %7103 = vmatprep.subr.bf16.mxu0 %v10165_v42  ;;  %7447 = vmatprep.subr.bf16.mxu1 %v10167_v38  ;;  %v10215_v42 = vcombine.high %v248_v32, %v252_v35  ;;  %v255_v38 = vld [vmem:[#allocation5 + $0x3d0] sm:$0xff]  ;;  %v296_v26 = vld [vmem:[#allocation5 + $0x518] sm:$0xff] }
 0x2a2   :  { %v10220_v55 = vcombine.low %v255_v38, %v259_v17  ;;  %v300_v28 = vld [vmem:[#allocation5 + $0x538] sm:$0xff] }
 0x2a4   :  { %7104 = vmatpush1.bf16.msra.mxu0 %v10164_v47  ;;  %7448 = vmatpush1.bf16.msra.mxu1 %v10166_v48  ;;  %v10214_v47 = vcombine.low %v248_v32, %v252_v35  ;;  %v10221_v48 = vcombine.high %v255_v38, %v259_v17  ;;  %v10254_v35 = vcombine.low %v288_v19, %v292_v20  ;;  %v308_v38 = vld [vmem:[#allocation5 + $0x578] sm:$0xff] }
 0x2a5   :  { %7105 = vmatprep.subr.bf16.mxu0 %v10173_v49  ;;  %7449 = vmatprep.subr.bf16.mxu1 %v10175_v50  ;;  %v10223_v49 = vcombine.high %v256_v18, %v260_v5  ;;  %v263_v50 = vld [vmem:[#allocation5 + $0x410] sm:$0xff] }
 0x2a6   :  { %v10228_v62 = vcombine.low %v263_v50, %v267_v51 }
 0x2a8   :  { %7106 = vmatpush1.bf16.msra.mxu0 %v10172_v56  ;;  %7450 = vmatpush1.bf16.msra.mxu1 %v10174_v27  ;;  %v10222_v56 = vcombine.low %v256_v18, %v260_v5  ;;  %v10229_v27 = vcombine.high %v263_v50, %v267_v51  ;;  %v10262_v18 = vcombine.low %v296_v26, %v300_v28  ;;  %v316_v50 = vld [vmem:[#allocation5 + $0x5b8] sm:$0xff] }
 0x2a9   :  { %7107 = vmatprep.subr.bf16.mxu0 %v10181_v29  ;;  %7451 = vmatprep.subr.bf16.mxu1 %v10183_v59  ;;  %v10231_v29 = vcombine.high %v264_v1, %v268_v3  ;;  %v271_v59 = vld [vmem:[#allocation5 + $0x450] sm:$0xff] }
 0x2aa   :  { %v10236_v33 = vcombine.low %v271_v59, %v275_v58 }
 0x2ac   :  { %7108 = vmatpush1.bf16.msra.mxu0 %v10180_v0  ;;  %7452 = vmatpush1.bf16.msra.mxu1 %v10182_v6  ;;  %v10230_v0 = vcombine.low %v264_v1, %v268_v3  ;;  %v10237_v6 = vcombine.high %v271_v59, %v275_v58  ;;  %v324_v59 = vld [vmem:[#allocation5 + $0x5f8] sm:$0xff] }
 0x2ad   :  { %7109 = vmatprep.subr.bf16.mxu0 %v10189_v7  ;;  %7453 = vmatprep.subr.bf16.mxu1 %v10191_v8  ;;  %v10239_v7 = vcombine.high %v272_v60, %v276_v61  ;;  %v279_v8 = vld [vmem:[#allocation5 + $0x490] sm:$0xff] }
 0x2ae   :  { %v10244_v21 = vcombine.low %v279_v8, %v283_v9 }
 0x2b0   :  { %7110 = vmatpush1.bf16.msra.mxu0 %v10188_v34  ;;  %7454 = vmatpush1.bf16.msra.mxu1 %v10190_v45  ;;  %v10238_v34 = vcombine.low %v272_v60, %v276_v61  ;;  %v10245_v45 = vcombine.high %v279_v8, %v283_v9  ;;  %v332_v8 = vld [vmem:[#allocation5 + $0x638] sm:$0xff] }
 0x2b1   :  { %7111 = vmatprep.subr.bf16.mxu0 %v10197_v13  ;;  %7455 = vmatprep.subr.bf16.mxu1 %v10199_v14  ;;  %v10247_v13 = vcombine.high %v280_v10, %v284_v11  ;;  %v287_v14 = vld [vmem:[#allocation5 + $0x4d0] sm:$0xff] }
 0x2b2   :  { %v10252_v32 = vcombine.low %v287_v14, %v291_v16 }
 0x2b4   :  { %7112 = vmatpush1.bf16.msra.mxu0 %v10196_v23  ;;  %7456 = vmatpush1.bf16.msra.mxu1 %v10198_v24  ;;  %v10253_v23 = vcombine.high %v287_v14, %v291_v16  ;;  %v10255_v24 = vcombine.high %v288_v19, %v292_v20  ;;  %v340_v14 = vld [vmem:[#allocation5 + $0x678] sm:$0xff] }
 0x2b5   :  { %7113 = vmatprep.subr.bf16.mxu0 %v10205_v25  ;;  %7457 = vmatprep.subr.bf16.mxu1 %v10207_v54  ;;  %v295_v25 = vld [vmem:[#allocation5 + $0x510] sm:$0xff] }
 0x2b6   :  { %v299_v54 = vld [vmem:[#allocation5 + $0x530] sm:$0xff] }
 0x2b7   :  { %v10260_v17 = vcombine.low %v295_v25, %v299_v54 }
 0x2b8   :  { %7114 = vmatpush1.bf16.msra.mxu0 %v10204_v36  ;;  %7458 = vmatpush1.bf16.msra.mxu1 %v10206_v37  ;;  %v10261_v36 = vcombine.high %v295_v25, %v299_v54  ;;  %v303_v37 = vld [vmem:[#allocation5 + $0x550] sm:$0xff]  ;;  %v348_v25 = vld [vmem:[#allocation5 + $0x6b8] sm:$0xff] }
 0x2b9   :  { %7115 = vmatprep.subr.bf16.mxu0 %v10213_v41  ;;  %7459 = vmatprep.subr.bf16.mxu1 %v10215_v42  ;;  %v307_v41 = vld [vmem:[#allocation5 + $0x570] sm:$0xff]  ;;  %v304_v42 = vld [vmem:[#allocation5 + $0x558] sm:$0xff] }
 0x2ba   :  { %v10269_v5 = vcombine.high %v303_v37, %v307_v41  ;;  %v10268_v51 = vcombine.low %v303_v37, %v307_v41  ;;  %v10270_v1 = vcombine.low %v304_v42, %v308_v38  ;;  %v356_v37 = vld [vmem:[#allocation5 + $0x6f8] sm:$0xff] }
 0x2bc   :  { %7116 = vmatpush1.bf16.msra.mxu0 %v10212_v44  ;;  %7460 = vmatpush1.bf16.msra.mxu1 %v10214_v47  ;;  %v10271_v44 = vcombine.high %v304_v42, %v308_v38  ;;  %v311_v47 = vld [vmem:[#allocation5 + $0x590] sm:$0xff] }
 0x2bd   :  { %7117 = vmatprep.subr.bf16.mxu0 %v10221_v48  ;;  %7461 = vmatprep.subr.bf16.mxu1 %v10223_v49  ;;  %v315_v48 = vld [vmem:[#allocation5 + $0x5b0] sm:$0xff]  ;;  %v312_v49 = vld [vmem:[#allocation5 + $0x598] sm:$0xff] }
 0x2be   :  { %v10277_v3 = vcombine.high %v311_v47, %v315_v48  ;;  %v10276_v58 = vcombine.low %v311_v47, %v315_v48  ;;  %v10278_v60 = vcombine.low %v312_v49, %v316_v50  ;;  %v364_v47 = vld [vmem:[#allocation5 + $0x738] sm:$0xff] }
 0x2c0   :  { %7118 = vmatpush1.bf16.msra.mxu0 %v10220_v55  ;;  %7462 = vmatpush1.bf16.msra.mxu1 %v10222_v56  ;;  %v10279_v55 = vcombine.high %v312_v49, %v316_v50  ;;  %v319_v56 = vld [vmem:[#allocation5 + $0x5d0] sm:$0xff] }
 0x2c1   :  { %7130 = vmatprep.subr.bf16.mxu0 %v10229_v27  ;;  %7474 = vmatprep.subr.bf16.mxu1 %v10231_v29  ;;  %v323_v27 = vld [vmem:[#allocation5 + $0x5f0] sm:$0xff]  ;;  %v320_v29 = vld [vmem:[#allocation5 + $0x5d8] sm:$0xff] }
 0x2c2   :  { %v10285_v61 = vcombine.high %v319_v56, %v323_v27  ;;  %v10284_v9 = vcombine.low %v319_v56, %v323_v27  ;;  %v372_v56 = vld [vmem:[#allocation5 + $0x778] sm:$0xff] }
 0x2c3   :  { %7120 = vmatmul.mubr.bf16.vlgmr.msra.gmra.mrb[4].mxu0 %v12386_v15  ;;  %7464 = vmatmul.mubr.bf16.vlgmr.msra.gmra.mrb[4].mxu1 %v12386_v15  ;;  %v10246_v15 = vcombine.low %v280_v10, %v284_v11  ;;  %v10286_v10 = vcombine.low %v320_v29, %v324_v59 }
 0x2c4   :  { %7131 = vmatpush1.bf16.msra.mxu0 %v10228_v62  ;;  %7475 = vmatpush1.bf16.msra.mxu1 %v10230_v0  ;;  %v10287_v62 = vcombine.high %v320_v29, %v324_v59  ;;  %v327_v0 = vld [vmem:[#allocation5 + $0x610] sm:$0xff] }
 0x2c5   :  { %7132 = vmatprep.subr.bf16.mxu0 %v10237_v6  ;;  %7476 = vmatprep.subr.bf16.mxu1 %v10239_v7  ;;  %v331_v6 = vld [vmem:[#allocation5 + $0x630] sm:$0xff]  ;;  %v328_v7 = vld [vmem:[#allocation5 + $0x618] sm:$0xff] }
 0x2c6   :  { %7162 = vmatprep.mubr.bf16.mxu0 %v12394_v53  ;;  %7506 = vmatprep.mubr.bf16.mxu1 %v12394_v53  ;;  %v10263_v53 = vcombine.high %v296_v26, %v300_v28  ;;  %v10293_v11 = vcombine.high %v327_v0, %v331_v6  ;;  %v10292_v16 = vcombine.low %v327_v0, %v331_v6  ;;  %v380_v0 = vld [vmem:[#allocation5 + $0x7b8] sm:$0xff] }
 0x2c7   :  { %v10294_v19 = vcombine.low %v328_v7, %v332_v8 }
 0x2c8   :  { %7133 = vmatpush1.bf16.msra.mxu0 %v10236_v33  ;;  %7477 = vmatpush1.bf16.msra.mxu1 %v10238_v34  ;;  %v10295_v33 = vcombine.high %v328_v7, %v332_v8  ;;  %v335_v34 = vld [vmem:[#allocation5 + $0x650] sm:$0xff] }
 0x2c9   :  { %7134 = vmatprep.subr.bf16.mxu0 %v10245_v45  ;;  %7478 = vmatprep.subr.bf16.mxu1 %v10247_v13  ;;  %v339_v45 = vld [vmem:[#allocation5 + $0x670] sm:$0xff]  ;;  %v336_v13 = vld [vmem:[#allocation5 + $0x658] sm:$0xff] }
 0x2ca   :  { %v10301_v20 = vcombine.high %v335_v34, %v339_v45  ;;  %v10300_v54 = vcombine.low %v335_v34, %v339_v45  ;;  %v10302_v26 = vcombine.low %v336_v13, %v340_v14  ;;  %v388_v34 = vld [vmem:[#allocation5 + $0x7f8] sm:$0xff] }
 0x2cc   :  { %7135 = vmatpush1.bf16.msra.mxu0 %v10244_v21  ;;  %7479 = vmatpush1.bf16.msra.mxu1 %v10246_v15  ;;  %v10303_v21 = vcombine.high %v336_v13, %v340_v14  ;;  %v343_v15 = vld [vmem:[#allocation5 + $0x690] sm:$0xff] }
 0x2cd   :  { %7136 = vmatprep.subr.bf16.mxu0 %v10253_v23  ;;  %7480 = vmatprep.subr.bf16.mxu1 %v10255_v24  ;;  %v347_v23 = vld [vmem:[#allocation5 + $0x6b0] sm:$0xff]  ;;  %v344_v24 = vld [vmem:[#allocation5 + $0x698] sm:$0xff] }
 0x2ce   :  { %v10309_v28 = vcombine.high %v343_v15, %v347_v23  ;;  %v10308_v41 = vcombine.low %v343_v15, %v347_v23  ;;  %v10310_v42 = vcombine.low %v344_v24, %v348_v25  ;;  %v396_v15 = vld [vmem:[#allocation5 + $0x838] sm:$0xff] }
 0x2d0   :  { %7137 = vmatpush1.bf16.msra.mxu0 %v10252_v32  ;;  %7481 = vmatpush1.bf16.msra.mxu1 %v10254_v35  ;;  %v10311_v32 = vcombine.high %v344_v24, %v348_v25  ;;  %v351_v35 = vld [vmem:[#allocation5 + $0x6d0] sm:$0xff] }
 0x2d1   :  { %7138 = vmatprep.subr.bf16.mxu0 %v10261_v36  ;;  %7482 = vmatprep.subr.bf16.mxu1 %v10263_v53  ;;  %v355_v36 = vld [vmem:[#allocation5 + $0x6f0] sm:$0xff]  ;;  %v352_v53 = vld [vmem:[#allocation5 + $0x6d8] sm:$0xff] }
 0x2d2   :  { %v10317_v38 = vcombine.high %v351_v35, %v355_v36  ;;  %v10316_v48 = vcombine.low %v351_v35, %v355_v36  ;;  %v10318_v49 = vcombine.low %v352_v53, %v356_v37  ;;  %v404_v35 = vld [vmem:[#allocation5 + $0x878] sm:$0xff] }
 0x2d4   :  { %7139 = vmatpush1.bf16.msra.mxu0 %v10260_v17  ;;  %7483 = vmatpush1.bf16.msra.mxu1 %v10262_v18  ;;  %v10319_v17 = vcombine.high %v352_v53, %v356_v37  ;;  %v359_v18 = vld [vmem:[#allocation5 + $0x710] sm:$0xff] }
 0x2d5   :  { %7140 = vmatprep.subr.bf16.mxu0 %v10269_v5  ;;  %7484 = vmatprep.subr.bf16.mxu1 %v10271_v44  ;;  %v363_v5 = vld [vmem:[#allocation5 + $0x730] sm:$0xff]  ;;  %v360_v44 = vld [vmem:[#allocation5 + $0x718] sm:$0xff] }
 0x2d6   :  { %v10325_v50 = vcombine.high %v359_v18, %v363_v5  ;;  %v10324_v27 = vcombine.low %v359_v18, %v363_v5  ;;  %v10326_v29 = vcombine.low %v360_v44, %v364_v47  ;;  %v412_v18 = vld [vmem:[#allocation5 + $0x8b8] sm:$0xff] }
 0x2d8   :  { %7141 = vmatpush1.bf16.msra.mxu0 %v10268_v51  ;;  %7485 = vmatpush1.bf16.msra.mxu1 %v10270_v1  ;;  %v10327_v51 = vcombine.high %v360_v44, %v364_v47  ;;  %v367_v1 = vld [vmem:[#allocation5 + $0x750] sm:$0xff] }
 0x2d9   :  { %7142 = vmatprep.subr.bf16.mxu0 %v10277_v3  ;;  %7486 = vmatprep.subr.bf16.mxu1 %v10279_v55  ;;  %v371_v3 = vld [vmem:[#allocation5 + $0x770] sm:$0xff]  ;;  %v368_v55 = vld [vmem:[#allocation5 + $0x758] sm:$0xff] }
 0x2da   :  { %v10333_v59 = vcombine.high %v367_v1, %v371_v3  ;;  %v10332_v6 = vcombine.low %v367_v1, %v371_v3  ;;  %v10334_v7 = vcombine.low %v368_v55, %v372_v56  ;;  %v420_v1 = vld [vmem:[#allocation5 + $0x8f8] sm:$0xff] }
 0x2dc   :  { %7143 = vmatpush1.bf16.msra.mxu0 %v10276_v58  ;;  %7487 = vmatpush1.bf16.msra.mxu1 %v10278_v60  ;;  %v10335_v58 = vcombine.high %v368_v55, %v372_v56  ;;  %v375_v60 = vld [vmem:[#allocation5 + $0x790] sm:$0xff] }
 0x2dd   :  { %7144 = vmatprep.subr.bf16.mxu0 %v10285_v61  ;;  %7488 = vmatprep.subr.bf16.mxu1 %v10287_v62  ;;  %v379_v61 = vld [vmem:[#allocation5 + $0x7b0] sm:$0xff]  ;;  %v376_v62 = vld [vmem:[#allocation5 + $0x798] sm:$0xff] }
 0x2de   :  { %v10341_v8 = vcombine.high %v375_v60, %v379_v61  ;;  %v10340_v45 = vcombine.low %v375_v60, %v379_v61  ;;  %v10342_v13 = vcombine.low %v376_v62, %v380_v0 }
 0x2e0   :  { %7145 = vmatpush1.bf16.msra.mxu0 %v10284_v9  ;;  %7489 = vmatpush1.bf16.msra.mxu1 %v10286_v10  ;;  %v10343_v9 = vcombine.high %v376_v62, %v380_v0  ;;  %v383_v10 = vld [vmem:[#allocation5 + $0x7d0] sm:$0xff] }
 0x2e1   :  { %7146 = vmatprep.subr.bf16.mxu0 %v10293_v11  ;;  %7490 = vmatprep.subr.bf16.mxu1 %v10295_v33  ;;  %v387_v11 = vld [vmem:[#allocation5 + $0x7f0] sm:$0xff]  ;;  %v384_v33 = vld [vmem:[#allocation5 + $0x7d8] sm:$0xff] }
 0x2e2   :  { %v10349_v14 = vcombine.high %v383_v10, %v387_v11  ;;  %v10348_v23 = vcombine.low %v383_v10, %v387_v11  ;;  %v10350_v24 = vcombine.low %v384_v33, %v388_v34  ;;  %v431_v0 = vld [vmem:[#allocation5 + $0x950] sm:$0xff] }
 0x2e4   :  { %7147 = vmatpush1.bf16.msra.mxu0 %v10292_v16  ;;  %7491 = vmatpush1.bf16.msra.mxu1 %v10294_v19  ;;  %v10351_v16 = vcombine.high %v384_v33, %v388_v34  ;;  %v391_v19 = vld [vmem:[#allocation5 + $0x810] sm:$0xff] }
 0x2e5   :  { %7148 = vmatprep.subr.bf16.mxu0 %v10301_v20  ;;  %7492 = vmatprep.subr.bf16.mxu1 %v10303_v21  ;;  %v395_v20 = vld [vmem:[#allocation5 + $0x830] sm:$0xff]  ;;  %v392_v21 = vld [vmem:[#allocation5 + $0x818] sm:$0xff] }
 0x2e6   :  { %v10357_v25 = vcombine.high %v391_v19, %v395_v20  ;;  %v10356_v36 = vcombine.low %v391_v19, %v395_v20  ;;  %v10358_v53 = vcombine.low %v392_v21, %v396_v15  ;;  %v439_v34 = vld [vmem:[#allocation5 + $0x990] sm:$0xff] }
 0x2e8   :  { %7149 = vmatpush1.bf16.msra.mxu0 %v10300_v54  ;;  %7493 = vmatpush1.bf16.msra.mxu1 %v10302_v26  ;;  %v10359_v54 = vcombine.high %v392_v21, %v396_v15  ;;  %v399_v26 = vld [vmem:[#allocation5 + $0x850] sm:$0xff] }
 0x2e9   :  { %7150 = vmatprep.subr.bf16.mxu0 %v10309_v28  ;;  %7494 = vmatprep.subr.bf16.mxu1 %v10311_v32  ;;  %v403_v28 = vld [vmem:[#allocation5 + $0x870] sm:$0xff]  ;;  %v400_v32 = vld [vmem:[#allocation5 + $0x858] sm:$0xff] }
 0x2ea   :  { %v10365_v37 = vcombine.high %v399_v26, %v403_v28  ;;  %v10364_v5 = vcombine.low %v399_v26, %v403_v28  ;;  %v10366_v44 = vcombine.low %v400_v32, %v404_v35  ;;  %v447_v15 = vld [vmem:[#allocation5 + $0x9d0] sm:$0xff] }
 0x2ec   :  { %7151 = vmatpush1.bf16.msra.mxu0 %v10308_v41  ;;  %7495 = vmatpush1.bf16.msra.mxu1 %v10310_v42  ;;  %v10367_v41 = vcombine.high %v400_v32, %v404_v35  ;;  %v407_v42 = vld [vmem:[#allocation5 + $0x890] sm:$0xff] }
 0x2ed   :  { %7152 = vmatprep.subr.bf16.mxu0 %v10317_v38  ;;  %7496 = vmatprep.subr.bf16.mxu1 %v10319_v17  ;;  %v411_v38 = vld [vmem:[#allocation5 + $0x8b0] sm:$0xff]  ;;  %v408_v17 = vld [vmem:[#allocation5 + $0x898] sm:$0xff] }
 0x2ee   :  { %v10373_v47 = vcombine.high %v407_v42, %v411_v38  ;;  %v10372_v3 = vcombine.low %v407_v42, %v411_v38  ;;  %v455_v35 = vld [vmem:[#allocation5 + $0xa10] sm:$0xff] }
 0x2f0   :  { %7153 = vmatpush1.bf16.msra.mxu0 %v10316_v48  ;;  %7497 = vmatpush1.bf16.msra.mxu1 %v10318_v49  ;;  %v10375_v48 = vcombine.high %v408_v17, %v412_v18  ;;  %v415_v49 = vld [vmem:[#allocation5 + $0x8d0] sm:$0xff] }
 0x2f1   :  { %7154 = vmatprep.subr.bf16.mxu0 %v10325_v50  ;;  %7498 = vmatprep.subr.bf16.mxu1 %v10327_v51  ;;  %v419_v50 = vld [vmem:[#allocation5 + $0x8f0] sm:$0xff]  ;;  %v416_v51 = vld [vmem:[#allocation5 + $0x8d8] sm:$0xff] }
 0x2f2   :  { %v10381_v55 = vcombine.high %v415_v49, %v419_v50  ;;  %v10383_v56 = vcombine.high %v416_v51, %v420_v1  ;;  %v10380_v60 = vcombine.low %v415_v49, %v419_v50  ;;  %v10382_v61 = vcombine.low %v416_v51, %v420_v1  ;;  %v471_v1 = vld [vmem:[#allocation5 + $0xa90] sm:$0xff] }
 0x2f4   :  { %7155 = vmatpush1.bf16.msra.mxu0 %v10324_v27  ;;  %7499 = vmatpush1.bf16.msra.mxu1 %v10326_v29  ;;  %v423_v27 = vld [vmem:[#allocation5 + $0x910] sm:$0xff] }
 0x2f5   :  { %7156 = vmatprep.subr.bf16.mxu0 %v10333_v59  ;;  %7500 = vmatprep.subr.bf16.mxu1 %v10335_v58  ;;  %v427_v29 = vld [vmem:[#allocation5 + $0x930] sm:$0xff]  ;;  %v424_v59 = vld [vmem:[#allocation5 + $0x918] sm:$0xff] }
 0x2f6   :  { %v428_v58 = vld [vmem:[#allocation5 + $0x938] sm:$0xff]  ;;  %v10389_v62 = vcombine.high %v423_v27, %v427_v29 }
 0x2f7   :  { %v10390_v10 = vcombine.low %v424_v59, %v428_v58 }
 0x2f8   :  { %7157 = vmatpush1.bf16.msra.mxu0 %v10332_v6  ;;  %7501 = vmatpush1.bf16.msra.mxu1 %v10334_v7  ;;  %v435_v6 = vld [vmem:[#allocation5 + $0x970] sm:$0xff]  ;;  %v432_v7 = vld [vmem:[#allocation5 + $0x958] sm:$0xff] }
 0x2f9   :  { %7158 = vmatprep.subr.bf16.mxu0 %v10341_v8  ;;  %7502 = vmatprep.subr.bf16.mxu1 %v10343_v9  ;;  %v436_v8 = vld [vmem:[#allocation5 + $0x978] sm:$0xff]  ;;  %v10388_v9 = vcombine.low %v423_v27, %v427_v29  ;;  %v10397_v11 = vcombine.high %v431_v0, %v435_v6 }
 0x2fa   :  { %v10399_v33 = vcombine.high %v432_v7, %v436_v8  ;;  %v10398_v19 = vcombine.low %v432_v7, %v436_v8  ;;  %v487_v8 = vld [vmem:[#allocation5 + $0xb10] sm:$0xff] }
 0x2fc   :  { %7159 = vmatpush1.bf16.msra.mxu0 %v10340_v45  ;;  %7503 = vmatpush1.bf16.msra.mxu1 %v10342_v13  ;;  %v443_v45 = vld [vmem:[#allocation5 + $0x9b0] sm:$0xff]  ;;  %v440_v13 = vld [vmem:[#allocation5 + $0x998] sm:$0xff] }
 0x2fd   :  { %7160 = vmatprep.subr.bf16.mxu0 %v10349_v14  ;;  %7504 = vmatprep.subr.bf16.mxu1 %v10351_v16  ;;  %v444_v14 = vld [vmem:[#allocation5 + $0x9b8] sm:$0xff]  ;;  %v10396_v16 = vcombine.low %v431_v0, %v435_v6  ;;  %v10405_v20 = vcombine.high %v439_v34, %v443_v45 }
 0x2fe   :  { %v10407_v21 = vcombine.high %v440_v13, %v444_v14  ;;  %v10406_v26 = vcombine.low %v440_v13, %v444_v14  ;;  %v495_v14 = vld [vmem:[#allocation5 + $0xb50] sm:$0xff] }
 0x300   :  { %7161 = vmatpush1.bf16.msra.mxu0 %v10348_v23  ;;  %7505 = vmatpush1.bf16.msra.mxu1 %v10350_v24  ;;  %v451_v23 = vld [vmem:[#allocation5 + $0x9f0] sm:$0xff]  ;;  %v448_v24 = vld [vmem:[#allocation5 + $0x9d8] sm:$0xff] }
 0x301   :  { %7173 = vmatprep.subr.bf16.mxu0 %v10357_v25  ;;  %7517 = vmatprep.subr.bf16.mxu1 %v10359_v54  ;;  %v452_v25 = vld [vmem:[#allocation5 + $0x9f8] sm:$0xff]  ;;  %v10404_v54 = vcombine.low %v439_v34, %v443_v45  ;;  %v10413_v28 = vcombine.high %v447_v15, %v451_v23 }
 0x302   :  { %v10415_v32 = vcombine.high %v448_v24, %v452_v25  ;;  %v10414_v42 = vcombine.low %v448_v24, %v452_v25  ;;  %v503_v25 = vld [vmem:[#allocation5 + $0xb90] sm:$0xff] }
 0x303   :  { %7163 = vmatmul.mubr.bf16.vlgmr.msra.gmra.mrb[4].mxu0 %v12406_v30  ;;  %7507 = vmatmul.mubr.bf16.vlgmr.msra.gmra.mrb[4].mxu1 %v12406_v30  ;;  %v10374_v30 = vcombine.low %v408_v17, %v412_v18  ;;  %v463_v18 = vld [vmem:[#allocation5 + $0xa50] sm:$0xff] }
 0x304   :  { %7174 = vmatpush1.bf16.msra.mxu0 %v10356_v36  ;;  %7518 = vmatpush1.bf16.msra.mxu1 %v10358_v53  ;;  %v459_v36 = vld [vmem:[#allocation5 + $0xa30] sm:$0xff]  ;;  %v456_v53 = vld [vmem:[#allocation5 + $0xa18] sm:$0xff] }
 0x305   :  { %7175 = vmatprep.subr.bf16.mxu0 %v10365_v37  ;;  %7519 = vmatprep.subr.bf16.mxu1 %v10367_v41  ;;  %v460_v37 = vld [vmem:[#allocation5 + $0xa38] sm:$0xff]  ;;  %v10412_v41 = vcombine.low %v447_v15, %v451_v23  ;;  %v10421_v38 = vcombine.high %v455_v35, %v459_v36 }
 0x306   :  { %7205 = vmatprep.mubr.bf16.mxu0 %v12410_v39  ;;  %7549 = vmatprep.mubr.bf16.mxu1 %v12410_v39  ;;  %v10391_v39 = vcombine.high %v424_v59, %v428_v58  ;;  %v10423_v17 = vcombine.high %v456_v53, %v460_v37  ;;  %v10422_v49 = vcombine.low %v456_v53, %v460_v37  ;;  %v479_v58 = vld [vmem:[#allocation5 + $0xad0] sm:$0xff] }
 0x307   :  { %v511_v37 = vld [vmem:[#allocation5 + $0xbd0] sm:$0xff] }
 0x308   :  { %7176 = vmatpush1.bf16.msra.mxu0 %v10364_v5  ;;  %7520 = vmatpush1.bf16.msra.mxu1 %v10366_v44  ;;  %v467_v5 = vld [vmem:[#allocation5 + $0xa70] sm:$0xff]  ;;  %v464_v44 = vld [vmem:[#allocation5 + $0xa58] sm:$0xff] }
 0x309   :  { %7177 = vmatprep.subr.bf16.mxu0 %v10373_v47  ;;  %7521 = vmatprep.subr.bf16.mxu1 %v10375_v48  ;;  %v468_v47 = vld [vmem:[#allocation5 + $0xa78] sm:$0xff]  ;;  %v10420_v48 = vcombine.low %v455_v35, %v459_v36  ;;  %v10429_v50 = vcombine.high %v463_v18, %v467_v5 }
 0x30a   :  { %v10431_v51 = vcombine.high %v464_v44, %v468_v47  ;;  %v10430_v27 = vcombine.low %v464_v44, %v468_v47  ;;  %v519_v47 = vld [vmem:[#allocation5 + $0xc10] sm:$0xff] }
 0x30c   :  { %7178 = vmatpush1.bf16.msra.mxu0 %v10372_v3  ;;  %7522 = vmatpush1.bf16.msra.mxu1 %v10374_v30  ;;  %v475_v3 = vld [vmem:[#allocation5 + $0xab0] sm:$0xff]  ;;  %v472_v30 = vld [vmem:[#allocation5 + $0xa98] sm:$0xff] }
 0x30d   :  { %7179 = vmatprep.subr.bf16.mxu0 %v10381_v55  ;;  %7523 = vmatprep.subr.bf16.mxu1 %v10383_v56  ;;  %v476_v55 = vld [vmem:[#allocation5 + $0xab8] sm:$0xff]  ;;  %v10428_v56 = vcombine.low %v463_v18, %v467_v5  ;;  %v10437_v29 = vcombine.high %v471_v1, %v475_v3 }
 0x30e   :  { %v10439_v59 = vcombine.high %v472_v30, %v476_v55  ;;  %v10438_v0 = vcombine.low %v472_v30, %v476_v55  ;;  %v527_v55 = vld [vmem:[#allocation5 + $0xc50] sm:$0xff] }
 0x310   :  { %7180 = vmatpush1.bf16.msra.mxu0 %v10380_v60  ;;  %7524 = vmatpush1.bf16.msra.mxu1 %v10382_v61  ;;  %v483_v60 = vld [vmem:[#allocation5 + $0xaf0] sm:$0xff]  ;;  %v480_v61 = vld [vmem:[#allocation5 + $0xad8] sm:$0xff] }
 0x311   :  { %7181 = vmatprep.subr.bf16.mxu0 %v10389_v62  ;;  %7525 = vmatprep.subr.bf16.mxu1 %v10391_v39  ;;  %v484_v62 = vld [vmem:[#allocation5 + $0xaf8] sm:$0xff]  ;;  %v10436_v39 = vcombine.low %v471_v1, %v475_v3  ;;  %v10445_v6 = vcombine.high %v479_v58, %v483_v60 }
 0x312   :  { %v10447_v7 = vcombine.high %v480_v61, %v484_v62  ;;  %v10446_v34 = vcombine.low %v480_v61, %v484_v62  ;;  %v535_v62 = vld [vmem:[#allocation5 + $0xc90] sm:$0xff] }
 0x314   :  { %7182 = vmatpush1.bf16.msra.mxu0 %v10388_v9  ;;  %7526 = vmatpush1.bf16.msra.mxu1 %v10390_v10  ;;  %v491_v9 = vld [vmem:[#allocation5 + $0xb30] sm:$0xff]  ;;  %v488_v10 = vld [vmem:[#allocation5 + $0xb18] sm:$0xff] }
 0x315   :  { %7183 = vmatprep.subr.bf16.mxu0 %v10397_v11  ;;  %7527 = vmatprep.subr.bf16.mxu1 %v10399_v33  ;;  %v492_v11 = vld [vmem:[#allocation5 + $0xb38] sm:$0xff]  ;;  %v10444_v33 = vcombine.low %v479_v58, %v483_v60  ;;  %v10453_v45 = vcombine.high %v487_v8, %v491_v9 }
 0x316   :  { %v10455_v13 = vcombine.high %v488_v10, %v492_v11  ;;  %v10454_v15 = vcombine.low %v488_v10, %v492_v11  ;;  %v543_v11 = vld [vmem:[#allocation5 + $0xcd0] sm:$0xff] }
 0x318   :  { %7184 = vmatpush1.bf16.msra.mxu0 %v10396_v16  ;;  %7528 = vmatpush1.bf16.msra.mxu1 %v10398_v19  ;;  %v499_v16 = vld [vmem:[#allocation5 + $0xb70] sm:$0xff]  ;;  %v496_v19 = vld [vmem:[#allocation5 + $0xb58] sm:$0xff] }
 0x319   :  { %7185 = vmatprep.subr.bf16.mxu0 %v10405_v20  ;;  %7529 = vmatprep.subr.bf16.mxu1 %v10407_v21  ;;  %v500_v20 = vld [vmem:[#allocation5 + $0xb78] sm:$0xff]  ;;  %v10452_v21 = vcombine.low %v487_v8, %v491_v9  ;;  %v10461_v23 = vcombine.high %v495_v14, %v499_v16 }
 0x31a   :  { %v10463_v24 = vcombine.high %v496_v19, %v500_v20  ;;  %v10462_v35 = vcombine.low %v496_v19, %v500_v20  ;;  %v551_v20 = vld [vmem:[#allocation5 + $0xd10] sm:$0xff] }
 0x31c   :  { %7186 = vmatpush1.bf16.msra.mxu0 %v10404_v54  ;;  %7530 = vmatpush1.bf16.msra.mxu1 %v10406_v26  ;;  %v507_v54 = vld [vmem:[#allocation5 + $0xbb0] sm:$0xff]  ;;  %v504_v26 = vld [vmem:[#allocation5 + $0xb98] sm:$0xff] }
 0x31d   :  { %7187 = vmatprep.subr.bf16.mxu0 %v10413_v28  ;;  %7531 = vmatprep.subr.bf16.mxu1 %v10415_v32  ;;  %v508_v28 = vld [vmem:[#allocation5 + $0xbb8] sm:$0xff]  ;;  %v10460_v32 = vcombine.low %v495_v14, %v499_v16  ;;  %v10469_v36 = vcombine.high %v503_v25, %v507_v54 }
 0x31e   :  { %v10471_v53 = vcombine.high %v504_v26, %v508_v28  ;;  %v10470_v18 = vcombine.low %v504_v26, %v508_v28  ;;  %v559_v28 = vld [vmem:[#allocation5 + $0xd50] sm:$0xff] }
 0x320   :  { %7188 = vmatpush1.bf16.msra.mxu0 %v10412_v41  ;;  %7532 = vmatpush1.bf16.msra.mxu1 %v10414_v42  ;;  %v515_v41 = vld [vmem:[#allocation5 + $0xbf0] sm:$0xff]  ;;  %v512_v42 = vld [vmem:[#allocation5 + $0xbd8] sm:$0xff] }
 0x321   :  { %7189 = vmatprep.subr.bf16.mxu0 %v10421_v38  ;;  %7533 = vmatprep.subr.bf16.mxu1 %v10423_v17  ;;  %v516_v38 = vld [vmem:[#allocation5 + $0xbf8] sm:$0xff]  ;;  %v10468_v17 = vcombine.low %v503_v25, %v507_v54  ;;  %v10477_v5 = vcombine.high %v511_v37, %v515_v41 }
 0x322   :  { %v10479_v44 = vcombine.high %v512_v42, %v516_v38  ;;  %v10478_v1 = vcombine.low %v512_v42, %v516_v38 }
 0x324   :  { %7190 = vmatpush1.bf16.msra.mxu0 %v10420_v48  ;;  %7534 = vmatpush1.bf16.msra.mxu1 %v10422_v49  ;;  %v523_v48 = vld [vmem:[#allocation5 + $0xc30] sm:$0xff]  ;;  %v520_v49 = vld [vmem:[#allocation5 + $0xc18] sm:$0xff] }
 0x325   :  { %7191 = vmatprep.subr.bf16.mxu0 %v10429_v50  ;;  %7535 = vmatprep.subr.bf16.mxu1 %v10431_v51  ;;  %v524_v50 = vld [vmem:[#allocation5 + $0xc38] sm:$0xff]  ;;  %v10476_v51 = vcombine.low %v511_v37, %v515_v41  ;;  %v10485_v3 = vcombine.high %v519_v47, %v523_v48  ;;  %v1157_v41 = vld [vmem:[#allocation7] sm:$0xff] }
 0x326   :  { %v10487_v30 = vcombine.high %v520_v49, %v524_v50  ;;  %v10486_v58 = vcombine.low %v520_v49, %v524_v50  ;;  %v568_v50 = vld [vmem:[#allocation5 + $0xd98] sm:$0xff] }
 0x328   :  { %7192 = vmatpush1.bf16.msra.mxu0 %v10428_v56  ;;  %7536 = vmatpush1.bf16.msra.mxu1 %v10430_v27  ;;  %v531_v56 = vld [vmem:[#allocation5 + $0xc70] sm:$0xff]  ;;  %v528_v27 = vld [vmem:[#allocation5 + $0xc58] sm:$0xff] }
 0x329   :  { %7193 = vmatprep.subr.bf16.mxu0 %v10437_v29  ;;  %7537 = vmatprep.subr.bf16.mxu1 %v10439_v59  ;;  %v532_v29 = vld [vmem:[#allocation5 + $0xc78] sm:$0xff]  ;;  %v10484_v59 = vcombine.low %v519_v47, %v523_v48  ;;  %v10493_v60 = vcombine.high %v527_v55, %v531_v56  ;;  %v567_v47 = vld [vmem:[#allocation5 + $0xd90] sm:$0xff] }
 0x32a   :  { %v10495_v61 = vcombine.high %v528_v27, %v532_v29  ;;  %v10494_v8 = vcombine.low %v528_v27, %v532_v29  ;;  %v571_v48 = vld [vmem:[#allocation5 + $0xdb0] sm:$0xff] }
 0x32b   :  { %v10533_v27 = vcombine.high %v567_v47, %v571_v48 }
 0x32c   :  { %7194 = vmatpush1.bf16.msra.mxu0 %v10436_v39  ;;  %7538 = vmatpush1.bf16.msra.mxu1 %v10438_v0  ;;  %v539_v39 = vld [vmem:[#allocation5 + $0xcb0] sm:$0xff]  ;;  %v536_v0 = vld [vmem:[#allocation5 + $0xc98] sm:$0xff] }
 0x32d   :  { %7195 = vmatprep.subr.bf16.mxu0 %v10445_v6  ;;  %7539 = vmatprep.subr.bf16.mxu1 %v10447_v7  ;;  %v540_v6 = vld [vmem:[#allocation5 + $0xcb8] sm:$0xff]  ;;  %v10492_v7 = vcombine.low %v527_v55, %v531_v56  ;;  %v10501_v9 = vcombine.high %v535_v62, %v539_v39  ;;  %v10500_v14 = vcombine.low %v535_v62, %v539_v39 }
 0x32e   :  { %v10503_v10 = vcombine.high %v536_v0, %v540_v6 }
 0x330   :  { %7196 = vmatpush1.bf16.msra.mxu0 %v10444_v33  ;;  %7540 = vmatpush1.bf16.msra.mxu1 %v10446_v34  ;;  %v547_v33 = vld [vmem:[#allocation5 + $0xcf0] sm:$0xff]  ;;  %v544_v34 = vld [vmem:[#allocation5 + $0xcd8] sm:$0xff] }
 0x331   :  { %7197 = vmatprep.subr.bf16.mxu0 %v10453_v45  ;;  %7541 = vmatprep.subr.bf16.mxu1 %v10455_v13  ;;  %v548_v45 = vld [vmem:[#allocation5 + $0xcf8] sm:$0xff]  ;;  %v1159_v13 = vlaneseq  ;;  %v10509_v16 = vcombine.high %v543_v11, %v547_v33  ;;  %v10508_v25 = vcombine.low %v543_v11, %v547_v33  ;;  %v10532_v11 = vcombine.low %v567_v47, %v571_v48 }
 0x332   :  { %v10511_v19 = vcombine.high %v544_v34, %v548_v45  ;;  %v10510_v54 = vcombine.low %v544_v34, %v548_v45 }
 0x334   :  { %7198 = vmatpush1.bf16.msra.mxu0 %v10452_v21  ;;  %7542 = vmatpush1.bf16.msra.mxu1 %v10454_v15  ;;  %v555_v21 = vld [vmem:[#allocation5 + $0xd30] sm:$0xff]  ;;  %v552_v15 = vld [vmem:[#allocation5 + $0xd18] sm:$0xff] }
 0x335   :  { %7199 = vmatprep.subr.bf16.mxu0 %v10461_v23  ;;  %7543 = vmatprep.subr.bf16.mxu1 %v10463_v24  ;;  %v556_v23 = vld [vmem:[#allocation5 + $0xd38] sm:$0xff]  ;;  %v12516_v24 = vshrl.u32 %v1159_v13, 7  ;;  %v10516_v37 = vcombine.low %v551_v20, %v555_v21 }
 0x336   :  { %v10519_v26 = vcombine.high %v552_v15, %v556_v23 }
 0x337   :  { %v1169_v42 = vsub.s32 2, %v12516_v24  ;;  %v1165_v38 = vsub.s32 1, %v12516_v24 }
 0x338   :  { %7200 = vmatpush1.bf16.msra.mxu0 %v10460_v32  ;;  %7544 = vmatpush1.bf16.msra.mxu1 %v10462_v35  ;;  %v563_v32 = vld [vmem:[#allocation5 + $0xd70] sm:$0xff]  ;;  %v1161_v35 = vsub.s32 0, %v12516_v24 }
 0x339   :  { %7201 = vmatprep.subr.bf16.mxu0 %v10469_v36  ;;  %7545 = vmatprep.subr.bf16.mxu1 %v10471_v53  ;;  %v560_v36 = vld [vmem:[#allocation5 + $0xd58] sm:$0xff] }
 0x33a   :  { %v564_v53 = vld [vmem:[#allocation5 + $0xd78] sm:$0xff]  ;;  %v1162_v49 = vrot.slane %v1157_v41, %v1161_v35 }
 0x33b   :  { %v10526_v56 = vcombine.low %v560_v36, %v564_v53 }
 0x33c   :  { %7202 = vmatpush1.bf16.msra.mxu0 %v10468_v17  ;;  %7546 = vmatpush1.bf16.msra.mxu1 %v10470_v18  ;;  %v10518_v17 = vcombine.low %v552_v15, %v556_v23  ;;  %v1173_v18 = vsub.s32 3, %v12516_v24  ;;  %v583_v23 = vld [vmem:[#allocation5 + $0xe10] sm:$0xff] }
 0x33d   :  { %7203 = vmatprep.subr.bf16.mxu0 %v10477_v5  ;;  %7547 = vmatprep.subr.bf16.mxu1 %v10479_v44  ;;  %v10525_v5 = vcombine.high %v559_v28, %v563_v32  ;;  %v10527_v44 = vcombine.high %v560_v36, %v564_v53  ;;  %v588_v36 = vld [vmem:[#allocation5 + $0xe38] sm:$0xff] }
 0x33e   :  { %v1174_v55 = vrot.slane %v1157_v41, %v1173_v18 }
 0x340   :  { %7204 = vmatpush1.bf16.msra.mxu0 %v10476_v51  ;;  %7548 = vmatpush1.bf16.msra.mxu1 %v10478_v1  ;;  %v572_v51 = vld [vmem:[#allocation5 + $0xdb8] sm:$0xff]  ;;  %v1170_v1 = vrot.slane %v1157_v41, %v1169_v42 }
 0x341   :  { %7216 = vmatprep.subr.bf16.mxu0 %v10485_v3  ;;  %7560 = vmatprep.subr.bf16.mxu1 %v10487_v30  ;;  %v1166_v3 = vrot.slane %v1157_v41, %v1165_v38  ;;  %v10524_v30 = vcombine.low %v559_v28, %v563_v32  ;;  %v10534_v33 = vcombine.low %v568_v50, %v572_v51  ;;  %v584_v32 = vld [vmem:[#allocation5 + $0xe18] sm:$0xff] }
 0x343   :  { %7206 = vmatmul.mubr.bf16.vlgmr.msra.gmra.mrb[4].mxu0 %v12422_v46  ;;  %7550 = vmatmul.mubr.bf16.vlgmr.msra.gmra.mrb[4].mxu1 %v12422_v46  ;;  %v10502_v46 = vcombine.low %v536_v0, %v540_v6  ;;  %v576_v0 = vld [vmem:[#allocation5 + $0xdd8] sm:$0xff] }
 0x344   :  { %7217 = vmatpush1.bf16.msra.mxu0 %v10484_v59  ;;  %7561 = vmatpush1.bf16.msra.mxu1 %v10486_v58  ;;  %v10535_v59 = vcombine.high %v568_v50, %v572_v51  ;;  %v575_v58 = vld [vmem:[#allocation5 + $0xdd0] sm:$0xff]  ;;  %v580_v6 = vld [vmem:[#allocation5 + $0xdf8] sm:$0xff]  ;;  %v10551_v51 = vcombine.high %v584_v32, %v588_v36 }
 0x345   :  { %7218 = vmatprep.subr.bf16.mxu0 %v10493_v60  ;;  %7562 = vmatprep.subr.bf16.mxu1 %v10495_v61  ;;  %v579_v60 = vld [vmem:[#allocation5 + $0xdf0] sm:$0xff]  ;;  %v10543_v15 = vcombine.high %v576_v0, %v580_v6  ;;  %v10542_v28 = vcombine.low %v576_v0, %v580_v6 }
 0x346   :  { %7248 = vmatprep.mubr.bf16.mxu0 %v12426_v57  ;;  %7592 = vmatprep.mubr.bf16.mxu1 %v12426_v57  ;;  %v10517_v57 = vcombine.high %v551_v20, %v555_v21  ;;  %v10540_v21 = vcombine.low %v575_v58, %v579_v60 }
 0x348   :  { %7219 = vmatpush1.bf16.msra.mxu0 %v10492_v7  ;;  %7563 = vmatpush1.bf16.msra.mxu1 %v10494_v8 }
 0x349   :  { %7220 = vmatprep.subr.bf16.mxu0 %v10501_v9  ;;  %7564 = vmatprep.subr.bf16.mxu1 %v10503_v10 }
 0x34c   :  { %7221 = vmatpush1.bf16.msra.mxu0 %v10500_v14  ;;  %7565 = vmatpush1.bf16.msra.mxu1 %v10502_v46  ;;  %v10541_v46 = vcombine.high %v575_v58, %v579_v60  ;;  %v599_v60 = vld [vmem:[#allocation5 + $0xe90] sm:$0xff] }
 0x34d   :  { %7222 = vmatprep.subr.bf16.mxu0 %v10509_v16  ;;  %7566 = vmatprep.subr.bf16.mxu1 %v10511_v19 }
 0x350   :  { %7223 = vmatpush1.bf16.msra.mxu0 %v10508_v25  ;;  %7567 = vmatpush1.bf16.msra.mxu1 %v10510_v54  ;;  %v587_v25 = vld [vmem:[#allocation5 + $0xe30] sm:$0xff] }
 0x351   :  { %7224 = vmatprep.subr.bf16.mxu0 %v10517_v57  ;;  %7568 = vmatprep.subr.bf16.mxu1 %v10519_v26  ;;  %v10549_v48 = vcombine.high %v583_v23, %v587_v25 }
 0x354   :  { %7225 = vmatpush1.bf16.msra.mxu0 %v10516_v37  ;;  %7569 = vmatpush1.bf16.msra.mxu1 %v10518_v17 }
 0x355   :  { %7226 = vmatprep.subr.bf16.mxu0 %v10525_v5  ;;  %7570 = vmatprep.subr.bf16.mxu1 %v10527_v44 }
 0x356   :  { %v6734_v29 = vpop.f32.mrb[0].mxu0  ;;  %v7078_v62 = vpop.f32.mrb[0].mxu1 }
 0x357   :  { %v11453_v61 = vadd.f32 %v6734_v29, %v1162_v49  ;;  %v6736_v39 = vpop.f32.mrb[1].mxu0  ;;  %v11457_v7 = vadd.f32 %v7078_v62, %v1170_v1  ;;  %v7080_v9 = vpop.f32.mrb[1].mxu1  ;;  %v10550_v29 = vcombine.low %v584_v32, %v588_v36  ;;  %v600_v62 = vld [vmem:[#allocation5 + $0xe98] sm:$0xff] }
 0x358   :  { %v11454_v8 = vadd.f32 %v6736_v39, %v1166_v3  ;;  %v6738_v10 = vpop.f32.mrb[2].mxu0  ;;  %7227 = vmatpush1.bf16.msra.mxu0 %v10524_v30  ;;  %v11458_v34 = vadd.f32 %v7080_v9, %v1174_v55  ;;  %v7082_v13 = vpop.f32.mrb[2].mxu1  ;;  %7571 = vmatpush1.bf16.msra.mxu1 %v10526_v56  ;;  %v596_v56 = vld [vmem:[#allocation5 + $0xe78] sm:$0xff]  ;;  %v607_v9 = vld [vmem:[#allocation5 + $0xed0] sm:$0xff] }
 0x359   :  { %v11455_v45 = vadd.f32 %v6738_v10, %v1162_v49  ;;  %v6740_v14 = vpop.f32.mrb[3].mxu0  ;;  %7228 = vmatprep.subr.bf16.mxu0 %v10533_v27  ;;  %v11459_v16 = vadd.f32 %v7082_v13, %v1170_v1  ;;  %v7084_v20 = vpop.f32.mrb[3].mxu1  ;;  %7572 = vmatprep.subr.bf16.mxu1 %v10535_v59  ;;  %v7775_v54 = vmax.f32 %v11453_v61, 0.0  ;;  %v7777_v53 = vmax.f32 %v11457_v7, 0.0  ;;  %v591_v1 = vld [vmem:[#allocation5 + $0xe50] sm:$0xff]  ;;  %v604_v39 = vld [vmem:[#allocation5 + $0xeb8] sm:$0xff] }
 0x35a   :  { %v11456_v19 = vadd.f32 %v6740_v14, %v1166_v3  ;;  %v11460_v26 = vadd.f32 %v7084_v20, %v1174_v55  ;;  %v7776_v37 = vmax.f32 %v11454_v8, 0.0  ;;  %v7778_v5 = vmax.f32 %v11458_v34, 0.0  ;;  %v595_v3 = vld [vmem:[#allocation5 + $0xe70] sm:$0xff]  ;;  %v592_v55 = vld [vmem:[#allocation5 + $0xe58] sm:$0xff] }
 0x35b   :  { %v7783_v57 = vmax.f32 %v11455_v45, 0.0  ;;  %v7785_v41 = vmax.f32 %v11459_v16, 0.0  ;;  %v10548_v27 = vcombine.low %v583_v23, %v587_v25  ;;  %v10557_v59 = vcombine.high %v591_v1, %v595_v3  ;;  %v603_v61 = vld [vmem:[#allocation5 + $0xeb0] sm:$0xff]  ;;  %v620_v20 = vld [vmem:[#allocation5 + $0xf38] sm:$0xff] }
 0x35c   :  { %v7784_v17 = vmax.f32 %v11456_v19, 0.0  ;;  %7229 = vmatpush1.bf16.msra.mxu0 %v10532_v11  ;;  %v7786_v47 = vmax.f32 %v11460_v26, 0.0  ;;  %7573 = vmatpush1.bf16.msra.mxu1 %v10534_v33  ;;  %v10559_v58 = vcombine.high %v592_v55, %v596_v56  ;;  %v10556_v0 = vcombine.low %v591_v1, %v595_v3  ;;  %v611_v10 = vld [vmem:[#allocation5 + $0xef0] sm:$0xff]  ;;  %v608_v11 = vld [vmem:[#allocation5 + $0xed8] sm:$0xff] }
 0x35d   :  { %v12530_v44 = vpack.c.bf16 %v7783_v57, %v7775_v54  ;;  %7230 = vmatprep.subr.bf16.mxu0 %v10541_v46  ;;  %v12532_v49 = vpack.c.bf16 %v7785_v41, %v7777_v53  ;;  %7574 = vmatprep.subr.bf16.mxu1 %v10543_v15  ;;  %v10558_v6 = vcombine.low %v592_v55, %v596_v56  ;;  %v612_v33 = vld [vmem:[#allocation5 + $0xef8] sm:$0xff]  ;;  %v615_v46 = vld [vmem:[#allocation5 + $0xf10] sm:$0xff] }
 0x35e   :  { %v12534_v50 = vpack.c.bf16 %v7784_v17, %v7776_v37  ;;  %v12536_v30 = vpack.c.bf16 %v7786_v47, %v7778_v5  ;;  %v10565_v7 = vcombine.high %v599_v60, %v603_v61  ;;  %v10567_v8 = vcombine.high %v600_v62, %v604_v39  ;;  %v619_v16 = vld [vmem:[#allocation5 + $0xf30] sm:$0xff]  ;;  %v616_v19 = vld [vmem:[#allocation5 + $0xf18] sm:$0xff] }
 0x35f   :  { %v10564_v34 = vcombine.low %v599_v60, %v603_v61  ;;  %v10566_v45 = vcombine.low %v600_v62, %v604_v39  ;;  %v10573_v13 = vcombine.high %v607_v9, %v611_v10  ;;  %v10575_v14 = vcombine.high %v608_v11, %v612_v33  ;;  %v623_v54 = vld [vmem:[#allocation5 + $0xf50] sm:$0xff]  ;;  %v624_v26 = vld [vmem:[#allocation5 + $0xf58] sm:$0xff] }
 0x360   :  { %7231 = vmatpush1.bf16.msra.mxu0 %v10540_v21  ;;  %7575 = vmatpush1.bf16.msra.mxu1 %v10542_v28  ;;  %v10572_v21 = vcombine.low %v607_v9, %v611_v10  ;;  %v10574_v15 = vcombine.low %v608_v11, %v612_v33  ;;  %v10581_v23 = vcombine.high %v615_v46, %v619_v16  ;;  %v627_v57 = vld [vmem:[#allocation5 + $0xf70] sm:$0xff]  ;;  %v628_v28 = vld [vmem:[#allocation5 + $0xf78] sm:$0xff] }
 0x361   :  { %7232 = vmatprep.subr.bf16.mxu0 %v10549_v48  ;;  %7576 = vmatprep.subr.bf16.mxu1 %v10551_v51  ;;  %v10583_v25 = vcombine.high %v616_v19, %v620_v20  ;;  %v10580_v32 = vcombine.low %v615_v46, %v619_v16  ;;  %v10582_v36 = vcombine.low %v616_v19, %v620_v20  ;;  %v631_v41 = vld [vmem:[#allocation5 + $0xf90] sm:$0xff]  ;;  %v632_v5 = vld [vmem:[#allocation5 + $0xf98] sm:$0xff] }
 0x362   :  { %v10589_v53 = vcombine.high %v623_v54, %v627_v57  ;;  %v10591_v37 = vcombine.high %v624_v26, %v628_v28  ;;  %v635_v17 = vld [vmem:[#allocation5 + $0xfb0] sm:$0xff]  ;;  %v636_v47 = vld [vmem:[#allocation5 + $0xfb8] sm:$0xff]  ;;  %v10588_v48 = vcombine.low %v623_v54, %v627_v57  ;;  %v10590_v51 = vcombine.low %v624_v26, %v628_v28 }
 0x363   :  { %v10597_v1 = vcombine.high %v631_v41, %v635_v17  ;;  %v10599_v3 = vcombine.high %v632_v5, %v636_v47  ;;  %v639_v55 = vld [vmem:[#allocation5 + $0xfd0] sm:$0xff] }
 0x364   :  { %7233 = vmatpush1.bf16.msra.mxu0 %v10548_v27  ;;  %7577 = vmatpush1.bf16.msra.mxu1 %v10550_v29  ;;  %v643_v56 = vld [vmem:[#allocation5 + $0xff0] sm:$0xff]  ;;  %v640_v27 = vld [vmem:[#allocation5 + $0xfd8] sm:$0xff] }
 0x365   :  { %7234 = vmatprep.subr.bf16.mxu0 %v10557_v59  ;;  %7578 = vmatprep.subr.bf16.mxu1 %v10559_v58  ;;  %v644_v29 = vld [vmem:[#allocation5 + $0xff8] sm:$0xff]  ;;  %v10596_v59 = vcombine.low %v631_v41, %v635_v17  ;;  %v10598_v58 = vcombine.low %v632_v5, %v636_v47  ;;  %v10605_v60 = vcombine.high %v639_v55, %v643_v56  ;;  %v647_v62 = vld [vmem:[#allocation5 + $0x1010] sm:$0xff] }
 0x366   :  { %v10607_v61 = vcombine.high %v640_v27, %v644_v29  ;;  %v651_v39 = vld [vmem:[#allocation5 + $0x1030] sm:$0xff]  ;;  %v680_v47 = vld [vmem:[#allocation5 + $0x1118] sm:$0xff] }
 0x367   :  { %v10613_v9 = vcombine.high %v647_v62, %v651_v39  ;;  %v655_v11 = vld [vmem:[#allocation5 + $0x1050] sm:$0xff] }
 0x368   :  { %7235 = vmatpush1.bf16.msra.mxu0 %v10556_v0  ;;  %7579 = vmatpush1.bf16.msra.mxu1 %v10558_v6  ;;  %v648_v0 = vld [vmem:[#allocation5 + $0x1018] sm:$0xff]  ;;  %v659_v33 = vld [vmem:[#allocation5 + $0x1070] sm:$0xff] }
 0x369   :  { %7236 = vmatprep.subr.bf16.mxu0 %v10565_v7  ;;  %7580 = vmatprep.subr.bf16.mxu1 %v10567_v8  ;;  %v652_v6 = vld [vmem:[#allocation5 + $0x1038] sm:$0xff]  ;;  %v10604_v7 = vcombine.low %v639_v55, %v643_v56  ;;  %v10606_v8 = vcombine.low %v640_v27, %v644_v29  ;;  %v10621_v46 = vcombine.high %v655_v11, %v659_v33  ;;  %v663_v19 = vld [vmem:[#allocation5 + $0x1090] sm:$0xff] }
 0x36a   :  { %v10615_v10 = vcombine.high %v648_v0, %v652_v6  ;;  %v667_v20 = vld [vmem:[#allocation5 + $0x10b0] sm:$0xff]  ;;  %v688_v27 = vld [vmem:[#allocation5 + $0x1158] sm:$0xff] }
 0x36b   :  { %v10629_v54 = vcombine.high %v663_v19, %v667_v20  ;;  %v671_v26 = vld [vmem:[#allocation5 + $0x10d0] sm:$0xff]  ;;  %v692_v29 = vld [vmem:[#allocation5 + $0x1178] sm:$0xff] }
 0x36c   :  { %7237 = vmatpush1.bf16.msra.mxu0 %v10564_v34  ;;  %7581 = vmatpush1.bf16.msra.mxu1 %v10566_v45  ;;  %v656_v34 = vld [vmem:[#allocation5 + $0x1058] sm:$0xff]  ;;  %v675_v28 = vld [vmem:[#allocation5 + $0x10f0] sm:$0xff] }
 0x36d   :  { %7238 = vmatprep.subr.bf16.mxu0 %v10573_v13  ;;  %7582 = vmatprep.subr.bf16.mxu1 %v10575_v14  ;;  %v660_v45 = vld [vmem:[#allocation5 + $0x1078] sm:$0xff]  ;;  %v10612_v13 = vcombine.low %v647_v62, %v651_v39  ;;  %v10614_v14 = vcombine.low %v648_v0, %v652_v6  ;;  %v679_v17 = vld [vmem:[#allocation5 + $0x1110] sm:$0xff] }
 0x36e   :  { %v10623_v16 = vcombine.high %v656_v34, %v660_v45  ;;  %v683_v5 = vld [vmem:[#allocation5 + $0x1130] sm:$0xff]  ;;  %v696_v0 = vld [vmem:[#allocation5 + $0x1198] sm:$0xff] }
 0x36f   :  { %v687_v55 = vld [vmem:[#allocation5 + $0x1150] sm:$0xff]  ;;  %v700_v6 = vld [vmem:[#allocation5 + $0x11b8] sm:$0xff] }
 0x370   :  { %7239 = vmatpush1.bf16.msra.mxu0 %v10572_v21  ;;  %7583 = vmatpush1.bf16.msra.mxu1 %v10574_v15  ;;  %v664_v21 = vld [vmem:[#allocation5 + $0x1098] sm:$0xff]  ;;  %v691_v56 = vld [vmem:[#allocation5 + $0x1170] sm:$0xff] }
 0x371   :  { %7240 = vmatprep.subr.bf16.mxu0 %v10581_v23  ;;  %7584 = vmatprep.subr.bf16.mxu1 %v10583_v25  ;;  %v668_v15 = vld [vmem:[#allocation5 + $0x10b8] sm:$0xff]  ;;  %v10620_v23 = vcombine.low %v655_v11, %v659_v33  ;;  %v10622_v25 = vcombine.low %v656_v34, %v660_v45  ;;  %v695_v62 = vld [vmem:[#allocation5 + $0x1190] sm:$0xff] }
 0x372   :  { %v10631_v57 = vcombine.high %v664_v21, %v668_v15  ;;  %v699_v39 = vld [vmem:[#allocation5 + $0x11b0] sm:$0xff]  ;;  %v704_v34 = vld [vmem:[#allocation5 + $0x11d8] sm:$0xff] }
 0x373   :  { %v703_v11 = vld [vmem:[#allocation5 + $0x11d0] sm:$0xff]  ;;  %v708_v45 = vld [vmem:[#allocation5 + $0x11f8] sm:$0xff] }
 0x374   :  { %7241 = vmatpush1.bf16.msra.mxu0 %v10580_v32  ;;  %7585 = vmatpush1.bf16.msra.mxu1 %v10582_v36  ;;  %v672_v32 = vld [vmem:[#allocation5 + $0x10d8] sm:$0xff]  ;;  %v707_v33 = vld [vmem:[#allocation5 + $0x11f0] sm:$0xff] }
 0x375   :  { %7242 = vmatprep.subr.bf16.mxu0 %v10589_v53  ;;  %7586 = vmatprep.subr.bf16.mxu1 %v10591_v37  ;;  %v676_v36 = vld [vmem:[#allocation5 + $0x10f8] sm:$0xff]  ;;  %v10628_v53 = vcombine.low %v663_v19, %v667_v20  ;;  %v10637_v37 = vcombine.high %v671_v26, %v675_v28  ;;  %v711_v19 = vld [vmem:[#allocation5 + $0x1210] sm:$0xff] }
 0x376   :  { %v10639_v41 = vcombine.high %v672_v32, %v676_v36  ;;  %v715_v20 = vld [vmem:[#allocation5 + $0x1230] sm:$0xff] }
 0x378   :  { %7243 = vmatpush1.bf16.msra.mxu0 %v10588_v48  ;;  %7587 = vmatpush1.bf16.msra.mxu1 %v10590_v51  ;;  %v684_v48 = vld [vmem:[#allocation5 + $0x1138] sm:$0xff]  ;;  %v10636_v51 = vcombine.low %v671_v26, %v675_v28  ;;  %v719_v26 = vld [vmem:[#allocation5 + $0x1250] sm:$0xff] }
 0x379   :  { %7244 = vmatprep.subr.bf16.mxu0 %v10597_v1  ;;  %7588 = vmatprep.subr.bf16.mxu1 %v10599_v3  ;;  %v10638_v1 = vcombine.low %v672_v32, %v676_v36  ;;  %v10645_v3 = vcombine.high %v679_v17, %v683_v5  ;;  %v723_v28 = vld [vmem:[#allocation5 + $0x1270] sm:$0xff]  ;;  %v720_v32 = vld [vmem:[#allocation5 + $0x1258] sm:$0xff] }
 0x37a   :  { %v724_v36 = vld [vmem:[#allocation5 + $0x1278] sm:$0xff] }
 0x37c   :  { %7245 = vmatpush1.bf16.msra.mxu0 %v10596_v59  ;;  %7589 = vmatpush1.bf16.msra.mxu1 %v10598_v58  ;;  %v10644_v59 = vcombine.low %v679_v17, %v683_v5  ;;  %v10646_v58 = vcombine.low %v680_v47, %v684_v48  ;;  %v727_v17 = vld [vmem:[#allocation5 + $0x1290] sm:$0xff] }
 0x37d   :  { %7246 = vmatprep.subr.bf16.mxu0 %v10605_v60  ;;  %7590 = vmatprep.subr.bf16.mxu1 %v10607_v61  ;;  %v10653_v60 = vcombine.high %v687_v55, %v691_v56  ;;  %v10655_v61 = vcombine.high %v688_v27, %v692_v29  ;;  %v731_v5 = vld [vmem:[#allocation5 + $0x12b0] sm:$0xff] }
 0x380   :  { %7247 = vmatpush1.bf16.msra.mxu0 %v10604_v7  ;;  %7591 = vmatpush1.bf16.msra.mxu1 %v10606_v8  ;;  %v10652_v7 = vcombine.low %v687_v55, %v691_v56  ;;  %v10654_v8 = vcombine.low %v688_v27, %v692_v29  ;;  %v735_v55 = vld [vmem:[#allocation5 + $0x12d0] sm:$0xff]  ;;  %v736_v27 = vld [vmem:[#allocation5 + $0x12d8] sm:$0xff] }
 0x381   :  { %7259 = vmatprep.subr.bf16.mxu0 %v10613_v9  ;;  %7603 = vmatprep.subr.bf16.mxu1 %v10615_v10  ;;  %v10661_v9 = vcombine.high %v695_v62, %v699_v39  ;;  %v10663_v10 = vcombine.high %v696_v0, %v700_v6  ;;  %v739_v56 = vld [vmem:[#allocation5 + $0x12f0] sm:$0xff]  ;;  %v740_v29 = vld [vmem:[#allocation5 + $0x12f8] sm:$0xff] }
 0x383   :  { %7249 = vmatmul.mubr.bf16.vlgmr.msra.gmra.mrb[4].mxu0 %v12434_v2  ;;  %7593 = vmatmul.mubr.bf16.vlgmr.msra.gmra.mrb[4].mxu1 %v12434_v2  ;;  %v10630_v2 = vcombine.low %v664_v21, %v668_v15  ;;  %v712_v21 = vld [vmem:[#allocation5 + $0x1218] sm:$0xff] }
 0x384   :  { %7260 = vmatpush1.bf16.msra.mxu0 %v10612_v13  ;;  %7604 = vmatpush1.bf16.msra.mxu1 %v10614_v14  ;;  %v10660_v13 = vcombine.low %v695_v62, %v699_v39  ;;  %v10662_v14 = vcombine.low %v696_v0, %v700_v6  ;;  %v716_v15 = vld [vmem:[#allocation5 + $0x1238] sm:$0xff]  ;;  %v743_v62 = vld [vmem:[#allocation5 + $0x1310] sm:$0xff] }
 0x385   :  { %7261 = vmatprep.subr.bf16.mxu0 %v10621_v46  ;;  %7605 = vmatprep.subr.bf16.mxu1 %v10623_v16  ;;  %v10669_v46 = vcombine.high %v703_v11, %v707_v33  ;;  %v10671_v16 = vcombine.high %v704_v34, %v708_v45  ;;  %v747_v39 = vld [vmem:[#allocation5 + $0x1330] sm:$0xff]  ;;  %v744_v0 = vld [vmem:[#allocation5 + $0x1318] sm:$0xff] }
 0x386   :  { %7291 = vmatprep.mubr.bf16.mxu0 %v12442_v12  ;;  %7635 = vmatprep.mubr.bf16.mxu1 %v12442_v12  ;;  %v10647_v12 = vcombine.high %v680_v47, %v684_v48  ;;  %v728_v47 = vld [vmem:[#allocation5 + $0x1298] sm:$0xff] }
 0x387   :  { %v732_v48 = vld [vmem:[#allocation5 + $0x12b8] sm:$0xff] }
 0x388   :  { %7262 = vmatpush1.bf16.msra.mxu0 %v10620_v23  ;;  %7606 = vmatpush1.bf16.msra.mxu1 %v10622_v25  ;;  %v10668_v23 = vcombine.low %v703_v11, %v707_v33  ;;  %v10670_v25 = vcombine.low %v704_v34, %v708_v45  ;;  %v748_v6 = vld [vmem:[#allocation5 + $0x1338] sm:$0xff]  ;;  %v751_v11 = vld [vmem:[#allocation5 + $0x1350] sm:$0xff] }
 0x389   :  { %7263 = vmatprep.subr.bf16.mxu0 %v10629_v54  ;;  %7607 = vmatprep.subr.bf16.mxu1 %v10631_v57  ;;  %v10677_v54 = vcombine.high %v711_v19, %v715_v20  ;;  %v10679_v57 = vcombine.high %v712_v21, %v716_v15  ;;  %v755_v33 = vld [vmem:[#allocation5 + $0x1370] sm:$0xff]  ;;  %v752_v34 = vld [vmem:[#allocation5 + $0x1358] sm:$0xff] }
 0x38a   :  { %v756_v45 = vld [vmem:[#allocation5 + $0x1378] sm:$0xff] }
 0x38c   :  { %7264 = vmatpush1.bf16.msra.mxu0 %v10628_v53  ;;  %7608 = vmatpush1.bf16.msra.mxu1 %v10630_v2  ;;  %v10676_v53 = vcombine.low %v711_v19, %v715_v20  ;;  %v10678_v2 = vcombine.low %v712_v21, %v716_v15  ;;  %v759_v19 = vld [vmem:[#allocation5 + $0x1390] sm:$0xff]  ;;  %v760_v21 = vld [vmem:[#allocation5 + $0x1398] sm:$0xff] }
 0x38d   :  { %7265 = vmatprep.subr.bf16.mxu0 %v10637_v37  ;;  %7609 = vmatprep.subr.bf16.mxu1 %v10639_v41  ;;  %v10685_v37 = vcombine.high %v719_v26, %v723_v28  ;;  %v10687_v41 = vcombine.high %v720_v32, %v724_v36  ;;  %v763_v20 = vld [vmem:[#allocation5 + $0x13b0] sm:$0xff]  ;;  %v764_v15 = vld [vmem:[#allocation5 + $0x13b8] sm:$0xff] }
 0x390   :  { %7266 = vmatpush1.bf16.msra.mxu0 %v10636_v51  ;;  %7610 = vmatpush1.bf16.msra.mxu1 %v10638_v1  ;;  %v10684_v51 = vcombine.low %v719_v26, %v723_v28  ;;  %v10686_v1 = vcombine.low %v720_v32, %v724_v36  ;;  %v767_v26 = vld [vmem:[#allocation5 + $0x13d0] sm:$0xff]  ;;  %v768_v32 = vld [vmem:[#allocation5 + $0x13d8] sm:$0xff] }
 0x391   :  { %7267 = vmatprep.subr.bf16.mxu0 %v10645_v3  ;;  %7611 = vmatprep.subr.bf16.mxu1 %v10647_v12  ;;  %v10693_v3 = vcombine.high %v727_v17, %v731_v5  ;;  %v10695_v12 = vcombine.high %v728_v47, %v732_v48  ;;  %v771_v28 = vld [vmem:[#allocation5 + $0x13f0] sm:$0xff]  ;;  %v772_v36 = vld [vmem:[#allocation5 + $0x13f8] sm:$0xff] }
 0x394   :  { %7268 = vmatpush1.bf16.msra.mxu0 %v10644_v59  ;;  %7612 = vmatpush1.bf16.msra.mxu1 %v10646_v58  ;;  %v10692_v59 = vcombine.low %v727_v17, %v731_v5  ;;  %v10694_v58 = vcombine.low %v728_v47, %v732_v48  ;;  %v775_v17 = vld [vmem:[#allocation5 + $0x1410] sm:$0xff]  ;;  %v776_v47 = vld [vmem:[#allocation5 + $0x1418] sm:$0xff] }
 0x395   :  { %7269 = vmatprep.subr.bf16.mxu0 %v10653_v60  ;;  %7613 = vmatprep.subr.bf16.mxu1 %v10655_v61  ;;  %v10701_v60 = vcombine.high %v735_v55, %v739_v56  ;;  %v10703_v61 = vcombine.high %v736_v27, %v740_v29  ;;  %v779_v5 = vld [vmem:[#allocation5 + $0x1430] sm:$0xff]  ;;  %v780_v48 = vld [vmem:[#allocation5 + $0x1438] sm:$0xff] }
 0x398   :  { %7270 = vmatpush1.bf16.msra.mxu0 %v10652_v7  ;;  %7614 = vmatpush1.bf16.msra.mxu1 %v10654_v8  ;;  %v10700_v7 = vcombine.low %v735_v55, %v739_v56  ;;  %v10702_v8 = vcombine.low %v736_v27, %v740_v29  ;;  %v783_v55 = vld [vmem:[#allocation5 + $0x1450] sm:$0xff]  ;;  %v784_v27 = vld [vmem:[#allocation5 + $0x1458] sm:$0xff] }
 0x399   :  { %7271 = vmatprep.subr.bf16.mxu0 %v10661_v9  ;;  %7615 = vmatprep.subr.bf16.mxu1 %v10663_v10  ;;  %v10709_v9 = vcombine.high %v743_v62, %v747_v39  ;;  %v10711_v10 = vcombine.high %v744_v0, %v748_v6  ;;  %v787_v56 = vld [vmem:[#allocation5 + $0x1470] sm:$0xff]  ;;  %v788_v29 = vld [vmem:[#allocation5 + $0x1478] sm:$0xff] }
 0x39c   :  { %7272 = vmatpush1.bf16.msra.mxu0 %v10660_v13  ;;  %7616 = vmatpush1.bf16.msra.mxu1 %v10662_v14  ;;  %v10708_v13 = vcombine.low %v743_v62, %v747_v39  ;;  %v10710_v14 = vcombine.low %v744_v0, %v748_v6  ;;  %v791_v62 = vld [vmem:[#allocation5 + $0x1490] sm:$0xff]  ;;  %v792_v0 = vld [vmem:[#allocation5 + $0x1498] sm:$0xff] }
 0x39d   :  { %7273 = vmatprep.subr.bf16.mxu0 %v10669_v46  ;;  %7617 = vmatprep.subr.bf16.mxu1 %v10671_v16  ;;  %v10717_v46 = vcombine.high %v751_v11, %v755_v33  ;;  %v10719_v16 = vcombine.high %v752_v34, %v756_v45  ;;  %v795_v39 = vld [vmem:[#allocation5 + $0x14b0] sm:$0xff]  ;;  %v796_v6 = vld [vmem:[#allocation5 + $0x14b8] sm:$0xff] }
 0x3a0   :  { %7274 = vmatpush1.bf16.msra.mxu0 %v10668_v23  ;;  %7618 = vmatpush1.bf16.msra.mxu1 %v10670_v25  ;;  %v10716_v23 = vcombine.low %v751_v11, %v755_v33  ;;  %v10718_v25 = vcombine.low %v752_v34, %v756_v45  ;;  %v799_v11 = vld [vmem:[#allocation5 + $0x14d0] sm:$0xff]  ;;  %v800_v34 = vld [vmem:[#allocation5 + $0x14d8] sm:$0xff] }
 0x3a1   :  { %7275 = vmatprep.subr.bf16.mxu0 %v10677_v54  ;;  %7619 = vmatprep.subr.bf16.mxu1 %v10679_v57  ;;  %v10725_v54 = vcombine.high %v759_v19, %v763_v20  ;;  %v10727_v57 = vcombine.high %v760_v21, %v764_v15  ;;  %v803_v33 = vld [vmem:[#allocation5 + $0x14f0] sm:$0xff]  ;;  %v804_v45 = vld [vmem:[#allocation5 + $0x14f8] sm:$0xff] }
 0x3a4   :  { %7276 = vmatpush1.bf16.msra.mxu0 %v10676_v53  ;;  %7620 = vmatpush1.bf16.msra.mxu1 %v10678_v2  ;;  %v10724_v53 = vcombine.low %v759_v19, %v763_v20  ;;  %v10726_v2 = vcombine.low %v760_v21, %v764_v15  ;;  %v811_v19 = vld [vmem:[#allocation5 + $0x1530] sm:$0xff]  ;;  %v808_v20 = vld [vmem:[#allocation5 + $0x1518] sm:$0xff]  ;;  %v10764_v15 = vcombine.low %v799_v11, %v803_v33 }
 0x3a5   :  { %7277 = vmatprep.subr.bf16.mxu0 %v10685_v37  ;;  %7621 = vmatprep.subr.bf16.mxu1 %v10687_v41  ;;  %v10733_v37 = vcombine.high %v767_v26, %v771_v28  ;;  %v10735_v41 = vcombine.high %v768_v32, %v772_v36  ;;  %v812_v21 = vld [vmem:[#allocation5 + $0x1538] sm:$0xff] }
 0x3a8   :  { %7278 = vmatpush1.bf16.msra.mxu0 %v10684_v51  ;;  %7622 = vmatpush1.bf16.msra.mxu1 %v10686_v1  ;;  %v10732_v51 = vcombine.low %v767_v26, %v771_v28  ;;  %v10734_v1 = vcombine.low %v768_v32, %v772_v36  ;;  %v816_v26 = vld [vmem:[#allocation5 + $0x1558] sm:$0xff]  ;;  %v10774_v36 = vcombine.low %v808_v20, %v812_v21 }
 0x3a9   :  { %7279 = vmatprep.subr.bf16.mxu0 %v10693_v3  ;;  %7623 = vmatprep.subr.bf16.mxu1 %v10695_v12  ;;  %v10741_v3 = vcombine.high %v775_v17, %v779_v5  ;;  %v10743_v12 = vcombine.high %v776_v47, %v780_v48  ;;  %v820_v28 = vld [vmem:[#allocation5 + $0x1578] sm:$0xff] }
 0x3ac   :  { %7280 = vmatpush1.bf16.msra.mxu0 %v10692_v59  ;;  %7624 = vmatpush1.bf16.msra.mxu1 %v10694_v58  ;;  %v10740_v59 = vcombine.low %v775_v17, %v779_v5  ;;  %v10742_v58 = vcombine.low %v776_v47, %v780_v48  ;;  %v824_v17 = vld [vmem:[#allocation5 + $0x1598] sm:$0xff]  ;;  %v10782_v48 = vcombine.low %v816_v26, %v820_v28 }
 0x3ad   :  { %7281 = vmatprep.subr.bf16.mxu0 %v10701_v60  ;;  %7625 = vmatprep.subr.bf16.mxu1 %v10703_v61  ;;  %v10749_v60 = vcombine.high %v783_v55, %v787_v56  ;;  %v10751_v61 = vcombine.high %v784_v27, %v788_v29  ;;  %v828_v5 = vld [vmem:[#allocation5 + $0x15b8] sm:$0xff] }
 0x3b0   :  { %7282 = vmatpush1.bf16.msra.mxu0 %v10700_v7  ;;  %7626 = vmatpush1.bf16.msra.mxu1 %v10702_v8  ;;  %v10748_v7 = vcombine.low %v783_v55, %v787_v56  ;;  %v10750_v8 = vcombine.low %v784_v27, %v788_v29  ;;  %v832_v55 = vld [vmem:[#allocation5 + $0x15d8] sm:$0xff]  ;;  %v10790_v29 = vcombine.low %v824_v17, %v828_v5 }
 0x3b1   :  { %7283 = vmatprep.subr.bf16.mxu0 %v10709_v9  ;;  %7627 = vmatprep.subr.bf16.mxu1 %v10711_v10  ;;  %v10757_v9 = vcombine.high %v791_v62, %v795_v39  ;;  %v10759_v10 = vcombine.high %v792_v0, %v796_v6  ;;  %v836_v56 = vld [vmem:[#allocation5 + $0x15f8] sm:$0xff] }
 0x3b4   :  { %7284 = vmatpush1.bf16.msra.mxu0 %v10708_v13  ;;  %7628 = vmatpush1.bf16.msra.mxu1 %v10710_v14  ;;  %v10756_v13 = vcombine.low %v791_v62, %v795_v39  ;;  %v10765_v14 = vcombine.high %v799_v11, %v803_v33  ;;  %v840_v62 = vld [vmem:[#allocation5 + $0x1618] sm:$0xff] }
 0x3b5   :  { %7285 = vmatprep.subr.bf16.mxu0 %v10717_v46  ;;  %7629 = vmatprep.subr.bf16.mxu1 %v10719_v16  ;;  %v10767_v46 = vcombine.high %v800_v34, %v804_v45  ;;  %v807_v16 = vld [vmem:[#allocation5 + $0x1510] sm:$0xff]  ;;  %v844_v39 = vld [vmem:[#allocation5 + $0x1638] sm:$0xff] }
 0x3b6   :  { %v10772_v32 = vcombine.low %v807_v16, %v811_v19  ;;  %v848_v11 = vld [vmem:[#allocation5 + $0x1658] sm:$0xff] }
 0x3b7   :  { %v852_v33 = vld [vmem:[#allocation5 + $0x1678] sm:$0xff] }
 0x3b8   :  { %7286 = vmatpush1.bf16.msra.mxu0 %v10716_v23  ;;  %7630 = vmatpush1.bf16.msra.mxu1 %v10718_v25  ;;  %v10766_v23 = vcombine.low %v800_v34, %v804_v45  ;;  %v10773_v25 = vcombine.high %v807_v16, %v811_v19  ;;  %v10806_v45 = vcombine.low %v840_v62, %v844_v39  ;;  %v856_v16 = vld [vmem:[#allocation5 + $0x1698] sm:$0xff] }
 0x3b9   :  { %7287 = vmatprep.subr.bf16.mxu0 %v10725_v54  ;;  %7631 = vmatprep.subr.bf16.mxu1 %v10727_v57  ;;  %v815_v54 = vld [vmem:[#allocation5 + $0x1550] sm:$0xff]  ;;  %v860_v19 = vld [vmem:[#allocation5 + $0x16b8] sm:$0xff] }
 0x3ba   :  { %v819_v57 = vld [vmem:[#allocation5 + $0x1570] sm:$0xff] }
 0x3bb   :  { %v10780_v47 = vcombine.low %v815_v54, %v819_v57 }
 0x3bc   :  { %7288 = vmatpush1.bf16.msra.mxu0 %v10724_v53  ;;  %7632 = vmatpush1.bf16.msra.mxu1 %v10726_v2  ;;  %v10781_v53 = vcombine.high %v815_v54, %v819_v57  ;;  %v10783_v2 = vcombine.high %v816_v26, %v820_v28  ;;  %v864_v54 = vld [vmem:[#allocation5 + $0x16d8] sm:$0xff]  ;;  %v10822_v28 = vcombine.low %v856_v16, %v860_v19 }
 0x3bd   :  { %7289 = vmatprep.subr.bf16.mxu0 %v10733_v37  ;;  %7633 = vmatprep.subr.bf16.mxu1 %v10735_v41  ;;  %v823_v37 = vld [vmem:[#allocation5 + $0x1590] sm:$0xff]  ;;  %v868_v57 = vld [vmem:[#allocation5 + $0x16f8] sm:$0xff] }
 0x3be   :  { %v827_v41 = vld [vmem:[#allocation5 + $0x15b0] sm:$0xff] }
 0x3bf   :  { %v10788_v27 = vcombine.low %v823_v37, %v827_v41 }
 0x3c0   :  { %7290 = vmatpush1.bf16.msra.mxu0 %v10732_v51  ;;  %7634 = vmatpush1.bf16.msra.mxu1 %v10734_v1  ;;  %v10789_v51 = vcombine.high %v823_v37, %v827_v41  ;;  %v10791_v1 = vcombine.high %v824_v17, %v828_v5  ;;  %v872_v37 = vld [vmem:[#allocation5 + $0x1718] sm:$0xff]  ;;  %v10830_v5 = vcombine.low %v864_v54, %v868_v57 }
 0x3c1   :  { %7302 = vmatprep.subr.bf16.mxu0 %v10741_v3  ;;  %7646 = vmatprep.subr.bf16.mxu1 %v10743_v12  ;;  %v831_v3 = vld [vmem:[#allocation5 + $0x15d0] sm:$0xff]  ;;  %v876_v41 = vld [vmem:[#allocation5 + $0x1738] sm:$0xff] }
 0x3c2   :  { %v835_v12 = vld [vmem:[#allocation5 + $0x15f0] sm:$0xff] }
 0x3c3   :  { %7292 = vmatmul.mubr.bf16.vlgmr.msra.gmra.mrb[4].mxu0 %v12450_v31  ;;  %7636 = vmatmul.mubr.bf16.vlgmr.msra.gmra.mrb[4].mxu1 %v12450_v31  ;;  %v10758_v31 = vcombine.low %v792_v0, %v796_v6  ;;  %v10796_v0 = vcombine.low %v831_v3, %v835_v12  ;;  %v10798_v6 = vcombine.low %v832_v55, %v836_v56 }
 0x3c4   :  { %7303 = vmatpush1.bf16.msra.mxu0 %v10740_v59  ;;  %7647 = vmatpush1.bf16.msra.mxu1 %v10742_v58  ;;  %v10797_v59 = vcombine.high %v831_v3, %v835_v12  ;;  %v10799_v58 = vcombine.high %v832_v55, %v836_v56  ;;  %v880_v3 = vld [vmem:[#allocation5 + $0x1758] sm:$0xff]  ;;  %v10838_v56 = vcombine.low %v872_v37, %v876_v41 }
 0x3c5   :  { %7304 = vmatprep.subr.bf16.mxu0 %v10749_v60  ;;  %7648 = vmatprep.subr.bf16.mxu1 %v10751_v61  ;;  %v839_v60 = vld [vmem:[#allocation5 + $0x1610] sm:$0xff]  ;;  %v884_v12 = vld [vmem:[#allocation5 + $0x1778] sm:$0xff] }
 0x3c6   :  { %7334 = vmatprep.mubr.bf16.mxu0 %v12458_v40  ;;  %7678 = vmatprep.mubr.bf16.mxu1 %v12458_v40  ;;  %v10775_v40 = vcombine.high %v808_v20, %v812_v21  ;;  %v843_v61 = vld [vmem:[#allocation5 + $0x1630] sm:$0xff]  ;;  %v10814_v21 = vcombine.low %v848_v11, %v852_v33 }
 0x3c7   :  { %v10804_v34 = vcombine.low %v839_v60, %v843_v61 }
 0x3c8   :  { %7305 = vmatpush1.bf16.msra.mxu0 %v10748_v7  ;;  %7649 = vmatpush1.bf16.msra.mxu1 %v10750_v8  ;;  %v10805_v7 = vcombine.high %v839_v60, %v843_v61  ;;  %v10807_v8 = vcombine.high %v840_v62, %v844_v39  ;;  %v888_v60 = vld [vmem:[#allocation5 + $0x1798] sm:$0xff]  ;;  %v10846_v39 = vcombine.low %v880_v3, %v884_v12 }
 0x3c9   :  { %7306 = vmatprep.subr.bf16.mxu0 %v10757_v9  ;;  %7650 = vmatprep.subr.bf16.mxu1 %v10759_v10  ;;  %v847_v9 = vld [vmem:[#allocation5 + $0x1650] sm:$0xff]  ;;  %v892_v61 = vld [vmem:[#allocation5 + $0x17b8] sm:$0xff] }
 0x3ca   :  { %v851_v10 = vld [vmem:[#allocation5 + $0x1670] sm:$0xff] }
 0x3cb   :  { %v10812_v20 = vcombine.low %v847_v9, %v851_v10 }
 0x3cc   :  { %7307 = vmatpush1.bf16.msra.mxu0 %v10756_v13  ;;  %7651 = vmatpush1.bf16.msra.mxu1 %v10758_v31  ;;  %v10813_v13 = vcombine.high %v847_v9, %v851_v10  ;;  %v10815_v31 = vcombine.high %v848_v11, %v852_v33  ;;  %v896_v9 = vld [vmem:[#allocation5 + $0x17d8] sm:$0xff]  ;;  %v10854_v33 = vcombine.low %v888_v60, %v892_v61 }
 0x3cd   :  { %7308 = vmatprep.subr.bf16.mxu0 %v10765_v14  ;;  %7652 = vmatprep.subr.bf16.mxu1 %v10767_v46  ;;  %v855_v14 = vld [vmem:[#allocation5 + $0x1690] sm:$0xff]  ;;  %v900_v10 = vld [vmem:[#allocation5 + $0x17f8] sm:$0xff] }
 0x3ce   :  { %v859_v46 = vld [vmem:[#allocation5 + $0x16b0] sm:$0xff] }
 0x3cf   :  { %v10820_v26 = vcombine.low %v855_v14, %v859_v46 }
 0x3d0   :  { %7309 = vmatpush1.bf16.msra.mxu0 %v10764_v15  ;;  %7653 = vmatpush1.bf16.msra.mxu1 %v10766_v23  ;;  %v10821_v15 = vcombine.high %v855_v14, %v859_v46  ;;  %v10823_v23 = vcombine.high %v856_v16, %v860_v19  ;;  %v904_v14 = vld [vmem:[#allocation5 + $0x1818] sm:$0xff]  ;;  %v10862_v19 = vcombine.low %v896_v9, %v900_v10 }
 0x3d1   :  { %7310 = vmatprep.subr.bf16.mxu0 %v10773_v25  ;;  %7654 = vmatprep.subr.bf16.mxu1 %v10775_v40  ;;  %v863_v25 = vld [vmem:[#allocation5 + $0x16d0] sm:$0xff]  ;;  %v908_v46 = vld [vmem:[#allocation5 + $0x1838] sm:$0xff] }
 0x3d2   :  { %v867_v40 = vld [vmem:[#allocation5 + $0x16f0] sm:$0xff] }
 0x3d3   :  { %v10828_v17 = vcombine.low %v863_v25, %v867_v40 }
 0x3d4   :  { %7311 = vmatpush1.bf16.msra.mxu0 %v10772_v32  ;;  %7655 = vmatpush1.bf16.msra.mxu1 %v10774_v36  ;;  %v10829_v32 = vcombine.high %v863_v25, %v867_v40  ;;  %v10831_v36 = vcombine.high %v864_v54, %v868_v57  ;;  %v912_v25 = vld [vmem:[#allocation5 + $0x1858] sm:$0xff]  ;;  %v10870_v57 = vcombine.low %v904_v14, %v908_v46 }
 0x3d5   :  { %7312 = vmatprep.subr.bf16.mxu0 %v10781_v53  ;;  %7656 = vmatprep.subr.bf16.mxu1 %v10783_v2  ;;  %v871_v53 = vld [vmem:[#allocation5 + $0x1710] sm:$0xff]  ;;  %v916_v40 = vld [vmem:[#allocation5 + $0x1878] sm:$0xff] }
 0x3d6   :  { %v875_v2 = vld [vmem:[#allocation5 + $0x1730] sm:$0xff] }
 0x3d7   :  { %v10836_v55 = vcombine.low %v871_v53, %v875_v2 }
 0x3d8   :  { %7313 = vmatpush1.bf16.msra.mxu0 %v10780_v47  ;;  %7657 = vmatpush1.bf16.msra.mxu1 %v10782_v48  ;;  %v10837_v47 = vcombine.high %v871_v53, %v875_v2  ;;  %v10839_v48 = vcombine.high %v872_v37, %v876_v41  ;;  %v920_v53 = vld [vmem:[#allocation5 + $0x1898] sm:$0xff]  ;;  %v10878_v41 = vcombine.low %v912_v25, %v916_v40 }
 0x3d9   :  { %7314 = vmatprep.subr.bf16.mxu0 %v10789_v51  ;;  %7658 = vmatprep.subr.bf16.mxu1 %v10791_v1  ;;  %v879_v51 = vld [vmem:[#allocation5 + $0x1750] sm:$0xff]  ;;  %v924_v2 = vld [vmem:[#allocation5 + $0x18b8] sm:$0xff] }
 0x3da   :  { %v883_v1 = vld [vmem:[#allocation5 + $0x1770] sm:$0xff] }
 0x3db   :  { %v10844_v62 = vcombine.low %v879_v51, %v883_v1 }
 0x3dc   :  { %7315 = vmatpush1.bf16.msra.mxu0 %v10788_v27  ;;  %7659 = vmatpush1.bf16.msra.mxu1 %v10790_v29  ;;  %v10845_v27 = vcombine.high %v879_v51, %v883_v1  ;;  %v10847_v29 = vcombine.high %v880_v3, %v884_v12  ;;  %v928_v51 = vld [vmem:[#allocation5 + $0x18d8] sm:$0xff] }
 0x3dd   :  { %7316 = vmatprep.subr.bf16.mxu0 %v10797_v59  ;;  %7660 = vmatprep.subr.bf16.mxu1 %v10799_v58  ;;  %v887_v59 = vld [vmem:[#allocation5 + $0x1790] sm:$0xff]  ;;  %v932_v1 = vld [vmem:[#allocation5 + $0x18f8] sm:$0xff] }
 0x3de   :  { %v891_v58 = vld [vmem:[#allocation5 + $0x17b0] sm:$0xff] }
 0x3df   :  { %v10852_v11 = vcombine.low %v887_v59, %v891_v58 }
 0x3e0   :  { %7317 = vmatpush1.bf16.msra.mxu0 %v10796_v0  ;;  %7661 = vmatpush1.bf16.msra.mxu1 %v10798_v6  ;;  %v10853_v0 = vcombine.high %v887_v59, %v891_v58  ;;  %v10855_v6 = vcombine.high %v888_v60, %v892_v61  ;;  %v940_v59 = vld [vmem:[#allocation5 + $0x1938] sm:$0xff]  ;;  %v10894_v60 = vcombine.low %v928_v51, %v932_v1 }
 0x3e1   :  { %7318 = vmatprep.subr.bf16.mxu0 %v10805_v7  ;;  %7662 = vmatprep.subr.bf16.mxu1 %v10807_v8  ;;  %v895_v7 = vld [vmem:[#allocation5 + $0x17d0] sm:$0xff] }
 0x3e2   :  { %v899_v8 = vld [vmem:[#allocation5 + $0x17f0] sm:$0xff] }
 0x3e3   :  { %v10860_v16 = vcombine.low %v895_v7, %v899_v8 }
 0x3e4   :  { %7319 = vmatpush1.bf16.msra.mxu0 %v10804_v34  ;;  %7663 = vmatpush1.bf16.msra.mxu1 %v10806_v45  ;;  %v10861_v34 = vcombine.high %v895_v7, %v899_v8  ;;  %v10863_v45 = vcombine.high %v896_v9, %v900_v10 }
 0x3e5   :  { %7320 = vmatprep.subr.bf16.mxu0 %v10813_v13  ;;  %7664 = vmatprep.subr.bf16.mxu1 %v10815_v31  ;;  %v903_v13 = vld [vmem:[#allocation5 + $0x1810] sm:$0xff] }
 0x3e6   :  { %v907_v31 = vld [vmem:[#allocation5 + $0x1830] sm:$0xff] }
 0x3e7   :  { %v10868_v54 = vcombine.low %v903_v13, %v907_v31 }
 0x3e8   :  { %7321 = vmatpush1.bf16.msra.mxu0 %v10812_v20  ;;  %7665 = vmatpush1.bf16.msra.mxu1 %v10814_v21  ;;  %v10869_v20 = vcombine.high %v903_v13, %v907_v31  ;;  %v10871_v21 = vcombine.high %v904_v14, %v908_v46 }
 0x3e9   :  { %7322 = vmatprep.subr.bf16.mxu0 %v10821_v15  ;;  %7666 = vmatprep.subr.bf16.mxu1 %v10823_v23  ;;  %v911_v15 = vld [vmem:[#allocation5 + $0x1850] sm:$0xff] }
 0x3ea   :  { %v915_v23 = vld [vmem:[#allocation5 + $0x1870] sm:$0xff] }
 0x3eb   :  { %v10876_v37 = vcombine.low %v911_v15, %v915_v23 }
 0x3ec   :  { %7323 = vmatpush1.bf16.msra.mxu0 %v10820_v26  ;;  %7667 = vmatpush1.bf16.msra.mxu1 %v10822_v28  ;;  %v10877_v26 = vcombine.high %v911_v15, %v915_v23  ;;  %v10879_v28 = vcombine.high %v912_v25, %v916_v40 }
 0x3ed   :  { %7324 = vmatprep.subr.bf16.mxu0 %v10829_v32  ;;  %7668 = vmatprep.subr.bf16.mxu1 %v10831_v36  ;;  %v919_v32 = vld [vmem:[#allocation5 + $0x1890] sm:$0xff] }
 0x3ee   :  { %v923_v36 = vld [vmem:[#allocation5 + $0x18b0] sm:$0xff] }
 0x3ef   :  { %v10884_v3 = vcombine.low %v919_v32, %v923_v36 }
 0x3f0   :  { %7325 = vmatpush1.bf16.msra.mxu0 %v10828_v17  ;;  %7669 = vmatpush1.bf16.msra.mxu1 %v10830_v5  ;;  %v10885_v17 = vcombine.high %v919_v32, %v923_v36  ;;  %v10887_v5 = vcombine.high %v920_v53, %v924_v2 }
 0x3f1   :  { %7326 = vmatprep.subr.bf16.mxu0 %v10837_v47  ;;  %7670 = vmatprep.subr.bf16.mxu1 %v10839_v48  ;;  %v927_v47 = vld [vmem:[#allocation5 + $0x18d0] sm:$0xff] }
 0x3f2   :  { %v931_v48 = vld [vmem:[#allocation5 + $0x18f0] sm:$0xff] }
 0x3f3   :  { %v10893_v12 = vcombine.high %v927_v47, %v931_v48  ;;  %v10892_v58 = vcombine.low %v927_v47, %v931_v48 }
 0x3f4   :  { %7327 = vmatpush1.bf16.msra.mxu0 %v10836_v55  ;;  %7671 = vmatpush1.bf16.msra.mxu1 %v10838_v56  ;;  %v10895_v55 = vcombine.high %v928_v51, %v932_v1  ;;  %v935_v56 = vld [vmem:[#allocation5 + $0x1910] sm:$0xff] }
 0x3f5   :  { %7328 = vmatprep.subr.bf16.mxu0 %v10845_v27  ;;  %7672 = vmatprep.subr.bf16.mxu1 %v10847_v29  ;;  %v939_v27 = vld [vmem:[#allocation5 + $0x1930] sm:$0xff]  ;;  %v936_v29 = vld [vmem:[#allocation5 + $0x1918] sm:$0xff] }
 0x3f6   :  { %v10901_v61 = vcombine.high %v935_v56, %v939_v27  ;;  %v10900_v7 = vcombine.low %v935_v56, %v939_v27  ;;  %v10902_v8 = vcombine.low %v936_v29, %v940_v59 }
 0x3f8   :  { %7329 = vmatpush1.bf16.msra.mxu0 %v10844_v62  ;;  %7673 = vmatpush1.bf16.msra.mxu1 %v10846_v39  ;;  %v943_v62 = vld [vmem:[#allocation5 + $0x1950] sm:$0xff] }
 0x3f9   :  { %7330 = vmatprep.subr.bf16.mxu0 %v10853_v0  ;;  %7674 = vmatprep.subr.bf16.mxu1 %v10855_v6  ;;  %v947_v39 = vld [vmem:[#allocation5 + $0x1970] sm:$0xff]  ;;  %v944_v0 = vld [vmem:[#allocation5 + $0x1958] sm:$0xff] }
 0x3fa   :  { %v948_v6 = vld [vmem:[#allocation5 + $0x1978] sm:$0xff]  ;;  %v10909_v9 = vcombine.high %v943_v62, %v947_v39  ;;  %v10908_v13 = vcombine.low %v943_v62, %v947_v39 }
 0x3fb   :  { %v10911_v10 = vcombine.high %v944_v0, %v948_v6  ;;  %v10910_v31 = vcombine.low %v944_v0, %v948_v6 }
 0x3fc   :  { %7331 = vmatpush1.bf16.msra.mxu0 %v10852_v11  ;;  %7675 = vmatpush1.bf16.msra.mxu1 %v10854_v33  ;;  %v951_v11 = vld [vmem:[#allocation5 + $0x1990] sm:$0xff] }
 0x3fd   :  { %7332 = vmatprep.subr.bf16.mxu0 %v10861_v34  ;;  %7676 = vmatprep.subr.bf16.mxu1 %v10863_v45  ;;  %v955_v33 = vld [vmem:[#allocation5 + $0x19b0] sm:$0xff]  ;;  %v952_v34 = vld [vmem:[#allocation5 + $0x1998] sm:$0xff] }
 0x3fe   :  { %v956_v45 = vld [vmem:[#allocation5 + $0x19b8] sm:$0xff]  ;;  %v10917_v14 = vcombine.high %v951_v11, %v955_v33  ;;  %v10916_v15 = vcombine.low %v951_v11, %v955_v33 }
 0x3ff   :  { %v10919_v46 = vcombine.high %v952_v34, %v956_v45  ;;  %v10918_v23 = vcombine.low %v952_v34, %v956_v45 }
 0x400   :  { %7333 = vmatpush1.bf16.msra.mxu0 %v10860_v16  ;;  %7677 = vmatpush1.bf16.msra.mxu1 %v10862_v19  ;;  %v959_v16 = vld [vmem:[#allocation5 + $0x19d0] sm:$0xff] }
 0x401   :  { %7345 = vmatprep.subr.bf16.mxu0 %v10869_v20  ;;  %7689 = vmatprep.subr.bf16.mxu1 %v10871_v21  ;;  %v963_v19 = vld [vmem:[#allocation5 + $0x19f0] sm:$0xff]  ;;  %v960_v20 = vld [vmem:[#allocation5 + $0x19d8] sm:$0xff] }
 0x402   :  { %v964_v21 = vld [vmem:[#allocation5 + $0x19f8] sm:$0xff]  ;;  %v10925_v25 = vcombine.high %v959_v16, %v963_v19  ;;  %v10924_v32 = vcombine.low %v959_v16, %v963_v19 }
 0x403   :  { %7335 = vmatmul.mubr.bf16.vlgmr.msra.gmra.mrb[4].mxu0 %v12466_v63  ;;  %7679 = vmatmul.mubr.bf16.vlgmr.msra.gmra.mrb[4].mxu1 %v12466_v63  ;;  %v10886_v63 = vcombine.low %v920_v53, %v924_v2  ;;  %v10927_v40 = vcombine.high %v960_v20, %v964_v21  ;;  %v10926_v36 = vcombine.low %v960_v20, %v964_v21 }
 0x404   :  { %7346 = vmatpush1.bf16.msra.mxu0 %v10868_v54  ;;  %7690 = vmatpush1.bf16.msra.mxu1 %v10870_v57  ;;  %v967_v54 = vld [vmem:[#allocation5 + $0x1a10] sm:$0xff] }
 0x405   :  { %7347 = vmatprep.subr.bf16.mxu0 %v10877_v26  ;;  %7691 = vmatprep.subr.bf16.mxu1 %v10879_v28  ;;  %v971_v57 = vld [vmem:[#allocation5 + $0x1a30] sm:$0xff]  ;;  %v968_v26 = vld [vmem:[#allocation5 + $0x1a18] sm:$0xff] }
 0x406   :  { %7377 = vmatprep.mubr.bf16.mxu0 %v12474_v43  ;;  %7721 = vmatprep.mubr.bf16.mxu1 %v12474_v43  ;;  %v10903_v43 = vcombine.high %v936_v29, %v940_v59  ;;  %v972_v28 = vld [vmem:[#allocation5 + $0x1a38] sm:$0xff]  ;;  %v10933_v53 = vcombine.high %v967_v54, %v971_v57  ;;  %v10932_v47 = vcombine.low %v967_v54, %v971_v57 }
 0x407   :  { %v10935_v2 = vcombine.high %v968_v26, %v972_v28  ;;  %v10934_v48 = vcombine.low %v968_v26, %v972_v28 }
 0x408   :  { %7348 = vmatpush1.bf16.msra.mxu0 %v10876_v37  ;;  %7692 = vmatpush1.bf16.msra.mxu1 %v10878_v41  ;;  %v975_v37 = vld [vmem:[#allocation5 + $0x1a50] sm:$0xff] }
 0x409   :  { %7349 = vmatprep.subr.bf16.mxu0 %v10885_v17  ;;  %7693 = vmatprep.subr.bf16.mxu1 %v10887_v5  ;;  %v979_v41 = vld [vmem:[#allocation5 + $0x1a70] sm:$0xff]  ;;  %v976_v17 = vld [vmem:[#allocation5 + $0x1a58] sm:$0xff] }
 0x40a   :  { %v980_v5 = vld [vmem:[#allocation5 + $0x1a78] sm:$0xff]  ;;  %v10941_v51 = vcombine.high %v975_v37, %v979_v41  ;;  %v10940_v56 = vcombine.low %v975_v37, %v979_v41 }
 0x40b   :  { %v10943_v1 = vcombine.high %v976_v17, %v980_v5  ;;  %v10942_v27 = vcombine.low %v976_v17, %v980_v5 }
 0x40c   :  { %7350 = vmatpush1.bf16.msra.mxu0 %v10884_v3  ;;  %7694 = vmatpush1.bf16.msra.mxu1 %v10886_v63  ;;  %v983_v3 = vld [vmem:[#allocation5 + $0x1a90] sm:$0xff] }
 0x40d   :  { %7351 = vmatprep.subr.bf16.mxu0 %v10893_v12  ;;  %7695 = vmatprep.subr.bf16.mxu1 %v10895_v55  ;;  %v987_v63 = vld [vmem:[#allocation5 + $0x1ab0] sm:$0xff]  ;;  %v984_v12 = vld [vmem:[#allocation5 + $0x1a98] sm:$0xff] }
 0x40e   :  { %v988_v55 = vld [vmem:[#allocation5 + $0x1ab8] sm:$0xff]  ;;  %v10949_v29 = vcombine.high %v983_v3, %v987_v63  ;;  %v10948_v62 = vcombine.low %v983_v3, %v987_v63 }
 0x40f   :  { %v10951_v59 = vcombine.high %v984_v12, %v988_v55  ;;  %v10950_v39 = vcombine.low %v984_v12, %v988_v55 }
 0x410   :  { %7352 = vmatpush1.bf16.msra.mxu0 %v10892_v58  ;;  %7696 = vmatpush1.bf16.msra.mxu1 %v10894_v60  ;;  %v991_v58 = vld [vmem:[#allocation5 + $0x1ad0] sm:$0xff] }
 0x411   :  { %7353 = vmatprep.subr.bf16.mxu0 %v10901_v61  ;;  %7697 = vmatprep.subr.bf16.mxu1 %v10903_v43  ;;  %v995_v60 = vld [vmem:[#allocation5 + $0x1af0] sm:$0xff]  ;;  %v992_v61 = vld [vmem:[#allocation5 + $0x1ad8] sm:$0xff] }
 0x412   :  { %v996_v43 = vld [vmem:[#allocation5 + $0x1af8] sm:$0xff]  ;;  %v10957_v0 = vcombine.high %v991_v58, %v995_v60  ;;  %v10956_v11 = vcombine.low %v991_v58, %v995_v60 }
 0x413   :  { %v10959_v6 = vcombine.high %v992_v61, %v996_v43  ;;  %v10958_v33 = vcombine.low %v992_v61, %v996_v43 }
 0x414   :  { %7354 = vmatpush1.bf16.msra.mxu0 %v10900_v7  ;;  %7698 = vmatpush1.bf16.msra.mxu1 %v10902_v8  ;;  %v999_v7 = vld [vmem:[#allocation5 + $0x1b10] sm:$0xff] }
 0x415   :  { %7355 = vmatprep.subr.bf16.mxu0 %v10909_v9  ;;  %7699 = vmatprep.subr.bf16.mxu1 %v10911_v10  ;;  %v1003_v8 = vld [vmem:[#allocation5 + $0x1b30] sm:$0xff]  ;;  %v1000_v9 = vld [vmem:[#allocation5 + $0x1b18] sm:$0xff] }
 0x416   :  { %v1004_v10 = vld [vmem:[#allocation5 + $0x1b38] sm:$0xff]  ;;  %v10965_v34 = vcombine.high %v999_v7, %v1003_v8  ;;  %v10964_v16 = vcombine.low %v999_v7, %v1003_v8 }
 0x417   :  { %v10967_v45 = vcombine.high %v1000_v9, %v1004_v10  ;;  %v10966_v19 = vcombine.low %v1000_v9, %v1004_v10 }
 0x418   :  { %7356 = vmatpush1.bf16.msra.mxu0 %v10908_v13  ;;  %7700 = vmatpush1.bf16.msra.mxu1 %v10910_v31  ;;  %v1007_v13 = vld [vmem:[#allocation5 + $0x1b50] sm:$0xff] }
 0x419   :  { %7357 = vmatprep.subr.bf16.mxu0 %v10917_v14  ;;  %7701 = vmatprep.subr.bf16.mxu1 %v10919_v46  ;;  %v1011_v31 = vld [vmem:[#allocation5 + $0x1b70] sm:$0xff]  ;;  %v1008_v14 = vld [vmem:[#allocation5 + $0x1b58] sm:$0xff] }
 0x41a   :  { %v1012_v46 = vld [vmem:[#allocation5 + $0x1b78] sm:$0xff]  ;;  %v10973_v20 = vcombine.high %v1007_v13, %v1011_v31  ;;  %v10972_v54 = vcombine.low %v1007_v13, %v1011_v31 }
 0x41b   :  { %v10975_v21 = vcombine.high %v1008_v14, %v1012_v46  ;;  %v10974_v57 = vcombine.low %v1008_v14, %v1012_v46  ;;  %v1063_v46 = vld [vmem:[#allocation5 + $0x1d10] sm:$0xff] }
 0x41c   :  { %7358 = vmatpush1.bf16.msra.mxu0 %v10916_v15  ;;  %7702 = vmatpush1.bf16.msra.mxu1 %v10918_v23  ;;  %v1015_v15 = vld [vmem:[#allocation5 + $0x1b90] sm:$0xff] }
 0x41d   :  { %7359 = vmatprep.subr.bf16.mxu0 %v10925_v25  ;;  %7703 = vmatprep.subr.bf16.mxu1 %v10927_v40  ;;  %v1019_v23 = vld [vmem:[#allocation5 + $0x1bb0] sm:$0xff]  ;;  %v1016_v25 = vld [vmem:[#allocation5 + $0x1b98] sm:$0xff] }
 0x41e   :  { %v1020_v40 = vld [vmem:[#allocation5 + $0x1bb8] sm:$0xff]  ;;  %v10981_v26 = vcombine.high %v1015_v15, %v1019_v23  ;;  %v10980_v37 = vcombine.low %v1015_v15, %v1019_v23 }
 0x41f   :  { %v10983_v28 = vcombine.high %v1016_v25, %v1020_v40  ;;  %v10982_v41 = vcombine.low %v1016_v25, %v1020_v40  ;;  %v1071_v25 = vld [vmem:[#allocation5 + $0x1d50] sm:$0xff] }
 0x420   :  { %7360 = vmatpush1.bf16.msra.mxu0 %v10924_v32  ;;  %7704 = vmatpush1.bf16.msra.mxu1 %v10926_v36  ;;  %v1023_v32 = vld [vmem:[#allocation5 + $0x1bd0] sm:$0xff] }
 0x421   :  { %7361 = vmatprep.subr.bf16.mxu0 %v10933_v53  ;;  %7705 = vmatprep.subr.bf16.mxu1 %v10935_v2  ;;  %v1027_v36 = vld [vmem:[#allocation5 + $0x1bf0] sm:$0xff]  ;;  %v1024_v53 = vld [vmem:[#allocation5 + $0x1bd8] sm:$0xff] }
 0x422   :  { %v1028_v2 = vld [vmem:[#allocation5 + $0x1bf8] sm:$0xff]  ;;  %v10989_v17 = vcombine.high %v1023_v32, %v1027_v36  ;;  %v10988_v3 = vcombine.low %v1023_v32, %v1027_v36  ;;  %v1075_v40 = vld [vmem:[#allocation5 + $0x1d70] sm:$0xff] }
 0x423   :  { %v10991_v5 = vcombine.high %v1024_v53, %v1028_v2  ;;  %v10990_v63 = vcombine.low %v1024_v53, %v1028_v2  ;;  %v11037_v32 = vcombine.high %v1071_v25, %v1075_v40  ;;  %v1079_v53 = vld [vmem:[#allocation5 + $0x1d90] sm:$0xff] }
 0x424   :  { %7362 = vmatpush1.bf16.msra.mxu0 %v10932_v47  ;;  %7706 = vmatpush1.bf16.msra.mxu1 %v10934_v48  ;;  %v1031_v47 = vld [vmem:[#allocation5 + $0x1c10] sm:$0xff] }
 0x425   :  { %7363 = vmatprep.subr.bf16.mxu0 %v10941_v51  ;;  %7707 = vmatprep.subr.bf16.mxu1 %v10943_v1  ;;  %v1035_v48 = vld [vmem:[#allocation5 + $0x1c30] sm:$0xff]  ;;  %v1032_v51 = vld [vmem:[#allocation5 + $0x1c18] sm:$0xff] }
 0x426   :  { %v1036_v1 = vld [vmem:[#allocation5 + $0x1c38] sm:$0xff]  ;;  %v10997_v12 = vcombine.high %v1031_v47, %v1035_v48  ;;  %v10996_v58 = vcombine.low %v1031_v47, %v1035_v48  ;;  %v1083_v2 = vld [vmem:[#allocation5 + $0x1db0] sm:$0xff] }
 0x427   :  { %v10999_v55 = vcombine.high %v1032_v51, %v1036_v1  ;;  %v10998_v60 = vcombine.low %v1032_v51, %v1036_v1  ;;  %v11045_v47 = vcombine.high %v1079_v53, %v1083_v2  ;;  %v1087_v51 = vld [vmem:[#allocation5 + $0x1dd0] sm:$0xff] }
 0x428   :  { %7364 = vmatpush1.bf16.msra.mxu0 %v10940_v56  ;;  %7708 = vmatpush1.bf16.msra.mxu1 %v10942_v27  ;;  %v1039_v56 = vld [vmem:[#allocation5 + $0x1c50] sm:$0xff] }
 0x429   :  { %7365 = vmatprep.subr.bf16.mxu0 %v10949_v29  ;;  %7709 = vmatprep.subr.bf16.mxu1 %v10951_v59  ;;  %v1043_v27 = vld [vmem:[#allocation5 + $0x1c70] sm:$0xff]  ;;  %v1040_v29 = vld [vmem:[#allocation5 + $0x1c58] sm:$0xff] }
 0x42a   :  { %v1044_v59 = vld [vmem:[#allocation5 + $0x1c78] sm:$0xff]  ;;  %v11005_v61 = vcombine.high %v1039_v56, %v1043_v27  ;;  %v11004_v7 = vcombine.low %v1039_v56, %v1043_v27  ;;  %v1091_v1 = vld [vmem:[#allocation5 + $0x1df0] sm:$0xff] }
 0x42b   :  { %v11007_v43 = vcombine.high %v1040_v29, %v1044_v59  ;;  %v11006_v8 = vcombine.low %v1040_v29, %v1044_v59  ;;  %v11053_v56 = vcombine.high %v1087_v51, %v1091_v1  ;;  %v1095_v29 = vld [vmem:[#allocation5 + $0x1e10] sm:$0xff] }
 0x42c   :  { %7366 = vmatpush1.bf16.msra.mxu0 %v10948_v62  ;;  %7710 = vmatpush1.bf16.msra.mxu1 %v10950_v39  ;;  %v1047_v62 = vld [vmem:[#allocation5 + $0x1c90] sm:$0xff] }
 0x42d   :  { %7367 = vmatprep.subr.bf16.mxu0 %v10957_v0  ;;  %7711 = vmatprep.subr.bf16.mxu1 %v10959_v6  ;;  %v1051_v39 = vld [vmem:[#allocation5 + $0x1cb0] sm:$0xff]  ;;  %v1048_v0 = vld [vmem:[#allocation5 + $0x1c98] sm:$0xff] }
 0x42e   :  { %v1052_v6 = vld [vmem:[#allocation5 + $0x1cb8] sm:$0xff]  ;;  %v11013_v9 = vcombine.high %v1047_v62, %v1051_v39  ;;  %v11012_v13 = vcombine.low %v1047_v62, %v1051_v39  ;;  %v1099_v59 = vld [vmem:[#allocation5 + $0x1e30] sm:$0xff] }
 0x42f   :  { %v11015_v10 = vcombine.high %v1048_v0, %v1052_v6  ;;  %v11061_v62 = vcombine.high %v1095_v29, %v1099_v59 }
 0x430   :  { %7368 = vmatpush1.bf16.msra.mxu0 %v10956_v11  ;;  %7712 = vmatpush1.bf16.msra.mxu1 %v10958_v33  ;;  %v1055_v11 = vld [vmem:[#allocation5 + $0x1cd0] sm:$0xff] }
 0x431   :  { %7369 = vmatprep.subr.bf16.mxu0 %v10965_v34  ;;  %7713 = vmatprep.subr.bf16.mxu1 %v10967_v45  ;;  %v1059_v33 = vld [vmem:[#allocation5 + $0x1cf0] sm:$0xff]  ;;  %v1056_v34 = vld [vmem:[#allocation5 + $0x1cd8] sm:$0xff] }
 0x432   :  { %v1060_v45 = vld [vmem:[#allocation5 + $0x1cf8] sm:$0xff]  ;;  %v11021_v31 = vcombine.high %v1055_v11, %v1059_v33 }
 0x433   :  { %v11023_v14 = vcombine.high %v1056_v34, %v1060_v45  ;;  %v11022_v15 = vcombine.low %v1056_v34, %v1060_v45  ;;  %v1111_v34 = vld [vmem:[#allocation5 + $0x1e90] sm:$0xff] }
 0x434   :  { %7370 = vmatpush1.bf16.msra.mxu0 %v10964_v16  ;;  %7714 = vmatpush1.bf16.msra.mxu1 %v10966_v19  ;;  %v1067_v16 = vld [vmem:[#allocation5 + $0x1d30] sm:$0xff]  ;;  %v1064_v19 = vld [vmem:[#allocation5 + $0x1d18] sm:$0xff] }
 0x435   :  { %7371 = vmatprep.subr.bf16.mxu0 %v10973_v20  ;;  %7715 = vmatprep.subr.bf16.mxu1 %v10975_v21  ;;  %v1068_v20 = vld [vmem:[#allocation5 + $0x1d38] sm:$0xff]  ;;  %v11020_v21 = vcombine.low %v1055_v11, %v1059_v33  ;;  %v11029_v23 = vcombine.high %v1063_v46, %v1067_v16  ;;  %v1115_v45 = vld [vmem:[#allocation5 + $0x1eb0] sm:$0xff] }
 0x438   :  { %7372 = vmatpush1.bf16.msra.mxu0 %v10972_v54  ;;  %7716 = vmatpush1.bf16.msra.mxu1 %v10974_v57  ;;  %v1072_v54 = vld [vmem:[#allocation5 + $0x1d58] sm:$0xff] }
 0x439   :  { %7373 = vmatprep.subr.bf16.mxu0 %v10981_v26  ;;  %7717 = vmatprep.subr.bf16.mxu1 %v10983_v28  ;;  %v1076_v57 = vld [vmem:[#allocation5 + $0x1d78] sm:$0xff]  ;;  %v11028_v26 = vcombine.low %v1063_v46, %v1067_v16  ;;  %v11030_v28 = vcombine.low %v1064_v19, %v1068_v20  ;;  %v11077_v46 = vcombine.high %v1111_v34, %v1115_v45 }
 0x43a   :  { %v11039_v36 = vcombine.high %v1072_v54, %v1076_v57 }
 0x43c   :  { %7374 = vmatpush1.bf16.msra.mxu0 %v10980_v37  ;;  %7718 = vmatpush1.bf16.msra.mxu1 %v10982_v41  ;;  %v1080_v37 = vld [vmem:[#allocation5 + $0x1d98] sm:$0xff] }
 0x43d   :  { %7375 = vmatprep.subr.bf16.mxu0 %v10989_v17  ;;  %7719 = vmatprep.subr.bf16.mxu1 %v10991_v5  ;;  %v1084_v41 = vld [vmem:[#allocation5 + $0x1db8] sm:$0xff]  ;;  %v11036_v17 = vcombine.low %v1071_v25, %v1075_v40  ;;  %v11038_v5 = vcombine.low %v1072_v54, %v1076_v57  ;;  %v1127_v54 = vld [vmem:[#allocation5 + $0x1f10] sm:$0xff] }
 0x43e   :  { %v11047_v48 = vcombine.high %v1080_v37, %v1084_v41  ;;  %v1131_v57 = vld [vmem:[#allocation5 + $0x1f30] sm:$0xff] }
 0x440   :  { %7376 = vmatpush1.bf16.msra.mxu0 %v10988_v3  ;;  %7720 = vmatpush1.bf16.msra.mxu1 %v10990_v63  ;;  %v1088_v3 = vld [vmem:[#allocation5 + $0x1dd8] sm:$0xff] }
 0x441   :  { %7388 = vmatprep.subr.bf16.mxu0 %v10997_v12  ;;  %7732 = vmatprep.subr.bf16.mxu1 %v10999_v55  ;;  %v1092_v63 = vld [vmem:[#allocation5 + $0x1df8] sm:$0xff]  ;;  %v11044_v12 = vcombine.low %v1079_v53, %v1083_v2  ;;  %v11046_v55 = vcombine.low %v1080_v37, %v1084_v41  ;;  %v11093_v53 = vcombine.high %v1127_v54, %v1131_v57  ;;  %v1135_v37 = vld [vmem:[#allocation5 + $0x1f50] sm:$0xff] }
 0x442   :  { %v11055_v27 = vcombine.high %v1088_v3, %v1092_v63  ;;  %v1139_v41 = vld [vmem:[#allocation5 + $0x1f70] sm:$0xff] }
 0x443   :  { %7378 = vmatmul.mubr.bf16.vlgmr.msra.gmra.mrb[4].mxu0 %v12482_v4  ;;  %7722 = vmatmul.mubr.bf16.vlgmr.msra.gmra.mrb[4].mxu1 %v12482_v4  ;;  %v11014_v4 = vcombine.low %v1048_v0, %v1052_v6  ;;  %v1103_v0 = vld [vmem:[#allocation5 + $0x1e50] sm:$0xff] }
 0x444   :  { %7389 = vmatpush1.bf16.msra.mxu0 %v10996_v58  ;;  %7733 = vmatpush1.bf16.msra.mxu1 %v10998_v60  ;;  %v1096_v58 = vld [vmem:[#allocation5 + $0x1e18] sm:$0xff]  ;;  %v1107_v6 = vld [vmem:[#allocation5 + $0x1e70] sm:$0xff] }
 0x445   :  { %7390 = vmatprep.subr.bf16.mxu0 %v11005_v61  ;;  %7734 = vmatprep.subr.bf16.mxu1 %v11007_v43  ;;  %v1100_v60 = vld [vmem:[#allocation5 + $0x1e38] sm:$0xff]  ;;  %v11052_v61 = vcombine.low %v1087_v51, %v1091_v1  ;;  %v11054_v43 = vcombine.low %v1088_v3, %v1092_v63  ;;  %v11069_v11 = vcombine.high %v1103_v0, %v1107_v6  ;;  %v1143_v3 = vld [vmem:[#allocation5 + $0x1f90] sm:$0xff] }
 0x446   :  { %7420 = vmatprep.mubr.bf16.mxu0 %v12490_v52  ;;  %7764 = vmatprep.mubr.bf16.mxu1 %v12490_v52  ;;  %v11031_v52 = vcombine.high %v1064_v19, %v1068_v20  ;;  %v11063_v39 = vcombine.high %v1096_v58, %v1100_v60  ;;  %v1119_v19 = vld [vmem:[#allocation5 + $0x1ed0] sm:$0xff]  ;;  %v11101_v51 = vcombine.high %v1135_v37, %v1139_v41 }
 0x447   :  { %v1123_v20 = vld [vmem:[#allocation5 + $0x1ef0] sm:$0xff] }
 0x448   :  { %7391 = vmatpush1.bf16.msra.mxu0 %v11004_v7  ;;  %7735 = vmatpush1.bf16.msra.mxu1 %v11006_v8  ;;  %v1104_v7 = vld [vmem:[#allocation5 + $0x1e58] sm:$0xff]  ;;  %v11085_v25 = vcombine.high %v1119_v19, %v1123_v20  ;;  %v1147_v63 = vld [vmem:[#allocation5 + $0x1fb0] sm:$0xff] }
 0x449   :  { %7392 = vmatprep.subr.bf16.mxu0 %v11013_v9  ;;  %7736 = vmatprep.subr.bf16.mxu1 %v11015_v10  ;;  %v1108_v8 = vld [vmem:[#allocation5 + $0x1e78] sm:$0xff]  ;;  %v11060_v9 = vcombine.low %v1095_v29, %v1099_v59  ;;  %v11062_v10 = vcombine.low %v1096_v58, %v1100_v60  ;;  %v11109_v29 = vcombine.high %v1143_v3, %v1147_v63  ;;  %v1151_v58 = vld [vmem:[#allocation5 + $0x1fd0] sm:$0xff] }
 0x44a   :  { %v11071_v33 = vcombine.high %v1104_v7, %v1108_v8  ;;  %v1155_v60 = vld [vmem:[#allocation5 + $0x1ff0] sm:$0xff] }
 0x44c   :  { %7393 = vmatpush1.bf16.msra.mxu0 %v11012_v13  ;;  %7737 = vmatpush1.bf16.msra.mxu1 %v11014_v4  ;;  %v1112_v13 = vld [vmem:[#allocation5 + $0x1e98] sm:$0xff] }
 0x44d   :  { %7394 = vmatprep.subr.bf16.mxu0 %v11021_v31  ;;  %7738 = vmatprep.subr.bf16.mxu1 %v11023_v14  ;;  %v1116_v4 = vld [vmem:[#allocation5 + $0x1eb8] sm:$0xff]  ;;  %v11068_v31 = vcombine.low %v1103_v0, %v1107_v6  ;;  %v11070_v14 = vcombine.low %v1104_v7, %v1108_v8  ;;  %v11117_v0 = vcombine.high %v1151_v58, %v1155_v60 }
 0x44e   :  { %v11079_v16 = vcombine.high %v1112_v13, %v1116_v4  ;;  %v11116_v7 = vcombine.low %v1151_v58, %v1155_v60  ;;  %v11696_v58 = vld [vmem:[#allocation8 + $0x160] ss:$16 sps:$4 sm:$0xff]   ;;  %v11699_v60 = vld [vmem:[#allocation8 + $0x168] ss:$16 sps:$4 sm:$0xff]  }
 0x450   :  { %7395 = vmatpush1.bf16.msra.mxu0 %v11020_v21  ;;  %7739 = vmatpush1.bf16.msra.mxu1 %v11022_v15  ;;  %v1120_v21 = vld [vmem:[#allocation5 + $0x1ed8] sm:$0xff] }
 0x451   :  { %7396 = vmatprep.subr.bf16.mxu0 %v11029_v23  ;;  %7740 = vmatprep.subr.bf16.mxu1 %v11031_v52  ;;  %v1124_v15 = vld [vmem:[#allocation5 + $0x1ef8] sm:$0xff]  ;;  %v11076_v23 = vcombine.low %v1111_v34, %v1115_v45  ;;  %v11078_v52 = vcombine.low %v1112_v13, %v1116_v4  ;;  %v11641_v45 = vld [vmem:[#allocation8 + $0x2c] ss:$16 sps:$4 sm:$0xff]   ;;  %v11639_v4 = vld [vmem:[#allocation8 + $0x28] ss:$16 sps:$4 sm:$0xff]  }
 0x452   :  { %v11087_v40 = vcombine.high %v1120_v21, %v1124_v15  ;;  %v11638_v34 = vld [vmem:[#allocation8 + $0x24] ss:$16 sps:$4 sm:$0xff]   ;;  %v11636_v13 = vld [vmem:[#allocation8 + $0x20] ss:$16 sps:$4 sm:$0xff]  }
 0x454   :  { %7397 = vmatpush1.bf16.msra.mxu0 %v11028_v26  ;;  %7741 = vmatpush1.bf16.msra.mxu1 %v11030_v28  ;;  %v1128_v26 = vld [vmem:[#allocation5 + $0x1f18] sm:$0xff] }
 0x455   :  { %7398 = vmatprep.subr.bf16.mxu0 %v11037_v32  ;;  %7742 = vmatprep.subr.bf16.mxu1 %v11039_v36  ;;  %v1132_v28 = vld [vmem:[#allocation5 + $0x1f38] sm:$0xff]  ;;  %v11084_v32 = vcombine.low %v1119_v19, %v1123_v20  ;;  %v11086_v36 = vcombine.low %v1120_v21, %v1124_v15  ;;  %v11651_v21 = vld [vmem:[#allocation8 + $0x68] ss:$16 sps:$4 sm:$0xff]  }
 0x456   :  { %v11095_v2 = vcombine.high %v1128_v26, %v1132_v28  ;;  %v11650_v19 = vld [vmem:[#allocation8 + $0x64] ss:$16 sps:$4 sm:$0xff]   ;;  %v11648_v20 = vld [vmem:[#allocation8 + $0x60] ss:$16 sps:$4 sm:$0xff]  }
 0x457   :  { %v11656_v15 = vld [vmem:[#allocation8 + $0x84] ss:$16 sps:$4 sm:$0xff]  }
 0x458   :  { %7399 = vmatpush1.bf16.msra.mxu0 %v11036_v17  ;;  %7743 = vmatpush1.bf16.msra.mxu1 %v11038_v5  ;;  %v1136_v17 = vld [vmem:[#allocation5 + $0x1f58] sm:$0xff] }
 0x459   :  { %7400 = vmatprep.subr.bf16.mxu0 %v11045_v47  ;;  %7744 = vmatprep.subr.bf16.mxu1 %v11047_v48  ;;  %v1140_v5 = vld [vmem:[#allocation5 + $0x1f78] sm:$0xff]  ;;  %v11092_v47 = vcombine.low %v1127_v54, %v1131_v57  ;;  %v11094_v48 = vcombine.low %v1128_v26, %v1132_v28  ;;  %v11663_v57 = vld [vmem:[#allocation8 + $0xa8] ss:$16 sps:$4 sm:$0xff]   ;;  %v11671_v28 = vld [vmem:[#allocation8 + $0xcc] ss:$16 sps:$4 sm:$0xff]  }
 0x45a   :  { %v11103_v1 = vcombine.high %v1136_v17, %v1140_v5  ;;  %v11660_v54 = vld [vmem:[#allocation8 + $0xa0] ss:$16 sps:$4 sm:$0xff]   ;;  %v11668_v26 = vld [vmem:[#allocation8 + $0xc4] ss:$16 sps:$4 sm:$0xff]  }
 0x45c   :  { %7401 = vmatpush1.bf16.msra.mxu0 %v11044_v12  ;;  %7745 = vmatpush1.bf16.msra.mxu1 %v11046_v55  ;;  %v1144_v12 = vld [vmem:[#allocation5 + $0x1f98] sm:$0xff] }
 0x45d   :  { %7402 = vmatprep.subr.bf16.mxu0 %v11053_v56  ;;  %7746 = vmatprep.subr.bf16.mxu1 %v11055_v27  ;;  %v1148_v55 = vld [vmem:[#allocation5 + $0x1fb8] sm:$0xff]  ;;  %v11100_v56 = vcombine.low %v1135_v37, %v1139_v41  ;;  %v11102_v27 = vcombine.low %v1136_v17, %v1140_v5  ;;  %v11675_v41 = vld [vmem:[#allocation8 + $0xe8] ss:$16 sps:$4 sm:$0xff]   ;;  %v11683_v5 = vld [vmem:[#allocation8 + $0x10c] ss:$16 sps:$4 sm:$0xff]  }
 0x45e   :  { %v11111_v59 = vcombine.high %v1144_v12, %v1148_v55  ;;  %v11672_v37 = vld [vmem:[#allocation8 + $0xe0] ss:$16 sps:$4 sm:$0xff]   ;;  %v11680_v17 = vld [vmem:[#allocation8 + $0x104] ss:$16 sps:$4 sm:$0xff]  }
 0x460   :  { %7403 = vmatpush1.bf16.msra.mxu0 %v11052_v61  ;;  %7747 = vmatpush1.bf16.msra.mxu1 %v11054_v43  ;;  %v1152_v61 = vld [vmem:[#allocation5 + $0x1fd8] sm:$0xff] }
 0x461   :  { %7404 = vmatprep.subr.bf16.mxu0 %v11061_v62  ;;  %7748 = vmatprep.subr.bf16.mxu1 %v11063_v39  ;;  %v1156_v43 = vld [vmem:[#allocation5 + $0x1ff8] sm:$0xff]  ;;  %v11108_v62 = vcombine.low %v1143_v3, %v1147_v63  ;;  %v11110_v39 = vcombine.low %v1144_v12, %v1148_v55  ;;  %v11687_v63 = vld [vmem:[#allocation8 + $0x128] ss:$16 sps:$4 sm:$0xff]   ;;  %v11695_v55 = vld [vmem:[#allocation8 + $0x14c] ss:$16 sps:$4 sm:$0xff]  }
 0x462   :  { %v11119_v6 = vcombine.high %v1152_v61, %v1156_v43  ;;  %v11118_v8 = vcombine.low %v1152_v61, %v1156_v43  ;;  %v11684_v3 = vld [vmem:[#allocation8 + $0x120] ss:$16 sps:$4 sm:$0xff]   ;;  %v11692_v12 = vld [vmem:[#allocation8 + $0x144] ss:$16 sps:$4 sm:$0xff]   ;;  %v11707_v43 = vld [vmem:[#allocation8 + $0x18c] ss:$16 sps:$4 sm:$0xff]  }
 0x463   :  { %v11704_v61 = vld [vmem:[#allocation8 + $0x184] ss:$16 sps:$4 sm:$0xff]  }
 0x464   :  { %7405 = vmatpush1.bf16.msra.mxu0 %v11060_v9  ;;  %7749 = vmatpush1.bf16.msra.mxu1 %v11062_v10  ;;  %v11632_v9 = vld [vmem:[#allocation8 + $0x4] ss:$16 sps:$4 sm:$0xff]   ;;  %v11635_v10 = vld [vmem:[#allocation8 + $0xc] ss:$16 sps:$4 sm:$0xff]  }
 0x465   :  { %7406 = vmatprep.subr.bf16.mxu0 %v11069_v11  ;;  %7750 = vmatprep.subr.bf16.mxu1 %v11071_v33  ;;  %v11630_v11 = vld [vmem:[#allocation8] ss:$16 sps:$4 sm:$0xff]   ;;  %v11633_v33 = vld [vmem:[#allocation8 + $0x8] ss:$16 sps:$4 sm:$0xff]  }
 0x468   :  { %7407 = vmatpush1.bf16.msra.mxu0 %v11068_v31  ;;  %7751 = vmatpush1.bf16.msra.mxu1 %v11070_v14  ;;  %v11644_v31 = vld [vmem:[#allocation8 + $0x44] ss:$16 sps:$4 sm:$0xff]   ;;  %v11647_v14 = vld [vmem:[#allocation8 + $0x4c] ss:$16 sps:$4 sm:$0xff]  }
 0x469   :  { %7408 = vmatprep.subr.bf16.mxu0 %v11077_v46  ;;  %7752 = vmatprep.subr.bf16.mxu1 %v11079_v16  ;;  %v11642_v46 = vld [vmem:[#allocation8 + $0x40] ss:$16 sps:$4 sm:$0xff]   ;;  %v11645_v16 = vld [vmem:[#allocation8 + $0x48] ss:$16 sps:$4 sm:$0xff]  }
 0x46c   :  { %7409 = vmatpush1.bf16.msra.mxu0 %v11076_v23  ;;  %7753 = vmatpush1.bf16.msra.mxu1 %v11078_v52  ;;  %v11659_v23 = vld [vmem:[#allocation8 + $0x8c] ss:$16 sps:$4 sm:$0xff]   ;;  %v11657_v52 = vld [vmem:[#allocation8 + $0x88] ss:$16 sps:$4 sm:$0xff]  }
 0x46d   :  { %7410 = vmatprep.subr.bf16.mxu0 %v11085_v25  ;;  %7754 = vmatprep.subr.bf16.mxu1 %v11087_v40  ;;  %v11662_v25 = vld [vmem:[#allocation8 + $0xa4] ss:$16 sps:$4 sm:$0xff]   ;;  %v11665_v40 = vld [vmem:[#allocation8 + $0xac] ss:$16 sps:$4 sm:$0xff]  }
 0x470   :  { %7411 = vmatpush1.bf16.msra.mxu0 %v11084_v32  ;;  %7755 = vmatpush1.bf16.msra.mxu1 %v11086_v36  ;;  %v11666_v32 = vld [vmem:[#allocation8 + $0xc0] ss:$16 sps:$4 sm:$0xff]   ;;  %v11669_v36 = vld [vmem:[#allocation8 + $0xc8] ss:$16 sps:$4 sm:$0xff]  }
 0x471   :  { %7412 = vmatprep.subr.bf16.mxu0 %v11093_v53  ;;  %7756 = vmatprep.subr.bf16.mxu1 %v11095_v2  ;;  %v11674_v53 = vld [vmem:[#allocation8 + $0xe4] ss:$16 sps:$4 sm:$0xff]   ;;  %v11677_v2 = vld [vmem:[#allocation8 + $0xec] ss:$16 sps:$4 sm:$0xff]  }
 0x474   :  { %7413 = vmatpush1.bf16.msra.mxu0 %v11092_v47  ;;  %7757 = vmatpush1.bf16.msra.mxu1 %v11094_v48  ;;  %v11678_v47 = vld [vmem:[#allocation8 + $0x100] ss:$16 sps:$4 sm:$0xff]   ;;  %v11681_v48 = vld [vmem:[#allocation8 + $0x108] ss:$16 sps:$4 sm:$0xff]  }
 0x475   :  { %7414 = vmatprep.subr.bf16.mxu0 %v11101_v51  ;;  %7758 = vmatprep.subr.bf16.mxu1 %v11103_v1  ;;  %v11686_v51 = vld [vmem:[#allocation8 + $0x124] ss:$16 sps:$4 sm:$0xff]   ;;  %v11689_v1 = vld [vmem:[#allocation8 + $0x12c] ss:$16 sps:$4 sm:$0xff]  }
 0x478   :  { %7415 = vmatpush1.bf16.msra.mxu0 %v11100_v56  ;;  %7759 = vmatpush1.bf16.msra.mxu1 %v11102_v27  ;;  %v11690_v56 = vld [vmem:[#allocation8 + $0x140] ss:$16 sps:$4 sm:$0xff]   ;;  %v11693_v27 = vld [vmem:[#allocation8 + $0x148] ss:$16 sps:$4 sm:$0xff]  }
 0x479   :  { %7416 = vmatprep.subr.bf16.mxu0 %v11109_v29  ;;  %7760 = vmatprep.subr.bf16.mxu1 %v11111_v59  ;;  %v11698_v29 = vld [vmem:[#allocation8 + $0x164] ss:$16 sps:$4 sm:$0xff]   ;;  %v11701_v59 = vld [vmem:[#allocation8 + $0x16c] ss:$16 sps:$4 sm:$0xff]  }
 0x47c   :  { %7417 = vmatpush1.bf16.msra.mxu0 %v11108_v62  ;;  %7761 = vmatpush1.bf16.msra.mxu1 %v11110_v39  ;;  %v11702_v62 = vld [vmem:[#allocation8 + $0x180] ss:$16 sps:$4 sm:$0xff]   ;;  %v11705_v39 = vld [vmem:[#allocation8 + $0x188] ss:$16 sps:$4 sm:$0xff]  }
 0x47d   :  { %7418 = vmatprep.subr.bf16.mxu0 %v11117_v0  ;;  %7762 = vmatprep.subr.bf16.mxu1 %v11119_v6  ;;  %v11710_v0 = vld [vmem:[#allocation8 + $0x1a4] ss:$16 sps:$4 sm:$0xff]   ;;  %v11713_v6 = vld [vmem:[#allocation8 + $0x1ac] ss:$16 sps:$4 sm:$0xff]  }
 0x480   :  { %7419 = vmatpush1.bf16.msra.mxu0 %v11116_v7  ;;  %7763 = vmatpush1.bf16.msra.mxu1 %v11118_v8  ;;  %v11708_v7 = vld [vmem:[#allocation8 + $0x1a0] ss:$16 sps:$4 sm:$0xff]   ;;  %v11711_v8 = vld [vmem:[#allocation8 + $0x1a8] ss:$16 sps:$4 sm:$0xff]  }
 0x481   :  { %9357 = vmatprep.subr.bf16.mxu0 %v11632_v9  ;;  %9529 = vmatprep.subr.bf16.mxu1 %v11635_v10  ;;  %v11716_v9 = vld [vmem:[#allocation8 + $0x1c4] ss:$16 sps:$4 sm:$0xff]   ;;  %v11719_v10 = vld [vmem:[#allocation8 + $0x1cc] ss:$16 sps:$4 sm:$0xff]  }
 0x483   :  { %7421 = vmatmul.mubr.bf16.vlgmr.msra.gmra.mrb[4].mxu0 %v12498_v22  ;;  %7765 = vmatmul.mubr.bf16.vlgmr.msra.gmra.mrb[4].mxu1 %v12498_v22  ;;  %v11653_v22 = vld [vmem:[#allocation8 + $0x6c] ss:$16 sps:$4 sm:$0xff]  }
 0x484   :  { %9358 = vmatpush1.bf16.msra.mxu0 %v11630_v11  ;;  %9389 = vmatprep.mubr.bf16.mxu0 %v12534_v50  ;;  %v11714_v11 = vld [vmem:[#allocation8 + $0x1c0] ss:$16 sps:$4 sm:$0xff]  }
 0x485   :  { %9530 = vmatpush1.bf16.msra.mxu1 %v11633_v33  ;;  %9561 = vmatprep.mubr.bf16.mxu1 %v12534_v50  ;;  %v11654_v50 = vld [vmem:[#allocation8 + $0x80] ss:$16 sps:$4 sm:$0xff]   ;;  %v11717_v33 = vld [vmem:[#allocation8 + $0x1c8] ss:$16 sps:$4 sm:$0xff]  }
 0x486   :  { %9359 = vmatprep.subr.bf16.mxu0 %v11638_v34  ;;  %9531 = vmatprep.subr.bf16.mxu1 %v11641_v45  ;;  %v11722_v34 = vld [vmem:[#allocation8 + $0x1e4] ss:$16 sps:$4 sm:$0xff]   ;;  %v11725_v45 = vld [vmem:[#allocation8 + $0x1ec] ss:$16 sps:$4 sm:$0xff]  }
 0x488   :  { %9360 = vmatpush1.bf16.msra.mxu0 %v11636_v13  ;;  %v11720_v13 = vld [vmem:[#allocation8 + $0x1e0] ss:$16 sps:$4 sm:$0xff]  }
 0x489   :  { %9532 = vmatpush1.bf16.msra.mxu1 %v11639_v4  ;;  %9361 = vmatprep.subr.bf16.mxu0 %v11644_v31  ;;  %v11723_v4 = vld [vmem:[#allocation8 + $0x1e8] ss:$16 sps:$4 sm:$0xff]   ;;  %v11728_v31 = vld [vmem:[#allocation8 + $0x204] ss:$16 sps:$4 sm:$0xff]  }
 0x48a   :  { %9533 = vmatprep.subr.bf16.mxu1 %v11647_v14  ;;  %v11731_v14 = vld [vmem:[#allocation8 + $0x20c] ss:$16 sps:$4 sm:$0xff]  }
 0x48c   :  { %9362 = vmatpush1.bf16.msra.mxu0 %v11642_v46  ;;  %v11726_v46 = vld [vmem:[#allocation8 + $0x200] ss:$16 sps:$4 sm:$0xff]  }
 0x48d   :  { %9534 = vmatpush1.bf16.msra.mxu1 %v11645_v16  ;;  %9363 = vmatprep.subr.bf16.mxu0 %v11650_v19  ;;  %v11729_v16 = vld [vmem:[#allocation8 + $0x208] ss:$16 sps:$4 sm:$0xff]   ;;  %v11734_v19 = vld [vmem:[#allocation8 + $0x224] ss:$16 sps:$4 sm:$0xff]  }
 0x48e   :  { %9535 = vmatprep.subr.bf16.mxu1 %v11653_v22  ;;  %v11737_v22 = vld [vmem:[#allocation8 + $0x22c] ss:$16 sps:$4 sm:$0xff]  }
 0x490   :  { %9364 = vmatpush1.bf16.msra.mxu0 %v11648_v20  ;;  %v11732_v20 = vld [vmem:[#allocation8 + $0x220] ss:$16 sps:$4 sm:$0xff]  }
 0x491   :  { %9536 = vmatpush1.bf16.msra.mxu1 %v11651_v21  ;;  %9365 = vmatprep.subr.bf16.mxu0 %v11656_v15  ;;  %v11735_v21 = vld [vmem:[#allocation8 + $0x228] ss:$16 sps:$4 sm:$0xff]   ;;  %v11740_v15 = vld [vmem:[#allocation8 + $0x244] ss:$16 sps:$4 sm:$0xff]  }
 0x492   :  { %9537 = vmatprep.subr.bf16.mxu1 %v11659_v23  ;;  %v11743_v23 = vld [vmem:[#allocation8 + $0x24c] ss:$16 sps:$4 sm:$0xff]  }
 0x494   :  { %9366 = vmatpush1.bf16.msra.mxu0 %v11654_v50  ;;  %v11738_v50 = vld [vmem:[#allocation8 + $0x240] ss:$16 sps:$4 sm:$0xff]  }
 0x495   :  { %9538 = vmatpush1.bf16.msra.mxu1 %v11657_v52  ;;  %9367 = vmatprep.subr.bf16.mxu0 %v11662_v25  ;;  %v11741_v52 = vld [vmem:[#allocation8 + $0x248] ss:$16 sps:$4 sm:$0xff]   ;;  %v11746_v25 = vld [vmem:[#allocation8 + $0x264] ss:$16 sps:$4 sm:$0xff]  }
 0x496   :  { %9539 = vmatprep.subr.bf16.mxu1 %v11665_v40  ;;  %v11744_v40 = vld [vmem:[#allocation8 + $0x260] ss:$16 sps:$4 sm:$0xff]  }
 0x498   :  { %9368 = vmatpush1.bf16.msra.mxu0 %v11660_v54  ;;  %v11747_v54 = vld [vmem:[#allocation8 + $0x268] ss:$16 sps:$4 sm:$0xff]  }
 0x499   :  { %9540 = vmatpush1.bf16.msra.mxu1 %v11663_v57  ;;  %9369 = vmatprep.subr.bf16.mxu0 %v11668_v26  ;;  %v11752_v57 = vld [vmem:[#allocation8 + $0x284] ss:$16 sps:$4 sm:$0xff]   ;;  %v11755_v26 = vld [vmem:[#allocation8 + $0x28c] ss:$16 sps:$4 sm:$0xff]  }
 0x49a   :  { %9541 = vmatprep.subr.bf16.mxu1 %v11671_v28  ;;  %v11753_v28 = vld [vmem:[#allocation8 + $0x288] ss:$16 sps:$4 sm:$0xff]  }
 0x49c   :  { %9370 = vmatpush1.bf16.msra.mxu0 %v11666_v32  ;;  %v11758_v32 = vld [vmem:[#allocation8 + $0x2a4] ss:$16 sps:$4 sm:$0xff]  }
 0x49d   :  { %9542 = vmatpush1.bf16.msra.mxu1 %v11669_v36  ;;  %9371 = vmatprep.subr.bf16.mxu0 %v11674_v53  ;;  %v11761_v36 = vld [vmem:[#allocation8 + $0x2ac] ss:$16 sps:$4 sm:$0xff]   ;;  %v11756_v53 = vld [vmem:[#allocation8 + $0x2a0] ss:$16 sps:$4 sm:$0xff]  }
 0x49e   :  { %9543 = vmatprep.subr.bf16.mxu1 %v11677_v2  ;;  %v11759_v2 = vld [vmem:[#allocation8 + $0x2a8] ss:$16 sps:$4 sm:$0xff]  }
 0x4a0   :  { %9372 = vmatpush1.bf16.msra.mxu0 %v11672_v37  ;;  %v11764_v37 = vld [vmem:[#allocation8 + $0x2c4] ss:$16 sps:$4 sm:$0xff]  }
 0x4a1   :  { %9544 = vmatpush1.bf16.msra.mxu1 %v11675_v41  ;;  %9373 = vmatprep.subr.bf16.mxu0 %v11680_v17  ;;  %v11767_v41 = vld [vmem:[#allocation8 + $0x2cc] ss:$16 sps:$4 sm:$0xff]   ;;  %v11762_v17 = vld [vmem:[#allocation8 + $0x2c0] ss:$16 sps:$4 sm:$0xff]  }
 0x4a2   :  { %9545 = vmatprep.subr.bf16.mxu1 %v11683_v5  ;;  %v11765_v5 = vld [vmem:[#allocation8 + $0x2c8] ss:$16 sps:$4 sm:$0xff]  }
 0x4a4   :  { %9374 = vmatpush1.bf16.msra.mxu0 %v11678_v47  ;;  %v11770_v47 = vld [vmem:[#allocation8 + $0x2e4] ss:$16 sps:$4 sm:$0xff]  }
 0x4a5   :  { %9546 = vmatpush1.bf16.msra.mxu1 %v11681_v48  ;;  %9375 = vmatprep.subr.bf16.mxu0 %v11686_v51  ;;  %v11773_v48 = vld [vmem:[#allocation8 + $0x2ec] ss:$16 sps:$4 sm:$0xff]   ;;  %v11768_v51 = vld [vmem:[#allocation8 + $0x2e0] ss:$16 sps:$4 sm:$0xff]  }
 0x4a6   :  { %9547 = vmatprep.subr.bf16.mxu1 %v11689_v1  ;;  %v11771_v1 = vld [vmem:[#allocation8 + $0x2e8] ss:$16 sps:$4 sm:$0xff]  }
 0x4a8   :  { %9376 = vmatpush1.bf16.msra.mxu0 %v11684_v3  ;;  %v11776_v3 = vld [vmem:[#allocation8 + $0x304] ss:$16 sps:$4 sm:$0xff]  }
 0x4a9   :  { %9548 = vmatpush1.bf16.msra.mxu1 %v11687_v63  ;;  %9377 = vmatprep.subr.bf16.mxu0 %v11692_v12  ;;  %v11779_v63 = vld [vmem:[#allocation8 + $0x30c] ss:$16 sps:$4 sm:$0xff]   ;;  %v11774_v12 = vld [vmem:[#allocation8 + $0x300] ss:$16 sps:$4 sm:$0xff]  }
 0x4aa   :  { %9549 = vmatprep.subr.bf16.mxu1 %v11695_v55  ;;  %v11777_v55 = vld [vmem:[#allocation8 + $0x308] ss:$16 sps:$4 sm:$0xff]  }
 0x4ac   :  { %9378 = vmatpush1.bf16.msra.mxu0 %v11690_v56  ;;  %v11782_v56 = vld [vmem:[#allocation8 + $0x324] ss:$16 sps:$4 sm:$0xff]  }
 0x4ad   :  { %9550 = vmatpush1.bf16.msra.mxu1 %v11693_v27  ;;  %9379 = vmatprep.subr.bf16.mxu0 %v11698_v29  ;;  %v11785_v27 = vld [vmem:[#allocation8 + $0x32c] ss:$16 sps:$4 sm:$0xff]   ;;  %v11780_v29 = vld [vmem:[#allocation8 + $0x320] ss:$16 sps:$4 sm:$0xff]  }
 0x4ae   :  { %9551 = vmatprep.subr.bf16.mxu1 %v11701_v59  ;;  %v11783_v59 = vld [vmem:[#allocation8 + $0x328] ss:$16 sps:$4 sm:$0xff]  }
 0x4b0   :  { %9380 = vmatpush1.bf16.msra.mxu0 %v11696_v58  ;;  %v11788_v58 = vld [vmem:[#allocation8 + $0x344] ss:$16 sps:$4 sm:$0xff]  }
 0x4b1   :  { %9552 = vmatpush1.bf16.msra.mxu1 %v11699_v60  ;;  %9381 = vmatprep.subr.bf16.mxu0 %v11704_v61  ;;  %v11791_v60 = vld [vmem:[#allocation8 + $0x34c] ss:$16 sps:$4 sm:$0xff]   ;;  %v11786_v61 = vld [vmem:[#allocation8 + $0x340] ss:$16 sps:$4 sm:$0xff]  }
 0x4b2   :  { %9553 = vmatprep.subr.bf16.mxu1 %v11707_v43  ;;  %v11789_v43 = vld [vmem:[#allocation8 + $0x348] ss:$16 sps:$4 sm:$0xff]  }
 0x4b4   :  { %9382 = vmatpush1.bf16.msra.mxu0 %v11702_v62  ;;  %v11794_v62 = vld [vmem:[#allocation8 + $0x364] ss:$16 sps:$4 sm:$0xff]  }
 0x4b5   :  { %9554 = vmatpush1.bf16.msra.mxu1 %v11705_v39  ;;  %9383 = vmatprep.subr.bf16.mxu0 %v11710_v0  ;;  %v11797_v39 = vld [vmem:[#allocation8 + $0x36c] ss:$16 sps:$4 sm:$0xff]   ;;  %v11792_v0 = vld [vmem:[#allocation8 + $0x360] ss:$16 sps:$4 sm:$0xff]  }
 0x4b6   :  { %9555 = vmatprep.subr.bf16.mxu1 %v11713_v6  ;;  %v11795_v6 = vld [vmem:[#allocation8 + $0x368] ss:$16 sps:$4 sm:$0xff]  }
 0x4b8   :  { %9384 = vmatpush1.bf16.msra.mxu0 %v11708_v7  ;;  %v11800_v7 = vld [vmem:[#allocation8 + $0x384] ss:$16 sps:$4 sm:$0xff]  }
 0x4b9   :  { %9556 = vmatpush1.bf16.msra.mxu1 %v11711_v8  ;;  %9385 = vmatprep.subr.bf16.mxu0 %v11716_v9  ;;  %v11803_v8 = vld [vmem:[#allocation8 + $0x38c] ss:$16 sps:$4 sm:$0xff]   ;;  %v11798_v9 = vld [vmem:[#allocation8 + $0x380] ss:$16 sps:$4 sm:$0xff]  }
 0x4ba   :  { %9557 = vmatprep.subr.bf16.mxu1 %v11719_v10  ;;  %v11801_v10 = vld [vmem:[#allocation8 + $0x388] ss:$16 sps:$4 sm:$0xff]  }
 0x4bc   :  { %9386 = vmatpush1.bf16.msra.mxu0 %v11714_v11  ;;  %v11806_v11 = vld [vmem:[#allocation8 + $0x3a4] ss:$16 sps:$4 sm:$0xff]  }
 0x4bd   :  { %9558 = vmatpush1.bf16.msra.mxu1 %v11717_v33  ;;  %9387 = vmatprep.subr.bf16.mxu0 %v11722_v34  ;;  %v11809_v33 = vld [vmem:[#allocation8 + $0x3ac] ss:$16 sps:$4 sm:$0xff]   ;;  %v11804_v34 = vld [vmem:[#allocation8 + $0x3a0] ss:$16 sps:$4 sm:$0xff]  }
 0x4be   :  { %9559 = vmatprep.subr.bf16.mxu1 %v11725_v45  ;;  %v11807_v45 = vld [vmem:[#allocation8 + $0x3a8] ss:$16 sps:$4 sm:$0xff]  }
 0x4c0   :  { %9388 = vmatpush1.bf16.msra.mxu0 %v11720_v13  ;;  %v11812_v13 = vld [vmem:[#allocation8 + $0x3c4] ss:$16 sps:$4 sm:$0xff]  }
 0x4c1   :  { %9560 = vmatpush1.bf16.msra.mxu1 %v11723_v4  ;;  %9400 = vmatprep.subr.bf16.mxu0 %v11728_v31  ;;  %v11815_v4 = vld [vmem:[#allocation8 + $0x3cc] ss:$16 sps:$4 sm:$0xff]   ;;  %v11810_v31 = vld [vmem:[#allocation8 + $0x3c0] ss:$16 sps:$4 sm:$0xff]  }
 0x4c2   :  { %9572 = vmatprep.subr.bf16.mxu1 %v11731_v14  ;;  %v11813_v14 = vld [vmem:[#allocation8 + $0x3c8] ss:$16 sps:$4 sm:$0xff]  }
 0x4c3   :  { %9390 = vmatmul.mubr.bf16.vlgmr.msra.gmra.mrb[8].mxu0 %v12530_v44 }
 0x4c4   :  { %9562 = vmatmul.mubr.bf16.vlgmr.msra.gmra.mrb[8].mxu1 %v12530_v44  ;;  %9401 = vmatpush1.bf16.msra.mxu0 %v11726_v46  ;;  %v11749_v44 = vld [vmem:[#allocation8 + $0x26c] ss:$16 sps:$4 sm:$0xff]   ;;  %v11818_v46 = vld [vmem:[#allocation8 + $0x3e4] ss:$16 sps:$4 sm:$0xff]  }
 0x4c5   :  { %9432 = vmatprep.mubr.bf16.mxu0 %v12536_v30  ;;  %9573 = vmatpush1.bf16.msra.mxu1 %v11729_v16  ;;  %v11821_v16 = vld [vmem:[#allocation8 + $0x3ec] ss:$16 sps:$4 sm:$0xff]  }
 0x4c6   :  { %9604 = vmatprep.mubr.bf16.mxu1 %v12536_v30  ;;  %9402 = vmatprep.subr.bf16.mxu0 %v11734_v19  ;;  %v11750_v30 = vld [vmem:[#allocation8 + $0x280] ss:$16 sps:$4 sm:$0xff]  }
 0x4c7   :  { %9574 = vmatprep.subr.bf16.mxu1 %v11737_v22  ;;  %v11816_v19 = vld [vmem:[#allocation8 + $0x3e0] ss:$16 sps:$4 sm:$0xff]   ;;  %v11819_v22 = vld [vmem:[#allocation8 + $0x3e8] ss:$16 sps:$4 sm:$0xff]  }
 0x4c8   :  { %9403 = vmatpush1.bf16.msra.mxu0 %v11732_v20  ;;  %v11824_v20 = vld [vmem:[#allocation8 + $0x404] ss:$16 sps:$4 sm:$0xff]  }
 0x4c9   :  { %9575 = vmatpush1.bf16.msra.mxu1 %v11735_v21  ;;  %9404 = vmatprep.subr.bf16.mxu0 %v11740_v15  ;;  %v11827_v21 = vld [vmem:[#allocation8 + $0x40c] ss:$16 sps:$4 sm:$0xff]   ;;  %v11822_v15 = vld [vmem:[#allocation8 + $0x400] ss:$16 sps:$4 sm:$0xff]  }
 0x4ca   :  { %9576 = vmatprep.subr.bf16.mxu1 %v11743_v23  ;;  %v11825_v23 = vld [vmem:[#allocation8 + $0x408] ss:$16 sps:$4 sm:$0xff]  }
 0x4cc   :  { %9405 = vmatpush1.bf16.msra.mxu0 %v11738_v50  ;;  %v11830_v50 = vld [vmem:[#allocation8 + $0x424] ss:$16 sps:$4 sm:$0xff]  }
 0x4cd   :  { %9577 = vmatpush1.bf16.msra.mxu1 %v11741_v52  ;;  %9406 = vmatprep.subr.bf16.mxu0 %v11746_v25  ;;  %v11833_v52 = vld [vmem:[#allocation8 + $0x42c] ss:$16 sps:$4 sm:$0xff]   ;;  %v11828_v25 = vld [vmem:[#allocation8 + $0x420] ss:$16 sps:$4 sm:$0xff]  }
 0x4ce   :  { %9578 = vmatprep.subr.bf16.mxu1 %v11749_v44  ;;  %v11831_v44 = vld [vmem:[#allocation8 + $0x428] ss:$16 sps:$4 sm:$0xff]  }
 0x4d0   :  { %9407 = vmatpush1.bf16.msra.mxu0 %v11744_v40  ;;  %v11836_v40 = vld [vmem:[#allocation8 + $0x444] ss:$16 sps:$4 sm:$0xff]  }
 0x4d1   :  { %9579 = vmatpush1.bf16.msra.mxu1 %v11747_v54  ;;  %9408 = vmatprep.subr.bf16.mxu0 %v11752_v57  ;;  %v11839_v54 = vld [vmem:[#allocation8 + $0x44c] ss:$16 sps:$4 sm:$0xff]   ;;  %v11834_v57 = vld [vmem:[#allocation8 + $0x440] ss:$16 sps:$4 sm:$0xff]  }
 0x4d2   :  { %9580 = vmatprep.subr.bf16.mxu1 %v11755_v26  ;;  %v11837_v26 = vld [vmem:[#allocation8 + $0x448] ss:$16 sps:$4 sm:$0xff]  }
 0x4d4   :  { %9409 = vmatpush1.bf16.msra.mxu0 %v11750_v30  ;;  %v11842_v30 = vld [vmem:[#allocation8 + $0x464] ss:$16 sps:$4 sm:$0xff]  }
 0x4d5   :  { %9581 = vmatpush1.bf16.msra.mxu1 %v11753_v28  ;;  %9410 = vmatprep.subr.bf16.mxu0 %v11758_v32  ;;  %v11845_v28 = vld [vmem:[#allocation8 + $0x46c] ss:$16 sps:$4 sm:$0xff]   ;;  %v11840_v32 = vld [vmem:[#allocation8 + $0x460] ss:$16 sps:$4 sm:$0xff]  }
 0x4d6   :  { %9582 = vmatprep.subr.bf16.mxu1 %v11761_v36  ;;  %v11848_v36 = vld [vmem:[#allocation8 + $0x484] ss:$16 sps:$4 sm:$0xff]  }
 0x4d8   :  { %9411 = vmatpush1.bf16.msra.mxu0 %v11756_v53  ;;  %v11851_v53 = vld [vmem:[#allocation8 + $0x48c] ss:$16 sps:$4 sm:$0xff]  }
 0x4d9   :  { %9583 = vmatpush1.bf16.msra.mxu1 %v11759_v2  ;;  %9412 = vmatprep.subr.bf16.mxu0 %v11764_v37  ;;  %v11846_v2 = vld [vmem:[#allocation8 + $0x480] ss:$16 sps:$4 sm:$0xff]   ;;  %v11849_v37 = vld [vmem:[#allocation8 + $0x488] ss:$16 sps:$4 sm:$0xff]  }
 0x4da   :  { %9584 = vmatprep.subr.bf16.mxu1 %v11767_v41  ;;  %v11854_v41 = vld [vmem:[#allocation8 + $0x4a4] ss:$16 sps:$4 sm:$0xff]  }
 0x4dc   :  { %9413 = vmatpush1.bf16.msra.mxu0 %v11762_v17  ;;  %v11857_v17 = vld [vmem:[#allocation8 + $0x4ac] ss:$16 sps:$4 sm:$0xff]  }
 0x4dd   :  { %9585 = vmatpush1.bf16.msra.mxu1 %v11765_v5  ;;  %9414 = vmatprep.subr.bf16.mxu0 %v11770_v47  ;;  %v11852_v5 = vld [vmem:[#allocation8 + $0x4a0] ss:$16 sps:$4 sm:$0xff]   ;;  %v11855_v47 = vld [vmem:[#allocation8 + $0x4a8] ss:$16 sps:$4 sm:$0xff]  }
 0x4de   :  { %9586 = vmatprep.subr.bf16.mxu1 %v11773_v48  ;;  %v11860_v48 = vld [vmem:[#allocation8 + $0x4c4] ss:$16 sps:$4 sm:$0xff]  }
 0x4e0   :  { %9415 = vmatpush1.bf16.msra.mxu0 %v11768_v51  ;;  %v11863_v51 = vld [vmem:[#allocation8 + $0x4cc] ss:$16 sps:$4 sm:$0xff]  }
 0x4e1   :  { %9587 = vmatpush1.bf16.msra.mxu1 %v11771_v1  ;;  %9416 = vmatprep.subr.bf16.mxu0 %v11776_v3  ;;  %v11858_v1 = vld [vmem:[#allocation8 + $0x4c0] ss:$16 sps:$4 sm:$0xff]   ;;  %v11861_v3 = vld [vmem:[#allocation8 + $0x4c8] ss:$16 sps:$4 sm:$0xff]  }
 0x4e2   :  { %9588 = vmatprep.subr.bf16.mxu1 %v11779_v63  ;;  %v11866_v63 = vld [vmem:[#allocation8 + $0x4e4] ss:$16 sps:$4 sm:$0xff]  }
 0x4e4   :  { %9417 = vmatpush1.bf16.msra.mxu0 %v11774_v12  ;;  %v11869_v12 = vld [vmem:[#allocation8 + $0x4ec] ss:$16 sps:$4 sm:$0xff]  }
 0x4e5   :  { %9589 = vmatpush1.bf16.msra.mxu1 %v11777_v55  ;;  %9418 = vmatprep.subr.bf16.mxu0 %v11782_v56  ;;  %v11864_v55 = vld [vmem:[#allocation8 + $0x4e0] ss:$16 sps:$4 sm:$0xff]   ;;  %v11867_v56 = vld [vmem:[#allocation8 + $0x4e8] ss:$16 sps:$4 sm:$0xff]  }
 0x4e6   :  { %9590 = vmatprep.subr.bf16.mxu1 %v11785_v27  ;;  %v11872_v27 = vld [vmem:[#allocation8 + $0x504] ss:$16 sps:$4 sm:$0xff]  }
 0x4e8   :  { %9419 = vmatpush1.bf16.msra.mxu0 %v11780_v29  ;;  %v11875_v29 = vld [vmem:[#allocation8 + $0x50c] ss:$16 sps:$4 sm:$0xff]  }
 0x4e9   :  { %9591 = vmatpush1.bf16.msra.mxu1 %v11783_v59  ;;  %9420 = vmatprep.subr.bf16.mxu0 %v11788_v58  ;;  %v11870_v59 = vld [vmem:[#allocation8 + $0x500] ss:$16 sps:$4 sm:$0xff]   ;;  %v11873_v58 = vld [vmem:[#allocation8 + $0x508] ss:$16 sps:$4 sm:$0xff]  }
 0x4ea   :  { %9592 = vmatprep.subr.bf16.mxu1 %v11791_v60  ;;  %v11878_v60 = vld [vmem:[#allocation8 + $0x524] ss:$16 sps:$4 sm:$0xff]  }
 0x4ec   :  { %9421 = vmatpush1.bf16.msra.mxu0 %v11786_v61  ;;  %v11881_v61 = vld [vmem:[#allocation8 + $0x52c] ss:$16 sps:$4 sm:$0xff]  }
 0x4ed   :  { %9593 = vmatpush1.bf16.msra.mxu1 %v11789_v43  ;;  %9422 = vmatprep.subr.bf16.mxu0 %v11794_v62  ;;  %v11876_v43 = vld [vmem:[#allocation8 + $0x520] ss:$16 sps:$4 sm:$0xff]   ;;  %v11879_v62 = vld [vmem:[#allocation8 + $0x528] ss:$16 sps:$4 sm:$0xff]  }
 0x4ee   :  { %9594 = vmatprep.subr.bf16.mxu1 %v11797_v39  ;;  %v11884_v39 = vld [vmem:[#allocation8 + $0x544] ss:$16 sps:$4 sm:$0xff]  }
 0x4f0   :  { %9423 = vmatpush1.bf16.msra.mxu0 %v11792_v0  ;;  %v11887_v0 = vld [vmem:[#allocation8 + $0x54c] ss:$16 sps:$4 sm:$0xff]  }
 0x4f1   :  { %9595 = vmatpush1.bf16.msra.mxu1 %v11795_v6  ;;  %9424 = vmatprep.subr.bf16.mxu0 %v11800_v7  ;;  %v11882_v6 = vld [vmem:[#allocation8 + $0x540] ss:$16 sps:$4 sm:$0xff]   ;;  %v11885_v7 = vld [vmem:[#allocation8 + $0x548] ss:$16 sps:$4 sm:$0xff]  }
 0x4f2   :  { %9596 = vmatprep.subr.bf16.mxu1 %v11803_v8  ;;  %v11890_v8 = vld [vmem:[#allocation8 + $0x564] ss:$16 sps:$4 sm:$0xff]  }
 0x4f4   :  { %9425 = vmatpush1.bf16.msra.mxu0 %v11798_v9  ;;  %v11893_v9 = vld [vmem:[#allocation8 + $0x56c] ss:$16 sps:$4 sm:$0xff]  }
 0x4f5   :  { %9597 = vmatpush1.bf16.msra.mxu1 %v11801_v10  ;;  %9426 = vmatprep.subr.bf16.mxu0 %v11806_v11  ;;  %v11888_v10 = vld [vmem:[#allocation8 + $0x560] ss:$16 sps:$4 sm:$0xff]   ;;  %v11891_v11 = vld [vmem:[#allocation8 + $0x568] ss:$16 sps:$4 sm:$0xff]  }
 0x4f6   :  { %9598 = vmatprep.subr.bf16.mxu1 %v11809_v33  ;;  %v11896_v33 = vld [vmem:[#allocation8 + $0x584] ss:$16 sps:$4 sm:$0xff]  }
 0x4f8   :  { %9427 = vmatpush1.bf16.msra.mxu0 %v11804_v34  ;;  %v11899_v34 = vld [vmem:[#allocation8 + $0x58c] ss:$16 sps:$4 sm:$0xff]  }
 0x4f9   :  { %9599 = vmatpush1.bf16.msra.mxu1 %v11807_v45  ;;  %9428 = vmatprep.subr.bf16.mxu0 %v11812_v13  ;;  %v11894_v45 = vld [vmem:[#allocation8 + $0x580] ss:$16 sps:$4 sm:$0xff]   ;;  %v11897_v13 = vld [vmem:[#allocation8 + $0x588] ss:$16 sps:$4 sm:$0xff]  }
 0x4fa   :  { %9600 = vmatprep.subr.bf16.mxu1 %v11815_v4  ;;  %v11902_v4 = vld [vmem:[#allocation8 + $0x5a4] ss:$16 sps:$4 sm:$0xff]  }
 0x4fc   :  { %9429 = vmatpush1.bf16.msra.mxu0 %v11810_v31  ;;  %v11905_v31 = vld [vmem:[#allocation8 + $0x5ac] ss:$16 sps:$4 sm:$0xff]  }
 0x4fd   :  { %9601 = vmatpush1.bf16.msra.mxu1 %v11813_v14  ;;  %9430 = vmatprep.subr.bf16.mxu0 %v11818_v46  ;;  %v11900_v14 = vld [vmem:[#allocation8 + $0x5a0] ss:$16 sps:$4 sm:$0xff]   ;;  %v11903_v46 = vld [vmem:[#allocation8 + $0x5a8] ss:$16 sps:$4 sm:$0xff]  }
 0x4fe   :  { %9602 = vmatprep.subr.bf16.mxu1 %v11821_v16  ;;  %v11908_v16 = vld [vmem:[#allocation8 + $0x5c4] ss:$16 sps:$4 sm:$0xff]  }
 0x500   :  { %9431 = vmatpush1.bf16.msra.mxu0 %v11816_v19  ;;  %v11911_v19 = vld [vmem:[#allocation8 + $0x5cc] ss:$16 sps:$4 sm:$0xff]  }
 0x501   :  { %9603 = vmatpush1.bf16.msra.mxu1 %v11819_v22  ;;  %9443 = vmatprep.subr.bf16.mxu0 %v11824_v20  ;;  %v11906_v22 = vld [vmem:[#allocation8 + $0x5c0] ss:$16 sps:$4 sm:$0xff]   ;;  %v11909_v20 = vld [vmem:[#allocation8 + $0x5c8] ss:$16 sps:$4 sm:$0xff]  }
 0x502   :  { %9615 = vmatprep.subr.bf16.mxu1 %v11827_v21  ;;  %v11914_v21 = vld [vmem:[#allocation8 + $0x5e4] ss:$16 sps:$4 sm:$0xff]  }
 0x503   :  { %9433 = vmatmul.mubr.bf16.vlgmr.msra.gmra.mrb[8].mxu0 %v12532_v49 }
 0x504   :  { %9605 = vmatmul.mubr.bf16.vlgmr.msra.gmra.mrb[8].mxu1 %v12532_v49  ;;  %9444 = vmatpush1.bf16.msra.mxu0 %v11822_v15  ;;  %v11843_v49 = vld [vmem:[#allocation8 + $0x468] ss:$16 sps:$4 sm:$0xff]   ;;  %v11917_v15 = vld [vmem:[#allocation8 + $0x5ec] ss:$16 sps:$4 sm:$0xff]  }
 0x505   :  { %9616 = vmatpush1.bf16.msra.mxu1 %v11825_v23  ;;  %9445 = vmatprep.subr.bf16.mxu0 %v11830_v50  ;;  %v11912_v23 = vld [vmem:[#allocation8 + $0x5e0] ss:$16 sps:$4 sm:$0xff]   ;;  %v11915_v50 = vld [vmem:[#allocation8 + $0x5e8] ss:$16 sps:$4 sm:$0xff]  }
 0x506   :  { %9617 = vmatprep.subr.bf16.mxu1 %v11833_v52  ;;  %v11920_v52 = vld [vmem:[#allocation8 + $0x604] ss:$16 sps:$4 sm:$0xff]  }
 0x508   :  { %9446 = vmatpush1.bf16.msra.mxu0 %v11828_v25  ;;  %v11923_v25 = vld [vmem:[#allocation8 + $0x60c] ss:$16 sps:$4 sm:$0xff]  }
 0x509   :  { %9618 = vmatpush1.bf16.msra.mxu1 %v11831_v44  ;;  %9447 = vmatprep.subr.bf16.mxu0 %v11836_v40  ;;  %v1177_v44 = vsub.s32 4, %v12516_v24  ;;  %v1185_v40 = vsub.s32 6, %v12516_v24 }
 0x50a   :  { %9619 = vmatprep.subr.bf16.mxu1 %v11839_v54  ;;  %v1181_v54 = vsub.s32 5, %v12516_v24 }
 0x50c   :  { %9448 = vmatpush1.bf16.msra.mxu0 %v11834_v57  ;;  %v1189_v57 = vsub.s32 7, %v12516_v24 }
 0x50d   :  { %9620 = vmatpush1.bf16.msra.mxu1 %v11837_v26  ;;  %9449 = vmatprep.subr.bf16.mxu0 %v11842_v30  ;;  %v12046_v26 = vld [vmem:[#allocation7] sm:$0xff] }
 0x50e   :  { %9621 = vmatprep.subr.bf16.mxu1 %v11845_v28  ;;  %v1178_v30 = vrot.slane %v12046_v26, %v1177_v44  ;;  %v1186_v28 = vrot.slane %v12046_v26, %v1185_v40  ;;  %v11956_v44 = vld [vmem:[#allocation8 + $0x6c4] ss:$16 sps:$4 sm:$0xff]   ;;  %v11959_v40 = vld [vmem:[#allocation8 + $0x6cc] ss:$16 sps:$4 sm:$0xff]  }
 0x510   :  { %9450 = vmatpush1.bf16.msra.mxu0 %v11840_v32  ;;  %v1182_v32 = vrot.slane %v12046_v26, %v1181_v54  ;;  %v11954_v54 = vld [vmem:[#allocation8 + $0x6c0] ss:$16 sps:$4 sm:$0xff]  }
 0x511   :  { %9622 = vmatpush1.bf16.msra.mxu1 %v11843_v49  ;;  %9451 = vmatprep.subr.bf16.mxu0 %v11848_v36  ;;  %v1190_v49 = vrot.slane %v12046_v26, %v1189_v57  ;;  %v11957_v57 = vld [vmem:[#allocation8 + $0x6c8] ss:$16 sps:$4 sm:$0xff]   ;;  %v11962_v26 = vld [vmem:[#allocation8 + $0x6e4] ss:$16 sps:$4 sm:$0xff]  }
 0x512   :  { %9623 = vmatprep.subr.bf16.mxu1 %v11851_v53 }
 0x514   :  { %9452 = vmatpush1.bf16.msra.mxu0 %v11846_v2 }
 0x515   :  { %9624 = vmatpush1.bf16.msra.mxu1 %v11849_v37  ;;  %9453 = vmatprep.subr.bf16.mxu0 %v11854_v41 }
 0x516   :  { %9625 = vmatprep.subr.bf16.mxu1 %v11857_v17 }
 0x518   :  { %9454 = vmatpush1.bf16.msra.mxu0 %v11852_v5 }
 0x519   :  { %9626 = vmatpush1.bf16.msra.mxu1 %v11855_v47  ;;  %9455 = vmatprep.subr.bf16.mxu0 %v11860_v48 }
 0x51a   :  { %9627 = vmatprep.subr.bf16.mxu1 %v11863_v51 }
 0x51c   :  { %9456 = vmatpush1.bf16.msra.mxu0 %v11858_v1 }
 0x51d   :  { %9628 = vmatpush1.bf16.msra.mxu1 %v11861_v3  ;;  %9457 = vmatprep.subr.bf16.mxu0 %v11866_v63 }
 0x51e   :  { %9629 = vmatprep.subr.bf16.mxu1 %v11869_v12 }
 0x520   :  { %9458 = vmatpush1.bf16.msra.mxu0 %v11864_v55 }
 0x521   :  { %9630 = vmatpush1.bf16.msra.mxu1 %v11867_v56  ;;  %9459 = vmatprep.subr.bf16.mxu0 %v11872_v27 }
 0x522   :  { %9631 = vmatprep.subr.bf16.mxu1 %v11875_v29 }
 0x524   :  { %9460 = vmatpush1.bf16.msra.mxu0 %v11870_v59 }
 0x525   :  { %9632 = vmatpush1.bf16.msra.mxu1 %v11873_v58  ;;  %9461 = vmatprep.subr.bf16.mxu0 %v11878_v60 }
 0x526   :  { %9633 = vmatprep.subr.bf16.mxu1 %v11881_v61 }
 0x528   :  { %9462 = vmatpush1.bf16.msra.mxu0 %v11876_v43 }
 0x529   :  { %9634 = vmatpush1.bf16.msra.mxu1 %v11879_v62  ;;  %9463 = vmatprep.subr.bf16.mxu0 %v11884_v39 }
 0x52a   :  { %9635 = vmatprep.subr.bf16.mxu1 %v11887_v0 }
 0x52c   :  { %9464 = vmatpush1.bf16.msra.mxu0 %v11882_v6 }
 0x52d   :  { %9636 = vmatpush1.bf16.msra.mxu1 %v11885_v7  ;;  %9465 = vmatprep.subr.bf16.mxu0 %v11890_v8  ;;  %v11918_v7 = vld [vmem:[#allocation8 + $0x600] ss:$16 sps:$4 sm:$0xff]   ;;  %v11921_v8 = vld [vmem:[#allocation8 + $0x608] ss:$16 sps:$4 sm:$0xff]  }
 0x52e   :  { %9637 = vmatprep.subr.bf16.mxu1 %v11893_v9 }
 0x530   :  { %9466 = vmatpush1.bf16.msra.mxu0 %v11888_v10  ;;  %v11926_v10 = vld [vmem:[#allocation8 + $0x624] ss:$16 sps:$4 sm:$0xff]  }
 0x531   :  { %9638 = vmatpush1.bf16.msra.mxu1 %v11891_v11  ;;  %9467 = vmatprep.subr.bf16.mxu0 %v11896_v33  ;;  %v11929_v11 = vld [vmem:[#allocation8 + $0x62c] ss:$16 sps:$4 sm:$0xff]   ;;  %v11924_v33 = vld [vmem:[#allocation8 + $0x620] ss:$16 sps:$4 sm:$0xff]  }
 0x532   :  { %9639 = vmatprep.subr.bf16.mxu1 %v11899_v34  ;;  %v11927_v34 = vld [vmem:[#allocation8 + $0x628] ss:$16 sps:$4 sm:$0xff]  }
 0x534   :  { %9468 = vmatpush1.bf16.msra.mxu0 %v11894_v45  ;;  %v11932_v45 = vld [vmem:[#allocation8 + $0x644] ss:$16 sps:$4 sm:$0xff]  }
 0x535   :  { %9640 = vmatpush1.bf16.msra.mxu1 %v11897_v13  ;;  %9469 = vmatprep.subr.bf16.mxu0 %v11902_v4  ;;  %v11935_v13 = vld [vmem:[#allocation8 + $0x64c] ss:$16 sps:$4 sm:$0xff]   ;;  %v11930_v4 = vld [vmem:[#allocation8 + $0x640] ss:$16 sps:$4 sm:$0xff]  }
 0x536   :  { %9641 = vmatprep.subr.bf16.mxu1 %v11905_v31  ;;  %v11933_v31 = vld [vmem:[#allocation8 + $0x648] ss:$16 sps:$4 sm:$0xff]  }
 0x538   :  { %9470 = vmatpush1.bf16.msra.mxu0 %v11900_v14  ;;  %v11938_v14 = vld [vmem:[#allocation8 + $0x664] ss:$16 sps:$4 sm:$0xff]  }
 0x539   :  { %9642 = vmatpush1.bf16.msra.mxu1 %v11903_v46  ;;  %9471 = vmatprep.subr.bf16.mxu0 %v11908_v16  ;;  %v11941_v46 = vld [vmem:[#allocation8 + $0x66c] ss:$16 sps:$4 sm:$0xff]   ;;  %v11936_v16 = vld [vmem:[#allocation8 + $0x660] ss:$16 sps:$4 sm:$0xff]  }
 0x53a   :  { %9643 = vmatprep.subr.bf16.mxu1 %v11911_v19  ;;  %v11939_v19 = vld [vmem:[#allocation8 + $0x668] ss:$16 sps:$4 sm:$0xff]  }
 0x53c   :  { %9472 = vmatpush1.bf16.msra.mxu0 %v11906_v22  ;;  %v11944_v22 = vld [vmem:[#allocation8 + $0x684] ss:$16 sps:$4 sm:$0xff]  }
 0x53d   :  { %9644 = vmatpush1.bf16.msra.mxu1 %v11909_v20  ;;  %9473 = vmatprep.subr.bf16.mxu0 %v11914_v21  ;;  %v11947_v20 = vld [vmem:[#allocation8 + $0x68c] ss:$16 sps:$4 sm:$0xff]   ;;  %v11942_v21 = vld [vmem:[#allocation8 + $0x680] ss:$16 sps:$4 sm:$0xff]  }
 0x53e   :  { %9645 = vmatprep.subr.bf16.mxu1 %v11917_v15  ;;  %v11945_v15 = vld [vmem:[#allocation8 + $0x688] ss:$16 sps:$4 sm:$0xff]  }
 0x540   :  { %9474 = vmatpush1.bf16.msra.mxu0 %v11912_v23  ;;  %v11950_v23 = vld [vmem:[#allocation8 + $0x6a4] ss:$16 sps:$4 sm:$0xff]  }
 0x541   :  { %9646 = vmatpush1.bf16.msra.mxu1 %v11915_v50  ;;  %9486 = vmatprep.subr.bf16.mxu0 %v11920_v52  ;;  %v11953_v50 = vld [vmem:[#allocation8 + $0x6ac] ss:$16 sps:$4 sm:$0xff]   ;;  %v11948_v52 = vld [vmem:[#allocation8 + $0x6a0] ss:$16 sps:$4 sm:$0xff]  }
 0x542   :  { %9658 = vmatprep.subr.bf16.mxu1 %v11923_v25  ;;  %v11951_v25 = vld [vmem:[#allocation8 + $0x6a8] ss:$16 sps:$4 sm:$0xff]  }
 0x556   :  { %v7422_v36 = vpop.f32.mrb[4].mxu0  ;;  %v7766_v2 = vpop.f32.mrb[4].mxu1 }
 0x557   :  { %v11461_v53 = vadd.f32 %v7422_v36, %v1178_v30  ;;  %v7424_v37 = vpop.f32.mrb[5].mxu0  ;;  %v11465_v41 = vadd.f32 %v7766_v2, %v1186_v28  ;;  %v7768_v5 = vpop.f32.mrb[5].mxu1  ;;  %v11971_v36 = vld [vmem:[#allocation8 + $0x70c] ss:$16 sps:$4 sm:$0xff]   ;;  %v11969_v2 = vld [vmem:[#allocation8 + $0x708] ss:$16 sps:$4 sm:$0xff]  }
 0x558   :  { %v11462_v17 = vadd.f32 %v7424_v37, %v1182_v32  ;;  %v7426_v47 = vpop.f32.mrb[6].mxu0  ;;  %v11466_v48 = vadd.f32 %v7768_v5, %v1190_v49  ;;  %v7770_v1 = vpop.f32.mrb[6].mxu1  ;;  %v11974_v37 = vld [vmem:[#allocation8 + $0x724] ss:$16 sps:$4 sm:$0xff]   ;;  %v11975_v5 = vld [vmem:[#allocation8 + $0x728] ss:$16 sps:$4 sm:$0xff]  }
 0x559   :  { %v11463_v51 = vadd.f32 %v7426_v47, %v1178_v30  ;;  %v7428_v3 = vpop.f32.mrb[7].mxu0  ;;  %v11467_v63 = vadd.f32 %v7770_v1, %v1186_v28  ;;  %v7772_v55 = vpop.f32.mrb[7].mxu1  ;;  %v7779_v56 = vmax.f32 %v11461_v53, 0.0  ;;  %v7781_v59 = vmax.f32 %v11465_v41, 0.0  ;;  %v11965_v30 = vld [vmem:[#allocation8 + $0x6ec] ss:$16 sps:$4 sm:$0xff]  }
 0x55a   :  { %v11464_v12 = vadd.f32 %v7428_v3, %v1182_v32  ;;  %v11468_v29 = vadd.f32 %v7772_v55, %v1190_v49  ;;  %v7780_v58 = vmax.f32 %v11462_v17, 0.0  ;;  %v7782_v43 = vmax.f32 %v11466_v48, 0.0  ;;  %v11960_v28 = vld [vmem:[#allocation8 + $0x6e0] ss:$16 sps:$4 sm:$0xff]   ;;  %v11963_v32 = vld [vmem:[#allocation8 + $0x6e8] ss:$16 sps:$4 sm:$0xff]  }
 0x55b   :  { %v7787_v27 = vmax.f32 %v11463_v51, 0.0  ;;  %v7789_v60 = vmax.f32 %v11467_v63, 0.0  ;;  %v11968_v49 = vld [vmem:[#allocation8 + $0x704] ss:$16 sps:$4 sm:$0xff]   ;;  %v11966_v53 = vld [vmem:[#allocation8 + $0x700] ss:$16 sps:$4 sm:$0xff]  }
 0x55c   :  { %v7788_v61 = vmax.f32 %v11464_v12, 0.0  ;;  %v7790_v39 = vmax.f32 %v11468_v29, 0.0  ;;  %v11977_v41 = vld [vmem:[#allocation8 + $0x72c] ss:$16 sps:$4 sm:$0xff]   ;;  %v11972_v17 = vld [vmem:[#allocation8 + $0x720] ss:$16 sps:$4 sm:$0xff]  }
 0x55d   :  { %v7795_v62 = vpack.c.bf16 %v7787_v27, %v7779_v56  ;;  %v12568_v0 = vpack.c.bf16 %v7789_v60, %v7781_v59  ;;  %v11980_v47 = vld [vmem:[#allocation8 + $0x744] ss:$16 sps:$4 sm:$0xff]   ;;  %v11983_v48 = vld [vmem:[#allocation8 + $0x74c] ss:$16 sps:$4 sm:$0xff]   ;;  %v11978_v51 = vld [vmem:[#allocation8 + $0x740] ss:$16 sps:$4 sm:$0xff]  }
 0x55e   :  { %v7796_v6 = vpack.c.bf16 %v7788_v61, %v7780_v58  ;;  %v7798_v9 = vpack.c.bf16 %v7790_v39, %v7782_v43  ;;  %v11981_v1 = vld [vmem:[#allocation8 + $0x748] ss:$16 sps:$4 sm:$0xff]   ;;  %v11986_v3 = vld [vmem:[#allocation8 + $0x764] ss:$16 sps:$4 sm:$0xff]   ;;  %v11989_v63 = vld [vmem:[#allocation8 + $0x76c] ss:$16 sps:$4 sm:$0xff]  }
 0x55f   :  { %v11984_v12 = vld [vmem:[#allocation8 + $0x760] ss:$16 sps:$4 sm:$0xff]   ;;  %v11987_v55 = vld [vmem:[#allocation8 + $0x768] ss:$16 sps:$4 sm:$0xff]   ;;  %v11992_v56 = vld [vmem:[#allocation8 + $0x784] ss:$16 sps:$4 sm:$0xff]  }
 0x560   :  { %9475 = vmatprep.mubr.bf16.mxu0 %v7796_v6  ;;  %9647 = vmatprep.mubr.bf16.mxu1 %v7796_v6  ;;  %v11995_v27 = vld [vmem:[#allocation8 + $0x78c] ss:$16 sps:$4 sm:$0xff]   ;;  %v11990_v29 = vld [vmem:[#allocation8 + $0x780] ss:$16 sps:$4 sm:$0xff]   ;;  %v11993_v59 = vld [vmem:[#allocation8 + $0x788] ss:$16 sps:$4 sm:$0xff]  }
 0x561   :  { %9476 = vmatmul.mubr.bf16.vlgmr.msra.gmra.mrb[8].mxu0 %v7795_v62  ;;  %9648 = vmatmul.mubr.bf16.vlgmr.msra.gmra.mrb[8].mxu1 %v7795_v62  ;;  %v11998_v58 = vld [vmem:[#allocation8 + $0x7a4] ss:$16 sps:$4 sm:$0xff]   ;;  %v12001_v60 = vld [vmem:[#allocation8 + $0x7ac] ss:$16 sps:$4 sm:$0xff]   ;;  %v11996_v61 = vld [vmem:[#allocation8 + $0x7a0] ss:$16 sps:$4 sm:$0xff]  }
 0x562   :  { %9487 = vmatpush1.bf16.msra.mxu0 %v11918_v7  ;;  %9659 = vmatpush1.bf16.msra.mxu1 %v11921_v8  ;;  %v11999_v43 = vld [vmem:[#allocation8 + $0x7a8] ss:$16 sps:$4 sm:$0xff]   ;;  %v12004_v62 = vld [vmem:[#allocation8 + $0x7c4] ss:$16 sps:$4 sm:$0xff]   ;;  %v12007_v39 = vld [vmem:[#allocation8 + $0x7cc] ss:$16 sps:$4 sm:$0xff]  }
 0x563   :  { %9518 = vmatprep.mubr.bf16.mxu0 %v7798_v9  ;;  %9690 = vmatprep.mubr.bf16.mxu1 %v7798_v9  ;;  %v12002_v6 = vld [vmem:[#allocation8 + $0x7c0] ss:$16 sps:$4 sm:$0xff]   ;;  %v12005_v7 = vld [vmem:[#allocation8 + $0x7c8] ss:$16 sps:$4 sm:$0xff]   ;;  %v12010_v8 = vld [vmem:[#allocation8 + $0x7e4] ss:$16 sps:$4 sm:$0xff]  }
 0x564   :  { %9488 = vmatprep.subr.bf16.mxu0 %v11926_v10  ;;  %9660 = vmatprep.subr.bf16.mxu1 %v11929_v11  ;;  %v12013_v9 = vld [vmem:[#allocation8 + $0x7ec] ss:$16 sps:$4 sm:$0xff]   ;;  %v12008_v10 = vld [vmem:[#allocation8 + $0x7e0] ss:$16 sps:$4 sm:$0xff]   ;;  %v12011_v11 = vld [vmem:[#allocation8 + $0x7e8] ss:$16 sps:$4 sm:$0xff]  }
 0x566   :  { %9489 = vmatpush1.bf16.msra.mxu0 %v11924_v33  ;;  %9661 = vmatpush1.bf16.msra.mxu1 %v11927_v34  ;;  %v12014_v33 = vld [vmem:[#allocation11 + $0x40] sm:$0xff]  }
 0x567   :  { %9490 = vmatprep.subr.bf16.mxu0 %v11932_v45  ;;  %9662 = vmatprep.subr.bf16.mxu1 %v11935_v13  ;;  %v12015_v34 = vld [vmem:[#allocation11 + $0xc0] sm:$0xff]  }
 0x568   :  { %v12016_v45 = vld [vmem:[#allocation11] sm:$0xff]  }
 0x569   :  { %v12017_v13 = vld [vmem:[#allocation11 + $0x80] sm:$0xff]  }
 0x56a   :  { %9491 = vmatpush1.bf16.msra.mxu0 %v11930_v4  ;;  %9663 = vmatpush1.bf16.msra.mxu1 %v11933_v31  ;;  %v12018_v4 = vld [vmem:[#allocation11 + $0x48] sm:$0xff]  }
 0x56b   :  { %9492 = vmatprep.subr.bf16.mxu0 %v11938_v14  ;;  %9664 = vmatprep.subr.bf16.mxu1 %v11941_v46  ;;  %v12019_v31 = vld [vmem:[#allocation11 + $0xc8] sm:$0xff]  }
 0x56c   :  { %v12020_v14 = vld [vmem:[#allocation11 + $0x8] sm:$0xff]  }
 0x56d   :  { %v12021_v46 = vld [vmem:[#allocation11 + $0x88] sm:$0xff]  }
 0x56e   :  { %9493 = vmatpush1.bf16.msra.mxu0 %v11936_v16  ;;  %9665 = vmatpush1.bf16.msra.mxu1 %v11939_v19  ;;  %v12022_v16 = vld [vmem:[#allocation11 + $0x50] sm:$0xff]  }
 0x56f   :  { %9494 = vmatprep.subr.bf16.mxu0 %v11944_v22  ;;  %9666 = vmatprep.subr.bf16.mxu1 %v11947_v20  ;;  %v12023_v19 = vld [vmem:[#allocation11 + $0xd0] sm:$0xff]  }
 0x570   :  { %v12024_v22 = vld [vmem:[#allocation11 + $0x10] sm:$0xff]  }
 0x571   :  { %v12025_v20 = vld [vmem:[#allocation11 + $0x90] sm:$0xff]  }
 0x572   :  { %9495 = vmatpush1.bf16.msra.mxu0 %v11942_v21  ;;  %9667 = vmatpush1.bf16.msra.mxu1 %v11945_v15  ;;  %v12026_v21 = vld [vmem:[#allocation11 + $0x58] sm:$0xff]  }
 0x573   :  { %9496 = vmatprep.subr.bf16.mxu0 %v11950_v23  ;;  %9668 = vmatprep.subr.bf16.mxu1 %v11953_v50  ;;  %v12027_v15 = vld [vmem:[#allocation11 + $0xd8] sm:$0xff]   ;;  %v12030_v50 = vld [vmem:[#allocation11 + $0x60] sm:$0xff]  }
 0x574   :  { %v12028_v23 = vld [vmem:[#allocation11 + $0x18] sm:$0xff]  }
 0x576   :  { %9497 = vmatpush1.bf16.msra.mxu0 %v11948_v52  ;;  %9669 = vmatpush1.bf16.msra.mxu1 %v11951_v25  ;;  %v12031_v52 = vld [vmem:[#allocation11 + $0xe0] sm:$0xff]  }
 0x577   :  { %9498 = vmatprep.subr.bf16.mxu0 %v11956_v44  ;;  %9670 = vmatprep.subr.bf16.mxu1 %v11959_v40  ;;  %v12032_v25 = vld [vmem:[#allocation11 + $0x20] sm:$0xff]   ;;  %v12034_v40 = vld [vmem:[#allocation11 + $0x68] sm:$0xff]  }
 0x578   :  { %v12033_v44 = vld [vmem:[#allocation11 + $0xa0] sm:$0xff]  }
 0x57a   :  { %9499 = vmatpush1.bf16.msra.mxu0 %v11954_v54  ;;  %9671 = vmatpush1.bf16.msra.mxu1 %v11957_v57  ;;  %v12035_v54 = vld [vmem:[#allocation11 + $0xe8] sm:$0xff]  }
 0x57b   :  { %9500 = vmatprep.subr.bf16.mxu0 %v11962_v26  ;;  %9672 = vmatprep.subr.bf16.mxu1 %v11965_v30  ;;  %v12036_v57 = vld [vmem:[#allocation11 + $0x28] sm:$0xff]   ;;  %v12038_v30 = vld [vmem:[#allocation11 + $0x70] sm:$0xff]  }
 0x57c   :  { %v12037_v26 = vld [vmem:[#allocation11 + $0xa8] sm:$0xff]  }
 0x57e   :  { %9501 = vmatpush1.bf16.msra.mxu0 %v11960_v28  ;;  %9673 = vmatpush1.bf16.msra.mxu1 %v11963_v32  ;;  %v12039_v28 = vld [vmem:[#allocation11 + $0xf0] sm:$0xff]  }
 0x57f   :  { %9502 = vmatprep.subr.bf16.mxu0 %v11968_v49  ;;  %9674 = vmatprep.subr.bf16.mxu1 %v11971_v36  ;;  %v12040_v32 = vld [vmem:[#allocation11 + $0x30] sm:$0xff]   ;;  %v12042_v36 = vld [vmem:[#allocation11 + $0x78] sm:$0xff]  }
 0x580   :  { %v12041_v49 = vld [vmem:[#allocation11 + $0xb0] sm:$0xff]  }
 0x582   :  { %9503 = vmatpush1.bf16.msra.mxu0 %v11966_v53  ;;  %9675 = vmatpush1.bf16.msra.mxu1 %v11969_v2  ;;  %v12043_v53 = vld [vmem:[#allocation11 + $0xf8] sm:$0xff]  }
 0x583   :  { %9504 = vmatprep.subr.bf16.mxu0 %v11974_v37  ;;  %9676 = vmatprep.subr.bf16.mxu1 %v11977_v41  ;;  %v12044_v2 = vld [vmem:[#allocation11 + $0x38] sm:$0xff]  }
 0x584   :  { %v12045_v37 = vld [vmem:[#allocation11 + $0xb8] sm:$0xff]  }
 0x585   :  { %v8055_v41 = vld [vmem:[#allocation10] sm:$0xf] }
 0x586   :  { %9505 = vmatpush1.bf16.msra.mxu0 %v11972_v17  ;;  %9677 = vmatpush1.bf16.msra.mxu1 %v11975_v5  ;;  %v8060_v17 = vrot.slane %v8055_v41, %v1161_v35  ;;  %v8068_v5 = vrot.slane %v8055_v41, %v1169_v42 }
 0x587   :  { %9506 = vmatprep.subr.bf16.mxu0 %v11980_v47  ;;  %9678 = vmatprep.subr.bf16.mxu1 %v11983_v48  ;;  %v8064_v47 = vrot.slane %v8055_v41, %v1165_v38  ;;  %v8072_v48 = vrot.slane %v8055_v41, %v1173_v18 }
 0x58a   :  { %9507 = vmatpush1.bf16.msra.mxu0 %v11978_v51  ;;  %9679 = vmatpush1.bf16.msra.mxu1 %v11981_v1 }
 0x58b   :  { %9508 = vmatprep.subr.bf16.mxu0 %v11986_v3  ;;  %9680 = vmatprep.subr.bf16.mxu1 %v11989_v63 }
 0x58e   :  { %9509 = vmatpush1.bf16.msra.mxu0 %v11984_v12  ;;  %9681 = vmatpush1.bf16.msra.mxu1 %v11987_v55 }
 0x58f   :  { %9510 = vmatprep.subr.bf16.mxu0 %v11992_v56  ;;  %9682 = vmatprep.subr.bf16.mxu1 %v11995_v27 }
 0x592   :  { %9511 = vmatpush1.bf16.msra.mxu0 %v11990_v29  ;;  %9683 = vmatpush1.bf16.msra.mxu1 %v11993_v59 }
 0x593   :  { %9512 = vmatprep.subr.bf16.mxu0 %v11998_v58  ;;  %9684 = vmatprep.subr.bf16.mxu1 %v12001_v60 }
 0x596   :  { %9513 = vmatpush1.bf16.msra.mxu0 %v11996_v61  ;;  %9685 = vmatpush1.bf16.msra.mxu1 %v11999_v43 }
 0x597   :  { %9514 = vmatprep.subr.bf16.mxu0 %v12004_v62  ;;  %9686 = vmatprep.subr.bf16.mxu1 %v12007_v39 }
 0x59a   :  { %9515 = vmatpush1.bf16.msra.mxu0 %v12002_v6  ;;  %9687 = vmatpush1.bf16.msra.mxu1 %v12005_v7 }
 0x59b   :  { %9516 = vmatprep.subr.bf16.mxu0 %v12010_v8  ;;  %9688 = vmatprep.subr.bf16.mxu1 %v12013_v9 }
 0x59e   :  { %9517 = vmatpush1.bf16.msra.mxu0 %v12008_v10  ;;  %9689 = vmatpush1.bf16.msra.mxu1 %v12011_v11 }
 0x59f   :  { %11409 = vmatprep.subr.bf16.mxu0 %v12014_v33  ;;  %11431 = vmatprep.subr.bf16.mxu1 %v12015_v34 }
 0x5a1   :  { %9519 = vmatmul.mubr.bf16.vlgmr.msra.gmra.mrb[8].mxu0 %v12568_v0  ;;  %9691 = vmatmul.mubr.bf16.vlgmr.msra.gmra.mrb[8].mxu1 %v12568_v0  ;;  %v12029_v0 = vld [vmem:[#allocation11 + $0x98] sm:$0xff]  }
 0x5a2   :  { %11410 = vmatpush3.bf16.msra.mxu0 %v12016_v45  ;;  %11432 = vmatpush3.bf16.msra.mxu1 %v12017_v13  ;;  %v11376_v13 = vld [vmem:[#allocation13] ss:$0 sm:$0xff] }
 0x5a3   :  { %11411 = vmatprep.subr.bf16.mxu0 %v12018_v4  ;;  %11433 = vmatprep.subr.bf16.mxu1 %v12019_v31 }
 0x5a6   :  { %11412 = vmatpush3.bf16.msra.mxu0 %v12020_v14  ;;  %11434 = vmatpush3.bf16.msra.mxu1 %v12021_v46 }
 0x5a7   :  { %11413 = vmatprep.subr.bf16.mxu0 %v12022_v16  ;;  %11435 = vmatprep.subr.bf16.mxu1 %v12023_v19 }
 0x5aa   :  { %11414 = vmatpush3.bf16.msra.mxu0 %v12024_v22  ;;  %11436 = vmatpush3.bf16.msra.mxu1 %v12025_v20 }
 0x5ab   :  { %11415 = vmatprep.subr.bf16.mxu0 %v12026_v21  ;;  %11437 = vmatprep.subr.bf16.mxu1 %v12027_v15 }
 0x5ae   :  { %11416 = vmatpush3.bf16.msra.mxu0 %v12028_v23  ;;  %11438 = vmatpush3.bf16.msra.mxu1 %v12029_v0 }
 0x5af   :  { %11417 = vmatprep.subr.bf16.mxu0 %v12030_v50  ;;  %11439 = vmatprep.subr.bf16.mxu1 %v12031_v52 }
 0x5b2   :  { %11418 = vmatpush3.bf16.msra.mxu0 %v12032_v25  ;;  %11440 = vmatpush3.bf16.msra.mxu1 %v12033_v44 }
 0x5b3   :  { %11419 = vmatprep.subr.bf16.mxu0 %v12034_v40  ;;  %11441 = vmatprep.subr.bf16.mxu1 %v12035_v54 }
 0x5b6   :  { %11420 = vmatpush3.bf16.msra.mxu0 %v12036_v57  ;;  %11442 = vmatpush3.bf16.msra.mxu1 %v12037_v26 }
 0x5b7   :  { %11421 = vmatprep.subr.bf16.mxu0 %v12038_v30  ;;  %11443 = vmatprep.subr.bf16.mxu1 %v12039_v28 }
 0x5ba   :  { %11422 = vmatpush3.bf16.msra.mxu0 %v12040_v32  ;;  %11444 = vmatpush3.bf16.msra.mxu1 %v12041_v49 }
 0x5bb   :  { %11423 = vmatprep.subr.bf16.mxu0 %v12042_v36  ;;  %11445 = vmatprep.subr.bf16.mxu1 %v12043_v53 }
 0x5be   :  { %11424 = vmatpush3.bf16.msra.mxu0 %v12044_v2  ;;  %11446 = vmatpush3.bf16.msra.mxu1 %v12045_v37 }
 0x674   :  { %v9520_v51 = vpop.f32.mrb[8].mxu0  ;;  %v9692_v1 = vpop.f32.mrb[8].mxu1 }
 0x675   :  { %v11469_v3 = vadd.f32 %v9520_v51, %v8060_v17  ;;  %v11473_v63 = vadd.f32 %v9692_v1, %v8068_v5  ;;  %v9522_v12 = vpop.f32.mrb[9].mxu0  ;;  %v9694_v55 = vpop.f32.mrb[9].mxu1 }
 0x676   :  { %v11470_v56 = vadd.f32 %v9522_v12, %v8064_v47  ;;  %v11474_v27 = vadd.f32 %v9694_v55, %v8072_v48  ;;  %v9524_v29 = vpop.f32.mrb[10].mxu0  ;;  %v9696_v59 = vpop.f32.mrb[10].mxu1 }
 0x677   :  { %v11471_v35 = vadd.f32 %v9524_v29, %v8060_v17  ;;  %v11475_v58 = vadd.f32 %v9696_v59, %v8068_v5  ;;  %v9526_v60 = vpop.f32.mrb[11].mxu0  ;;  %v9698_v42 = vpop.f32.mrb[11].mxu1  ;;  %v9701_v38 = vmax.f32 %v11469_v3, 0.0  ;;  %v9703_v62 = vmax.f32 %v11473_v63, 0.0 }
 0x678   :  { %v11472_v61 = vadd.f32 %v9526_v60, %v8064_v47  ;;  %v11476_v43 = vadd.f32 %v9698_v42, %v8072_v48  ;;  %v9702_v39 = vmax.f32 %v11470_v56, 0.0  ;;  %v9704_v6 = vmax.f32 %v11474_v27, 0.0 }
 0x679   :  { %v9705_v24 = vmax.f32 %v11471_v35, 0.0  ;;  %v9707_v18 = vmax.f32 %v11475_v58, 0.0 }
 0x67a   :  { %v9706_v7 = vmax.f32 %v11472_v61, 0.0  ;;  %v9708_v8 = vmax.f32 %v11476_v43, 0.0 }
 0x67b   :  { %v9709_v9 = vpack.c.bf16 %v9705_v24, %v9701_v38  ;;  %v9711_v10 = vpack.c.bf16 %v9707_v18, %v9703_v62 }
 0x67c   :  { %v9710_v11 = vpack.c.bf16 %v9706_v7, %v9702_v39  ;;  %v9712_v33 = vpack.c.bf16 %v9708_v8, %v9704_v6 }
 0x67e   :  { %10008 = vmatprep.mubr.bf16.mxu0 %v9710_v11  ;;  %10049 = vmatprep.mubr.bf16.mxu1 %v9712_v33 }
 0x67f   :  { %10009 = vmatmul.mubr.bf16.vlgmr.msra.gmra.mrb[12].mxu0 %v9709_v9  ;;  %10050 = vmatmul.mubr.bf16.vlgmr.msra.gmra.mrb[12].mxu1 %v9711_v10 }
 0x752   :  { %v11425_v34 = vpop.f32.mrb[12].mxu0  ;;  %v11447_v45 = vpop.f32.mrb[12].mxu1 }
 0x753   :  { %v11426_v4 = vpop.f32.mrb[13].mxu0  ;;  %v11448_v31 = vpop.f32.mrb[13].mxu1 }
 0x754   :  { %v11427_v14 = vadd.f32 %v11426_v4, %v11425_v34  ;;  %v11449_v46 = vadd.f32 %v11448_v31, %v11447_v45  ;;  %v11428_v16 = vpop.f32.mrb[14].mxu0  ;;  %v11450_v19 = vpop.f32.mrb[14].mxu1 }
 0x755   :  { %v11429_v22 = vpop.f32.mrb[15].mxu0  ;;  %v11451_v20 = vpop.f32.mrb[15].mxu1 }
 0x756   :  { %v10011_v21 = vadd.f32 %v11427_v14, %v11376_v13  ;;  %v11430_v15 = vadd.f32 %v11429_v22, %v11428_v16  ;;  %v11452_v23 = vadd.f32 %v11451_v20, %v11450_v19 }
 0x758   :  { %v10052_v0 = vadd.f32 %v11449_v46, %v10011_v21  ;;  %v10014_v50 = vadd.f32 %v11430_v15, %v11376_v13 }
 0x75a   :  { %10058 = vst [vmem:[#allocation14] sm:$0xff] %v10052_v0  ;;  %v10055_v52 = vadd.f32 %v11452_v23, %v10014_v50 }
 0x75c   :  { %10059 = vst [vmem:[#allocation14 + $0x8] sm:$0xff] %v10055_v52 }
 0x75d   :  { %12212 = shalt.err (!%p12209_p4)
}
 0x75e   :  { %s12213_s3 = scalar_lea.hbm %s12599_s7, 256 }
 0x75f   :  { %p12214_p5 = scmp.ne.s32.totalorder %s12599_s7, %s12213_s3  ;;  %p12217_p6 = scmp.lt.u32.totalorder %s12213_s3, %s12599_s7 }
 0x761   :  { %p12219_p7 = pnand %p12217_p6, %p12214_p5 }
 0x763   :  { %12222 = shalt.err (!%p12219_p7)
}
 0x764   :  { %s12248_s21 = smov 128   ;;  %s12249_s22 = smov 8  }
 0x765   :  { %10071 = dma.vmem_to_hbm [thread:$0]  %s10066_s14, 256, %s12599_s7, [#allocation4], %s12248_s21, %s12248_s21, %s12249_s22  }
 0x766   :  { %12231 = dma.done.wait [#allocation4], 256  }
 0x767   :  { %12232 = vsyncadd [#allocation4], 4294967040 }
 0x768   :  { %10075 = vsyncpa [#allocation3], 1 }
 0x769   :  { %10076 = vsyncpa [#allocation6], 1 }
 0x76a   :  { %10077 = vsyncpa [#allocation9], 1 }
 0x76b   :  { %10078 = vsyncpa [#allocation12], 1 }
 0x76c   :  { %10079 = vsyncpa [#allocation4], 1 }

</bundles_post_ra>
